<compile_context>
chip_gen: v5e
topology: v5e:2x2
jax: 0.10.0
libtpu: 0.0.40
codegen_flags: <defaults>
</compile_context>

<pallas_src>
import functools
import math

import jax
import jax.numpy as jnp
from jax import lax
from jax.experimental import pallas as pl
from jax.experimental.pallas import tpu as pltpu


def _pick_tile(n: int, target: int) -> int:
    """Largest tile <= target that divides n and is 8-aligned (or n itself)."""
    t = min(n, target)
    if n % t == 0 and (t % 8 == 0 or t == n):
        return t
    for c in range(t, 0, -1):
        if n % c == 0 and c % 8 == 0:
            return c
    return n


def _mhsa_flash_kernel(xq_ref, xkv_ref, wq_ref, bq_ref, wk_ref, bk_ref,
                       wv_ref, bv_ref, wo_ref, bo_ref, o_ref,
                       q_scr, acc_scr, m_scr, l_scr,
                       *, n_heads: int, compute_dtype, approx_recip: bool):
    # xq_ref : (TQ, D)      query-token tile of x
    # xkv_ref: (TKV, D)     key/value-token tile of x
    # wq/wk/wv_ref: (H, D, dh)   head-major projection weights (scale folded in wq)
    # bq/bk/bv_ref: (H, 1, dh)   f32 biases
    # wo_ref : (H, dh, D)   head-major output projection weight
    # bo_ref : (1, D)       f32 output bias
    # o_ref  : (TQ, D)
    # scratch: q_scr (H,TQ,dh) compute dtype; acc_scr (H,TQ,dh) f32;
    #          m_scr/l_scr (H,TQ,1) f32 running max / running sum
    ki = pl.program_id(2)
    nk = pl.num_programs(2)

    # --- first kv step for this (batch, query tile): init state, project Q ---
    @pl.when(ki == 0)
    def _init():
        m_scr[...] = jnp.full(m_scr.shape, -jnp.inf, dtype=m_scr.dtype)
        l_scr[...] = jnp.zeros(l_scr.shape, dtype=l_scr.dtype)
        acc_scr[...] = jnp.zeros(acc_scr.shape, dtype=acc_scr.dtype)
        xq = xq_ref[...].astype(compute_dtype)                     # (TQ, D)
        for h in range(n_heads):
            # 1/sqrt(dh) already folded into wq/bq by the wrapper.
            qh = jnp.dot(xq, wq_ref[h], preferred_element_type=jnp.float32)
            qh = qh + bq_ref[h]                                    # (TQ, dh) f32
            q_scr[h] = qh.astype(q_scr.dtype)

    # --- one kv tile: project K/V, online softmax update per head ---
    xkv = xkv_ref[...].astype(compute_dtype)                       # (TKV, D)
    for h in range(n_heads):
        kh = jnp.dot(xkv, wk_ref[h], preferred_element_type=jnp.float32)
        kh = (kh + bk_ref[h]).astype(compute_dtype)                # (TKV, dh)
        vh = jnp.dot(xkv, wv_ref[h], preferred_element_type=jnp.float32)
        vh = (vh + bv_ref[h]).astype(compute_dtype)                # (TKV, dh)

        qh = q_scr[h]                                              # (TQ, dh)
        # scores = q @ k^T expressed as a contraction over dh (no transpose).
        s = lax.dot_general(qh, kh,
                            dimension_numbers=(((1,), (1,)), ((), ())),
                            preferred_element_type=jnp.float32)    # (TQ, TKV)

        m_prev = m_scr[h]                                          # (TQ, 1)
        m_new = jnp.maximum(m_prev, jnp.max(s, axis=-1, keepdims=True))
        alpha = jnp.exp(m_prev - m_new)                            # (TQ, 1)
        p = jnp.exp(s - m_new)                                     # (TQ, TKV) f32
        l_scr[h] = alpha * l_scr[h] + jnp.sum(p, axis=-1, keepdims=True)
        acc_scr[h] = alpha * acc_scr[h] + jnp.dot(
            p.astype(compute_dtype), vh, preferred_element_type=jnp.float32)
        m_scr[h] = m_new

    # --- last kv step: normalize, output projection, write the query tile ---
    @pl.when(ki == nk - 1)
    def _finalize():
        tq, d = o_ref.shape
        out = jnp.zeros((tq, d), dtype=jnp.float32)
        for h in range(n_heads):
            if approx_recip:
                inv_l = pl.reciprocal(l_scr[h], approx=True)       # EUP slot
            else:
                inv_l = 1.0 / l_scr[h]
            oh = (acc_scr[h] * inv_l).astype(compute_dtype)        # (TQ, dh)
            # head h's slice of the output projection; summing over heads is
            # exactly the concat-then-matmul of the reference.
            out = out + jnp.dot(oh, wo_ref[h],
                                preferred_element_type=jnp.float32)
        o_ref[...] = (out + bo_ref[...]).astype(o_ref.dtype)


def mhsa_forward(x, w_qkv, b_qkv, w_out, b_out, *, n_heads: int,
                 q_tile: int = 256, kv_tile: int = 256,
                 compute_dtype=jnp.bfloat16):
    """MHSA forward.

    x:     (B, N, D)
    w_qkv: (D, 3D)  QKV weight stored (in, out)  (transposed vs torch.nn.Linear)
    b_qkv: (1, 3D)
    w_out: (D, D)   output weight stored (in, out)
    b_out: (1, D)
    """
    B, N, D = x.shape
    H = n_heads
    assert D % H == 0, "in_dim must be divisible by n_heads"
    dh = D // H
    scale = 1.0 / math.sqrt(dh)
    compute_dtype = jnp.dtype(compute_dtype)
    f32 = jnp.float32

    tq = _pick_tile(N, q_tile)
    tkv = _pick_tile(N, kv_tile)

    # Host-side re-layouts (free): split fused QKV, fold the softmax scale into
    # the Q projection, lay weights out head-major so the kernel never slices
    # lanes at non-128-aligned offsets, cast MXU operands to compute_dtype.
    wq = (w_qkv[:, 0 * D:1 * D].astype(f32) * scale).reshape(D, H, dh)
    wq = wq.transpose(1, 0, 2).astype(compute_dtype)               # (H, D, dh)
    wk = w_qkv[:, 1 * D:2 * D].reshape(D, H, dh).transpose(1, 0, 2).astype(compute_dtype)
    wv = w_qkv[:, 2 * D:3 * D].reshape(D, H, dh).transpose(1, 0, 2).astype(compute_dtype)
    bq = (b_qkv[0, 0 * D:1 * D].astype(f32) * scale).reshape(H, 1, dh)
    bk = b_qkv[0, 1 * D:2 * D].astype(f32).reshape(H, 1, dh)
    bv = b_qkv[0, 2 * D:3 * D].astype(f32).reshape(H, 1, dh)
    wo = w_out.reshape(H, dh, D).astype(compute_dtype)             # (H, dh, D)
    bo = b_out.astype(f32)                                         # (1, D)

    # Rough VMEM footprint (double-buffered activations + resident weights +
    # scratch) -> explicit limit, sized so defaults also fit v7x's 64 MiB.
    cbytes = compute_dtype.itemsize
    xbytes = x.dtype.itemsize
    vmem_bytes = (
        2 * (tq + tkv) * D * xbytes          # x query / kv tiles (2x buffered)
        + 2 * tq * D * xbytes                # output tile (2x buffered)
        + 2 * 4 * D * D * cbytes             # wq/wk/wv/wo (worst case 2x)
        + 8 * D * 4                          # biases
        + H * tq * dh * (cbytes + 4)         # q + acc scratch
        + 2 * H * tq * 4                     # m + l scratch
    )
    vmem_limit = int(min(56 * 2**20, max(32 * 2**20, 2 * vmem_bytes)))

    grid = (B, N // tq, N // tkv)

    kernel = functools.partial(
        _mhsa_flash_kernel, n_heads=H, compute_dtype=compute_dtype,
        approx_recip=(compute_dtype != jnp.dtype(jnp.float32)))

    def weight_spec(shape):
        return pl.BlockSpec(shape, lambda b, qi, ki: (0,) * len(shape))

    return pl.pallas_call(
        kernel,
        out_shape=jax.ShapeDtypeStruct((B, N, D), x.dtype),
        grid=grid,
        in_specs=[
            pl.BlockSpec((None, tq, D), lambda b, qi, ki: (b, qi, 0)),   # x (queries)
            pl.BlockSpec((None, tkv, D), lambda b, qi, ki: (b, ki, 0)),  # x (keys/values)
            weight_spec((H, D, dh)),    # wq (scale folded in)
            weight_spec((H, 1, dh)),    # bq
            weight_spec((H, D, dh)),    # wk
            weight_spec((H, 1, dh)),    # bk
            weight_spec((H, D, dh)),    # wv
            weight_spec((H, 1, dh)),    # bv
            weight_spec((H, dh, D)),    # wo
            weight_spec((1, D)),        # bo
        ],
        out_specs=pl.BlockSpec((None, tq, D), lambda b, qi, ki: (b, qi, 0)),
        scratch_shapes=[
            pltpu.VMEM((H, tq, dh), compute_dtype),   # q (per query tile)
            pltpu.VMEM((H, tq, dh), jnp.float32),     # output accumulator
            pltpu.VMEM((H, tq, 1), jnp.float32),      # running max
            pltpu.VMEM((H, tq, 1), jnp.float32),      # running sum
        ],
        compiler_params=pltpu.CompilerParams(
            dimension_semantics=("parallel", "parallel", "arbitrary"),
            vmem_limit_bytes=vmem_limit),
    )(x, x, wq, bq, wk, bk, wv, bv, wo, bo)


def mhsa_reference(x, w_qkv, b_qkv, w_out, b_out, *, n_heads: int):
    """Pure-JAX reference mirroring the PyTorch module exactly."""
    B, N, D = x.shape
    dh = D // n_heads
    qkv = x @ w_qkv + b_qkv[0]                                # (B, N, 3D)
    qkv = qkv.reshape(B, N, 3, n_heads, dh).transpose(2, 0, 3, 1, 4)
    q, k, v = qkv[0], qkv[1], qkv[2]                          # (B, H, N, dh)
    attn = q @ jnp.swapaxes(k, -2, -1) / math.sqrt(dh)        # (B, H, N, N)
    attn = jax.nn.softmax(attn, axis=-1)
    out = attn @ v                                            # (B, H, N, dh)
    out = jnp.swapaxes(out, 1, 2).reshape(B, N, D)
    return out @ w_out + b_out[0]


if __name__ == "__main__":
    B, N, D = 2, 8, 32
    n_heads = 8

    key = jax.random.PRNGKey(0)
    kx, kw1, kb1, kw2, kb2 = jax.random.split(key, 5)

    x = jax.random.normal(kx, (B, N, D), dtype=jnp.float32)
    # nn.Linear shapes, stored transposed as (in, out).
    w_qkv = jax.random.normal(kw1, (D, 3 * D), dtype=jnp.float32) / math.sqrt(D)
    b_qkv = jax.random.normal(kb1, (1, 3 * D), dtype=jnp.float32) * 0.02
    w_out = jax.random.normal(kw2, (D, D), dtype=jnp.float32) / math.sqrt(D)
    b_out = jax.random.normal(kb2, (1, D), dtype=jnp.float32) * 0.02

    ref = mhsa_reference(x, w_qkv, b_qkv, w_out, b_out, n_heads=n_heads)

    # f32 verification path (exact math, tight tolerance).
    out_f32 = jax.block_until_ready(
        mhsa_forward(x, w_qkv, b_qkv, w_out, b_out, n_heads=n_heads,
                     compute_dtype=jnp.float32))
    assert out_f32.shape == (B, N, D)
    assert jnp.allclose(out_f32, ref, atol=1e-4, rtol=1e-4), "f32 path mismatch"

    # bf16 MXU-operand path (production default on v5e/v6e/v7x).
    out_bf16 = jax.block_until_ready(
        mhsa_forward(x, w_qkv, b_qkv, w_out, b_out, n_heads=n_heads,
                     compute_dtype=jnp.bfloat16))
    assert jnp.allclose(out_bf16, ref, atol=5e-2, rtol=5e-2), "bf16 path mismatch"

    print("KERNEL_OK")
</pallas_src>

<mosaic_0001>
module attributes {stable_mosaic.version = 11 : i64} {
  func.func @_mhsa_flash_kernel(%arg0: i32, %arg1: i32, %arg2: i32, %arg3: memref<1x8x32xf32, #tpu.memory_space<vmem>>, %arg4: memref<1x8x32xf32, #tpu.memory_space<vmem>>, %arg5: memref<8x32x4xf32, #tpu.memory_space<vmem>>, %arg6: memref<8x1x4xf32, #tpu.memory_space<vmem>>, %arg7: memref<8x32x4xf32, #tpu.memory_space<vmem>>, %arg8: memref<8x1x4xf32, #tpu.memory_space<vmem>>, %arg9: memref<8x32x4xf32, #tpu.memory_space<vmem>>, %arg10: memref<8x1x4xf32, #tpu.memory_space<vmem>>, %arg11: memref<8x4x32xf32, #tpu.memory_space<vmem>>, %arg12: memref<1x32xf32, #tpu.memory_space<vmem>>, %arg13: memref<1x8x32xf32, #tpu.memory_space<vmem>>, %arg14: memref<8x8x4xf32, #tpu.memory_space<vmem>>, %arg15: memref<8x8x4xf32, #tpu.memory_space<vmem>>, %arg16: memref<8x8x1xf32, #tpu.memory_space<vmem>>, %arg17: memref<8x8x1xf32, #tpu.memory_space<vmem>>) attributes {dimension_semantics = [#tpu.dimension_semantics<parallel>, #tpu.dimension_semantics<parallel>, #tpu.dimension_semantics<arbitrary>], iteration_bounds = array<i64: 2, 1, 1>, scalar_prefetch = 0 : i64, scratch_operands = 4 : i64, tpu.core_type = #tpu.core_type<tc>, window_params = [{transform_indices = @transform_0, window_bounds = array<i64: 1, 8, 32>}, {transform_indices = @transform_1, window_bounds = array<i64: 1, 8, 32>}, {pipeline_mode = #tpu.pipeline_mode<synchronous>, transform_indices = @transform_2, window_bounds = array<i64: 8, 32, 4>}, {pipeline_mode = #tpu.pipeline_mode<synchronous>, transform_indices = @transform_3, window_bounds = array<i64: 8, 1, 4>}, {pipeline_mode = #tpu.pipeline_mode<synchronous>, transform_indices = @transform_4, window_bounds = array<i64: 8, 32, 4>}, {pipeline_mode = #tpu.pipeline_mode<synchronous>, transform_indices = @transform_5, window_bounds = array<i64: 8, 1, 4>}, {pipeline_mode = #tpu.pipeline_mode<synchronous>, transform_indices = @transform_6, window_bounds = array<i64: 8, 32, 4>}, {pipeline_mode = #tpu.pipeline_mode<synchronous>, transform_indices = @transform_7, window_bounds = array<i64: 8, 1, 4>}, {pipeline_mode = #tpu.pipeline_mode<synchronous>, transform_indices = @transform_8, window_bounds = array<i64: 8, 4, 32>}, {pipeline_mode = #tpu.pipeline_mode<synchronous>, transform_indices = @transform_9, window_bounds = array<i64: 1, 32>}, {transform_indices = @transform_10, window_bounds = array<i64: 1, 8, 32>}]} {
    %c0_i32 = arith.constant 0 : i32
    %0 = arith.cmpi eq, %arg2, %c0_i32 : i32
    %1 = arith.extui %0 : i1 to i32
    %c0_i32_0 = arith.constant 0 : i32
    %2 = arith.cmpi ne, %1, %c0_i32_0 : i32
    scf.if %2 {
      %cst_309 = arith.constant 0xFF800000 : f32
      %392 = vector.broadcast %cst_309 : f32 to vector<8x8x1xf32>
      %c0_310 = arith.constant 0 : index
      %c0_311 = arith.constant 0 : index
      %c0_312 = arith.constant 0 : index
      %393 = vector.load %arg16[%c0_310, %c0_311, %c0_312] : memref<8x8x1xf32, #tpu.memory_space<vmem>>, vector<8x8x1xf32>
      tpu.vector_store %arg16[%c0_310, %c0_311, %c0_312], %392 {strides = array<i32>} : memref<8x8x1xf32, #tpu.memory_space<vmem>>, vector<8x8x1xf32>,
      %cst_313 = arith.constant 0.000000e+00 : f32
      %394 = vector.broadcast %cst_313 : f32 to vector<8x8x1xf32>
      %c0_314 = arith.constant 0 : index
      %c0_315 = arith.constant 0 : index
      %c0_316 = arith.constant 0 : index
      %395 = vector.load %arg17[%c0_314, %c0_315, %c0_316] : memref<8x8x1xf32, #tpu.memory_space<vmem>>, vector<8x8x1xf32>
      tpu.vector_store %arg17[%c0_314, %c0_315, %c0_316], %394 {strides = array<i32>} : memref<8x8x1xf32, #tpu.memory_space<vmem>>, vector<8x8x1xf32>,
      %cst_317 = arith.constant 0.000000e+00 : f32
      %396 = vector.broadcast %cst_317 : f32 to vector<8x8x4xf32>
      %c0_318 = arith.constant 0 : index
      %c0_319 = arith.constant 0 : index
      %c0_320 = arith.constant 0 : index
      %397 = vector.load %arg15[%c0_318, %c0_319, %c0_320] : memref<8x8x4xf32, #tpu.memory_space<vmem>>, vector<8x8x4xf32>
      tpu.vector_store %arg15[%c0_318, %c0_319, %c0_320], %396 {strides = array<i32>} : memref<8x8x4xf32, #tpu.memory_space<vmem>>, vector<8x8x4xf32>,
      %c0_321 = arith.constant 0 : index
      %c0_322 = arith.constant 0 : index
      %c0_323 = arith.constant 0 : index
      %398 = vector.load %arg3[%c0_321, %c0_322, %c0_323] : memref<1x8x32xf32, #tpu.memory_space<vmem>>, vector<1x8x32xf32>
      %399 = vector.shape_cast %398 : vector<1x8x32xf32> to vector<8x32xf32>
      %c0_324 = arith.constant 0 : index
      %c0_325 = arith.constant 0 : index
      %c0_326 = arith.constant 0 : index
      %400 = vector.load %arg5[%c0_324, %c0_325, %c0_326] : memref<8x32x4xf32, #tpu.memory_space<vmem>>, vector<1x32x4xf32>
      %401 = vector.shape_cast %400 : vector<1x32x4xf32> to vector<32x4xf32>
      %cst_327 = arith.constant dense<0.000000e+00> : vector<8x4xf32>
      %402 = tpu.matmul %399, %401, %cst_327 {dimension_numbers = #tpu.dot_dimension_numbers<[1], [0], [0], [1], [0, 0, 1, 1], [], []>} : vector<8x32xf32>, vector<32x4xf32>, vector<8x4xf32> -> vector<8x4xf32>
      %c0_328 = arith.constant 0 : index
      %c0_329 = arith.constant 0 : index
      %c0_330 = arith.constant 0 : index
      %403 = vector.load %arg6[%c0_328, %c0_329, %c0_330] : memref<8x1x4xf32, #tpu.memory_space<vmem>>, vector<1x1x4xf32>
      %404 = vector.shape_cast %403 : vector<1x1x4xf32> to vector<1x4xf32>
      %405 = vector.broadcast %404 : vector<1x4xf32> to vector<8x4xf32>
      %406 = arith.addf %402, %405 : vector<8x4xf32>
      %c0_331 = arith.constant 0 : index
      %c0_332 = arith.constant 0 : index
      %c0_333 = arith.constant 0 : index
      %407 = vector.load %arg14[%c0_331, %c0_332, %c0_333] : memref<8x8x4xf32, #tpu.memory_space<vmem>>, vector<1x8x4xf32>
      %408 = vector.shape_cast %407 : vector<1x8x4xf32> to vector<8x4xf32>
      %409 = vector.shape_cast %406 : vector<8x4xf32> to vector<1x8x4xf32>
      tpu.vector_store %arg14[%c0_331, %c0_332, %c0_333], %409 {strides = array<i32>} : memref<8x8x4xf32, #tpu.memory_space<vmem>>, vector<1x8x4xf32>,
      %c1_334 = arith.constant 1 : index
      %c0_335 = arith.constant 0 : index
      %c0_336 = arith.constant 0 : index
      %410 = vector.load %arg5[%c1_334, %c0_335, %c0_336] : memref<8x32x4xf32, #tpu.memory_space<vmem>>, vector<1x32x4xf32>
      %411 = vector.shape_cast %410 : vector<1x32x4xf32> to vector<32x4xf32>
      %cst_337 = arith.constant dense<0.000000e+00> : vector<8x4xf32>
      %412 = tpu.matmul %399, %411, %cst_337 {dimension_numbers = #tpu.dot_dimension_numbers<[1], [0], [0], [1], [0, 0, 1, 1], [], []>} : vector<8x32xf32>, vector<32x4xf32>, vector<8x4xf32> -> vector<8x4xf32>
      %c1_338 = arith.constant 1 : index
      %c0_339 = arith.constant 0 : index
      %c0_340 = arith.constant 0 : index
      %413 = vector.load %arg6[%c1_338, %c0_339, %c0_340] : memref<8x1x4xf32, #tpu.memory_space<vmem>>, vector<1x1x4xf32>
      %414 = vector.shape_cast %413 : vector<1x1x4xf32> to vector<1x4xf32>
      %415 = vector.broadcast %414 : vector<1x4xf32> to vector<8x4xf32>
      %416 = arith.addf %412, %415 : vector<8x4xf32>
      %c1_341 = arith.constant 1 : index
      %c0_342 = arith.constant 0 : index
      %c0_343 = arith.constant 0 : index
      %417 = vector.load %arg14[%c1_341, %c0_342, %c0_343] : memref<8x8x4xf32, #tpu.memory_space<vmem>>, vector<1x8x4xf32>
      %418 = vector.shape_cast %417 : vector<1x8x4xf32> to vector<8x4xf32>
      %419 = vector.shape_cast %416 : vector<8x4xf32> to vector<1x8x4xf32>
      tpu.vector_store %arg14[%c1_341, %c0_342, %c0_343], %419 {strides = array<i32>} : memref<8x8x4xf32, #tpu.memory_space<vmem>>, vector<1x8x4xf32>,
      %c2_344 = arith.constant 2 : index
      %c0_345 = arith.constant 0 : index
      %c0_346 = arith.constant 0 : index
      %420 = vector.load %arg5[%c2_344, %c0_345, %c0_346] : memref<8x32x4xf32, #tpu.memory_space<vmem>>, vector<1x32x4xf32>
      %421 = vector.shape_cast %420 : vector<1x32x4xf32> to vector<32x4xf32>
      %cst_347 = arith.constant dense<0.000000e+00> : vector<8x4xf32>
      %422 = tpu.matmul %399, %421, %cst_347 {dimension_numbers = #tpu.dot_dimension_numbers<[1], [0], [0], [1], [0, 0, 1, 1], [], []>} : vector<8x32xf32>, vector<32x4xf32>, vector<8x4xf32> -> vector<8x4xf32>
      %c2_348 = arith.constant 2 : index
      %c0_349 = arith.constant 0 : index
      %c0_350 = arith.constant 0 : index
      %423 = vector.load %arg6[%c2_348, %c0_349, %c0_350] : memref<8x1x4xf32, #tpu.memory_space<vmem>>, vector<1x1x4xf32>
      %424 = vector.shape_cast %423 : vector<1x1x4xf32> to vector<1x4xf32>
      %425 = vector.broadcast %424 : vector<1x4xf32> to vector<8x4xf32>
      %426 = arith.addf %422, %425 : vector<8x4xf32>
      %c2_351 = arith.constant 2 : index
      %c0_352 = arith.constant 0 : index
      %c0_353 = arith.constant 0 : index
      %427 = vector.load %arg14[%c2_351, %c0_352, %c0_353] : memref<8x8x4xf32, #tpu.memory_space<vmem>>, vector<1x8x4xf32>
      %428 = vector.shape_cast %427 : vector<1x8x4xf32> to vector<8x4xf32>
      %429 = vector.shape_cast %426 : vector<8x4xf32> to vector<1x8x4xf32>
      tpu.vector_store %arg14[%c2_351, %c0_352, %c0_353], %429 {strides = array<i32>} : memref<8x8x4xf32, #tpu.memory_space<vmem>>, vector<1x8x4xf32>,
      %c3_354 = arith.constant 3 : index
      %c0_355 = arith.constant 0 : index
      %c0_356 = arith.constant 0 : index
      %430 = vector.load %arg5[%c3_354, %c0_355, %c0_356] : memref<8x32x4xf32, #tpu.memory_space<vmem>>, vector<1x32x4xf32>
      %431 = vector.shape_cast %430 : vector<1x32x4xf32> to vector<32x4xf32>
      %cst_357 = arith.constant dense<0.000000e+00> : vector<8x4xf32>
      %432 = tpu.matmul %399, %431, %cst_357 {dimension_numbers = #tpu.dot_dimension_numbers<[1], [0], [0], [1], [0, 0, 1, 1], [], []>} : vector<8x32xf32>, vector<32x4xf32>, vector<8x4xf32> -> vector<8x4xf32>
      %c3_358 = arith.constant 3 : index
      %c0_359 = arith.constant 0 : index
      %c0_360 = arith.constant 0 : index
      %433 = vector.load %arg6[%c3_358, %c0_359, %c0_360] : memref<8x1x4xf32, #tpu.memory_space<vmem>>, vector<1x1x4xf32>
      %434 = vector.shape_cast %433 : vector<1x1x4xf32> to vector<1x4xf32>
      %435 = vector.broadcast %434 : vector<1x4xf32> to vector<8x4xf32>
      %436 = arith.addf %432, %435 : vector<8x4xf32>
      %c3_361 = arith.constant 3 : index
      %c0_362 = arith.constant 0 : index
      %c0_363 = arith.constant 0 : index
      %437 = vector.load %arg14[%c3_361, %c0_362, %c0_363] : memref<8x8x4xf32, #tpu.memory_space<vmem>>, vector<1x8x4xf32>
      %438 = vector.shape_cast %437 : vector<1x8x4xf32> to vector<8x4xf32>
      %439 = vector.shape_cast %436 : vector<8x4xf32> to vector<1x8x4xf32>
      tpu.vector_store %arg14[%c3_361, %c0_362, %c0_363], %439 {strides = array<i32>} : memref<8x8x4xf32, #tpu.memory_space<vmem>>, vector<1x8x4xf32>,
      %c4_364 = arith.constant 4 : index
      %c0_365 = arith.constant 0 : index
      %c0_366 = arith.constant 0 : index
      %440 = vector.load %arg5[%c4_364, %c0_365, %c0_366] : memref<8x32x4xf32, #tpu.memory_space<vmem>>, vector<1x32x4xf32>
      %441 = vector.shape_cast %440 : vector<1x32x4xf32> to vector<32x4xf32>
      %cst_367 = arith.constant dense<0.000000e+00> : vector<8x4xf32>
      %442 = tpu.matmul %399, %441, %cst_367 {dimension_numbers = #tpu.dot_dimension_numbers<[1], [0], [0], [1], [0, 0, 1, 1], [], []>} : vector<8x32xf32>, vector<32x4xf32>, vector<8x4xf32> -> vector<8x4xf32>
      %c4_368 = arith.constant 4 : index
      %c0_369 = arith.constant 0 : index
      %c0_370 = arith.constant 0 : index
      %443 = vector.load %arg6[%c4_368, %c0_369, %c0_370] : memref<8x1x4xf32, #tpu.memory_space<vmem>>, vector<1x1x4xf32>
      %444 = vector.shape_cast %443 : vector<1x1x4xf32> to vector<1x4xf32>
      %445 = vector.broadcast %444 : vector<1x4xf32> to vector<8x4xf32>
      %446 = arith.addf %442, %445 : vector<8x4xf32>
      %c4_371 = arith.constant 4 : index
      %c0_372 = arith.constant 0 : index
      %c0_373 = arith.constant 0 : index
      %447 = vector.load %arg14[%c4_371, %c0_372, %c0_373] : memref<8x8x4xf32, #tpu.memory_space<vmem>>, vector<1x8x4xf32>
      %448 = vector.shape_cast %447 : vector<1x8x4xf32> to vector<8x4xf32>
      %449 = vector.shape_cast %446 : vector<8x4xf32> to vector<1x8x4xf32>
      tpu.vector_store %arg14[%c4_371, %c0_372, %c0_373], %449 {strides = array<i32>} : memref<8x8x4xf32, #tpu.memory_space<vmem>>, vector<1x8x4xf32>,
      %c5_374 = arith.constant 5 : index
      %c0_375 = arith.constant 0 : index
      %c0_376 = arith.constant 0 : index
      %450 = vector.load %arg5[%c5_374, %c0_375, %c0_376] : memref<8x32x4xf32, #tpu.memory_space<vmem>>, vector<1x32x4xf32>
      %451 = vector.shape_cast %450 : vector<1x32x4xf32> to vector<32x4xf32>
      %cst_377 = arith.constant dense<0.000000e+00> : vector<8x4xf32>
      %452 = tpu.matmul %399, %451, %cst_377 {dimension_numbers = #tpu.dot_dimension_numbers<[1], [0], [0], [1], [0, 0, 1, 1], [], []>} : vector<8x32xf32>, vector<32x4xf32>, vector<8x4xf32> -> vector<8x4xf32>
      %c5_378 = arith.constant 5 : index
      %c0_379 = arith.constant 0 : index
      %c0_380 = arith.constant 0 : index
      %453 = vector.load %arg6[%c5_378, %c0_379, %c0_380] : memref<8x1x4xf32, #tpu.memory_space<vmem>>, vector<1x1x4xf32>
      %454 = vector.shape_cast %453 : vector<1x1x4xf32> to vector<1x4xf32>
      %455 = vector.broadcast %454 : vector<1x4xf32> to vector<8x4xf32>
      %456 = arith.addf %452, %455 : vector<8x4xf32>
      %c5_381 = arith.constant 5 : index
      %c0_382 = arith.constant 0 : index
      %c0_383 = arith.constant 0 : index
      %457 = vector.load %arg14[%c5_381, %c0_382, %c0_383] : memref<8x8x4xf32, #tpu.memory_space<vmem>>, vector<1x8x4xf32>
      %458 = vector.shape_cast %457 : vector<1x8x4xf32> to vector<8x4xf32>
      %459 = vector.shape_cast %456 : vector<8x4xf32> to vector<1x8x4xf32>
      tpu.vector_store %arg14[%c5_381, %c0_382, %c0_383], %459 {strides = array<i32>} : memref<8x8x4xf32, #tpu.memory_space<vmem>>, vector<1x8x4xf32>,
      %c6_384 = arith.constant 6 : index
      %c0_385 = arith.constant 0 : index
      %c0_386 = arith.constant 0 : index
      %460 = vector.load %arg5[%c6_384, %c0_385, %c0_386] : memref<8x32x4xf32, #tpu.memory_space<vmem>>, vector<1x32x4xf32>
      %461 = vector.shape_cast %460 : vector<1x32x4xf32> to vector<32x4xf32>
      %cst_387 = arith.constant dense<0.000000e+00> : vector<8x4xf32>
      %462 = tpu.matmul %399, %461, %cst_387 {dimension_numbers = #tpu.dot_dimension_numbers<[1], [0], [0], [1], [0, 0, 1, 1], [], []>} : vector<8x32xf32>, vector<32x4xf32>, vector<8x4xf32> -> vector<8x4xf32>
      %c6_388 = arith.constant 6 : index
      %c0_389 = arith.constant 0 : index
      %c0_390 = arith.constant 0 : index
      %463 = vector.load %arg6[%c6_388, %c0_389, %c0_390] : memref<8x1x4xf32, #tpu.memory_space<vmem>>, vector<1x1x4xf32>
      %464 = vector.shape_cast %463 : vector<1x1x4xf32> to vector<1x4xf32>
      %465 = vector.broadcast %464 : vector<1x4xf32> to vector<8x4xf32>
      %466 = arith.addf %462, %465 : vector<8x4xf32>
      %c6_391 = arith.constant 6 : index
      %c0_392 = arith.constant 0 : index
      %c0_393 = arith.constant 0 : index
      %467 = vector.load %arg14[%c6_391, %c0_392, %c0_393] : memref<8x8x4xf32, #tpu.memory_space<vmem>>, vector<1x8x4xf32>
      %468 = vector.shape_cast %467 : vector<1x8x4xf32> to vector<8x4xf32>
      %469 = vector.shape_cast %466 : vector<8x4xf32> to vector<1x8x4xf32>
      tpu.vector_store %arg14[%c6_391, %c0_392, %c0_393], %469 {strides = array<i32>} : memref<8x8x4xf32, #tpu.memory_space<vmem>>, vector<1x8x4xf32>,
      %c7_394 = arith.constant 7 : index
      %c0_395 = arith.constant 0 : index
      %c0_396 = arith.constant 0 : index
      %470 = vector.load %arg5[%c7_394, %c0_395, %c0_396] : memref<8x32x4xf32, #tpu.memory_space<vmem>>, vector<1x32x4xf32>
      %471 = vector.shape_cast %470 : vector<1x32x4xf32> to vector<32x4xf32>
      %cst_397 = arith.constant dense<0.000000e+00> : vector<8x4xf32>
      %472 = tpu.matmul %399, %471, %cst_397 {dimension_numbers = #tpu.dot_dimension_numbers<[1], [0], [0], [1], [0, 0, 1, 1], [], []>} : vector<8x32xf32>, vector<32x4xf32>, vector<8x4xf32> -> vector<8x4xf32>
      %c7_398 = arith.constant 7 : index
      %c0_399 = arith.constant 0 : index
      %c0_400 = arith.constant 0 : index
      %473 = vector.load %arg6[%c7_398, %c0_399, %c0_400] : memref<8x1x4xf32, #tpu.memory_space<vmem>>, vector<1x1x4xf32>
      %474 = vector.shape_cast %473 : vector<1x1x4xf32> to vector<1x4xf32>
      %475 = vector.broadcast %474 : vector<1x4xf32> to vector<8x4xf32>
      %476 = arith.addf %472, %475 : vector<8x4xf32>
      %c7_401 = arith.constant 7 : index
      %c0_402 = arith.constant 0 : index
      %c0_403 = arith.constant 0 : index
      %477 = vector.load %arg14[%c7_401, %c0_402, %c0_403] : memref<8x8x4xf32, #tpu.memory_space<vmem>>, vector<1x8x4xf32>
      %478 = vector.shape_cast %477 : vector<1x8x4xf32> to vector<8x4xf32>
      %479 = vector.shape_cast %476 : vector<8x4xf32> to vector<1x8x4xf32>
      tpu.vector_store %arg14[%c7_401, %c0_402, %c0_403], %479 {strides = array<i32>} : memref<8x8x4xf32, #tpu.memory_space<vmem>>, vector<1x8x4xf32>,
    } else {
    }
    %c0 = arith.constant 0 : index
    %c0_1 = arith.constant 0 : index
    %c0_2 = arith.constant 0 : index
    %3 = vector.load %arg4[%c0, %c0_1, %c0_2] : memref<1x8x32xf32, #tpu.memory_space<vmem>>, vector<1x8x32xf32>
    %4 = vector.shape_cast %3 : vector<1x8x32xf32> to vector<8x32xf32>
    %c0_3 = arith.constant 0 : index
    %c0_4 = arith.constant 0 : index
    %c0_5 = arith.constant 0 : index
    %5 = vector.load %arg7[%c0_3, %c0_4, %c0_5] : memref<8x32x4xf32, #tpu.memory_space<vmem>>, vector<1x32x4xf32>
    %6 = vector.shape_cast %5 : vector<1x32x4xf32> to vector<32x4xf32>
    %cst = arith.constant dense<0.000000e+00> : vector<8x4xf32>
    %7 = tpu.matmul %4, %6, %cst {dimension_numbers = #tpu.dot_dimension_numbers<[1], [0], [0], [1], [0, 0, 1, 1], [], []>} : vector<8x32xf32>, vector<32x4xf32>, vector<8x4xf32> -> vector<8x4xf32>
    %c0_6 = arith.constant 0 : index
    %c0_7 = arith.constant 0 : index
    %c0_8 = arith.constant 0 : index
    %8 = vector.load %arg8[%c0_6, %c0_7, %c0_8] : memref<8x1x4xf32, #tpu.memory_space<vmem>>, vector<1x1x4xf32>
    %9 = vector.shape_cast %8 : vector<1x1x4xf32> to vector<1x4xf32>
    %10 = vector.broadcast %9 : vector<1x4xf32> to vector<8x4xf32>
    %11 = arith.addf %7, %10 : vector<8x4xf32>
    %c0_9 = arith.constant 0 : index
    %c0_10 = arith.constant 0 : index
    %c0_11 = arith.constant 0 : index
    %12 = vector.load %arg9[%c0_9, %c0_10, %c0_11] : memref<8x32x4xf32, #tpu.memory_space<vmem>>, vector<1x32x4xf32>
    %13 = vector.shape_cast %12 : vector<1x32x4xf32> to vector<32x4xf32>
    %cst_12 = arith.constant dense<0.000000e+00> : vector<8x4xf32>
    %14 = tpu.matmul %4, %13, %cst_12 {dimension_numbers = #tpu.dot_dimension_numbers<[1], [0], [0], [1], [0, 0, 1, 1], [], []>} : vector<8x32xf32>, vector<32x4xf32>, vector<8x4xf32> -> vector<8x4xf32>
    %c0_13 = arith.constant 0 : index
    %c0_14 = arith.constant 0 : index
    %c0_15 = arith.constant 0 : index
    %15 = vector.load %arg10[%c0_13, %c0_14, %c0_15] : memref<8x1x4xf32, #tpu.memory_space<vmem>>, vector<1x1x4xf32>
    %16 = vector.shape_cast %15 : vector<1x1x4xf32> to vector<1x4xf32>
    %17 = vector.broadcast %16 : vector<1x4xf32> to vector<8x4xf32>
    %18 = arith.addf %14, %17 : vector<8x4xf32>
    %c0_16 = arith.constant 0 : index
    %c0_17 = arith.constant 0 : index
    %c0_18 = arith.constant 0 : index
    %19 = vector.load %arg14[%c0_16, %c0_17, %c0_18] : memref<8x8x4xf32, #tpu.memory_space<vmem>>, vector<1x8x4xf32>
    %20 = vector.shape_cast %19 : vector<1x8x4xf32> to vector<8x4xf32>
    %cst_19 = arith.constant dense<0.000000e+00> : vector<8x8xf32>
    %21 = tpu.matmul %20, %11, %cst_19 {dimension_numbers = #tpu.dot_dimension_numbers<[1], [1], [0], [0], [0, 0, 1, 0], [], []>} : vector<8x4xf32>, vector<8x4xf32>, vector<8x8xf32> -> vector<8x8xf32>
    %c0_20 = arith.constant 0 : index
    %c0_21 = arith.constant 0 : index
    %c0_22 = arith.constant 0 : index
    %22 = vector.load %arg16[%c0_20, %c0_21, %c0_22] : memref<8x8x1xf32, #tpu.memory_space<vmem>>, vector<1x8x1xf32>
    %23 = vector.shape_cast %22 : vector<1x8x1xf32> to vector<8x1xf32>
    %cst_23 = arith.constant dense<0xFF800000> : vector<8xf32>
    %24 = vector.multi_reduction <maximumf>, %21, %cst_23 [1] : vector<8x8xf32> to vector<8xf32>
    %25 = vector.shape_cast %24 : vector<8xf32> to vector<8x1xf32>
    %26 = arith.maximumf %23, %25 : vector<8x1xf32>
    %27 = arith.subf %23, %26 : vector<8x1xf32>
    %28 = math.exp %27 : vector<8x1xf32>
    %29 = vector.broadcast %26 : vector<8x1xf32> to vector<8x8xf32>
    %30 = arith.subf %21, %29 : vector<8x8xf32>
    %31 = math.exp %30 : vector<8x8xf32>
    %c0_24 = arith.constant 0 : index
    %c0_25 = arith.constant 0 : index
    %c0_26 = arith.constant 0 : index
    %32 = vector.load %arg17[%c0_24, %c0_25, %c0_26] : memref<8x8x1xf32, #tpu.memory_space<vmem>>, vector<1x8x1xf32>
    %33 = vector.shape_cast %32 : vector<1x8x1xf32> to vector<8x1xf32>
    %34 = arith.mulf %28, %33 : vector<8x1xf32>
    %cst_27 = arith.constant dense<0.000000e+00> : vector<8xf32>
    %35 = vector.multi_reduction <add>, %31, %cst_27 [1] : vector<8x8xf32> to vector<8xf32>
    %36 = vector.shape_cast %35 : vector<8xf32> to vector<8x1xf32>
    %37 = arith.addf %34, %36 : vector<8x1xf32>
    %c0_28 = arith.constant 0 : index
    %c0_29 = arith.constant 0 : index
    %c0_30 = arith.constant 0 : index
    %38 = vector.load %arg17[%c0_28, %c0_29, %c0_30] : memref<8x8x1xf32, #tpu.memory_space<vmem>>, vector<1x8x1xf32>
    %39 = vector.shape_cast %38 : vector<1x8x1xf32> to vector<8x1xf32>
    %40 = vector.shape_cast %37 : vector<8x1xf32> to vector<1x8x1xf32>
    tpu.vector_store %arg17[%c0_28, %c0_29, %c0_30], %40 {strides = array<i32>} : memref<8x8x1xf32, #tpu.memory_space<vmem>>, vector<1x8x1xf32>,
    %c0_31 = arith.constant 0 : index
    %c0_32 = arith.constant 0 : index
    %c0_33 = arith.constant 0 : index
    %41 = vector.load %arg15[%c0_31, %c0_32, %c0_33] : memref<8x8x4xf32, #tpu.memory_space<vmem>>, vector<1x8x4xf32>
    %42 = vector.shape_cast %41 : vector<1x8x4xf32> to vector<8x4xf32>
    %43 = vector.broadcast %28 : vector<8x1xf32> to vector<8x4xf32>
    %44 = arith.mulf %43, %42 : vector<8x4xf32>
    %cst_34 = arith.constant dense<0.000000e+00> : vector<8x4xf32>
    %45 = tpu.matmul %31, %18, %cst_34 {dimension_numbers = #tpu.dot_dimension_numbers<[1], [0], [0], [1], [0, 0, 1, 1], [], []>} : vector<8x8xf32>, vector<8x4xf32>, vector<8x4xf32> -> vector<8x4xf32>
    %46 = arith.addf %44, %45 : vector<8x4xf32>
    %c0_35 = arith.constant 0 : index
    %c0_36 = arith.constant 0 : index
    %c0_37 = arith.constant 0 : index
    %47 = vector.load %arg15[%c0_35, %c0_36, %c0_37] : memref<8x8x4xf32, #tpu.memory_space<vmem>>, vector<1x8x4xf32>
    %48 = vector.shape_cast %47 : vector<1x8x4xf32> to vector<8x4xf32>
    %49 = vector.shape_cast %46 : vector<8x4xf32> to vector<1x8x4xf32>
    tpu.vector_store %arg15[%c0_35, %c0_36, %c0_37], %49 {strides = array<i32>} : memref<8x8x4xf32, #tpu.memory_space<vmem>>, vector<1x8x4xf32>,
    %c0_38 = arith.constant 0 : index
    %c0_39 = arith.constant 0 : index
    %c0_40 = arith.constant 0 : index
    %50 = vector.load %arg16[%c0_38, %c0_39, %c0_40] : memref<8x8x1xf32, #tpu.memory_space<vmem>>, vector<1x8x1xf32>
    %51 = vector.shape_cast %50 : vector<1x8x1xf32> to vector<8x1xf32>
    %52 = vector.shape_cast %26 : vector<8x1xf32> to vector<1x8x1xf32>
    tpu.vector_store %arg16[%c0_38, %c0_39, %c0_40], %52 {strides = array<i32>} : memref<8x8x1xf32, #tpu.memory_space<vmem>>, vector<1x8x1xf32>,
    %c1 = arith.constant 1 : index
    %c0_41 = arith.constant 0 : index
    %c0_42 = arith.constant 0 : index
    %53 = vector.load %arg7[%c1, %c0_41, %c0_42] : memref<8x32x4xf32, #tpu.memory_space<vmem>>, vector<1x32x4xf32>
    %54 = vector.shape_cast %53 : vector<1x32x4xf32> to vector<32x4xf32>
    %cst_43 = arith.constant dense<0.000000e+00> : vector<8x4xf32>
    %55 = tpu.matmul %4, %54, %cst_43 {dimension_numbers = #tpu.dot_dimension_numbers<[1], [0], [0], [1], [0, 0, 1, 1], [], []>} : vector<8x32xf32>, vector<32x4xf32>, vector<8x4xf32> -> vector<8x4xf32>
    %c1_44 = arith.constant 1 : index
    %c0_45 = arith.constant 0 : index
    %c0_46 = arith.constant 0 : index
    %56 = vector.load %arg8[%c1_44, %c0_45, %c0_46] : memref<8x1x4xf32, #tpu.memory_space<vmem>>, vector<1x1x4xf32>
    %57 = vector.shape_cast %56 : vector<1x1x4xf32> to vector<1x4xf32>
    %58 = vector.broadcast %57 : vector<1x4xf32> to vector<8x4xf32>
    %59 = arith.addf %55, %58 : vector<8x4xf32>
    %c1_47 = arith.constant 1 : index
    %c0_48 = arith.constant 0 : index
    %c0_49 = arith.constant 0 : index
    %60 = vector.load %arg9[%c1_47, %c0_48, %c0_49] : memref<8x32x4xf32, #tpu.memory_space<vmem>>, vector<1x32x4xf32>
    %61 = vector.shape_cast %60 : vector<1x32x4xf32> to vector<32x4xf32>
    %cst_50 = arith.constant dense<0.000000e+00> : vector<8x4xf32>
    %62 = tpu.matmul %4, %61, %cst_50 {dimension_numbers = #tpu.dot_dimension_numbers<[1], [0], [0], [1], [0, 0, 1, 1], [], []>} : vector<8x32xf32>, vector<32x4xf32>, vector<8x4xf32> -> vector<8x4xf32>
    %c1_51 = arith.constant 1 : index
    %c0_52 = arith.constant 0 : index
    %c0_53 = arith.constant 0 : index
    %63 = vector.load %arg10[%c1_51, %c0_52, %c0_53] : memref<8x1x4xf32, #tpu.memory_space<vmem>>, vector<1x1x4xf32>
    %64 = vector.shape_cast %63 : vector<1x1x4xf32> to vector<1x4xf32>
    %65 = vector.broadcast %64 : vector<1x4xf32> to vector<8x4xf32>
    %66 = arith.addf %62, %65 : vector<8x4xf32>
    %c1_54 = arith.constant 1 : index
    %c0_55 = arith.constant 0 : index
    %c0_56 = arith.constant 0 : index
    %67 = vector.load %arg14[%c1_54, %c0_55, %c0_56] : memref<8x8x4xf32, #tpu.memory_space<vmem>>, vector<1x8x4xf32>
    %68 = vector.shape_cast %67 : vector<1x8x4xf32> to vector<8x4xf32>
    %cst_57 = arith.constant dense<0.000000e+00> : vector<8x8xf32>
    %69 = tpu.matmul %68, %59, %cst_57 {dimension_numbers = #tpu.dot_dimension_numbers<[1], [1], [0], [0], [0, 0, 1, 0], [], []>} : vector<8x4xf32>, vector<8x4xf32>, vector<8x8xf32> -> vector<8x8xf32>
    %c1_58 = arith.constant 1 : index
    %c0_59 = arith.constant 0 : index
    %c0_60 = arith.constant 0 : index
    %70 = vector.load %arg16[%c1_58, %c0_59, %c0_60] : memref<8x8x1xf32, #tpu.memory_space<vmem>>, vector<1x8x1xf32>
    %71 = vector.shape_cast %70 : vector<1x8x1xf32> to vector<8x1xf32>
    %cst_61 = arith.constant dense<0xFF800000> : vector<8xf32>
    %72 = vector.multi_reduction <maximumf>, %69, %cst_61 [1] : vector<8x8xf32> to vector<8xf32>
    %73 = vector.shape_cast %72 : vector<8xf32> to vector<8x1xf32>
    %74 = arith.maximumf %71, %73 : vector<8x1xf32>
    %75 = arith.subf %71, %74 : vector<8x1xf32>
    %76 = math.exp %75 : vector<8x1xf32>
    %77 = vector.broadcast %74 : vector<8x1xf32> to vector<8x8xf32>
    %78 = arith.subf %69, %77 : vector<8x8xf32>
    %79 = math.exp %78 : vector<8x8xf32>
    %c1_62 = arith.constant 1 : index
    %c0_63 = arith.constant 0 : index
    %c0_64 = arith.constant 0 : index
    %80 = vector.load %arg17[%c1_62, %c0_63, %c0_64] : memref<8x8x1xf32, #tpu.memory_space<vmem>>, vector<1x8x1xf32>
    %81 = vector.shape_cast %80 : vector<1x8x1xf32> to vector<8x1xf32>
    %82 = arith.mulf %76, %81 : vector<8x1xf32>
    %cst_65 = arith.constant dense<0.000000e+00> : vector<8xf32>
    %83 = vector.multi_reduction <add>, %79, %cst_65 [1] : vector<8x8xf32> to vector<8xf32>
    %84 = vector.shape_cast %83 : vector<8xf32> to vector<8x1xf32>
    %85 = arith.addf %82, %84 : vector<8x1xf32>
    %c1_66 = arith.constant 1 : index
    %c0_67 = arith.constant 0 : index
    %c0_68 = arith.constant 0 : index
    %86 = vector.load %arg17[%c1_66, %c0_67, %c0_68] : memref<8x8x1xf32, #tpu.memory_space<vmem>>, vector<1x8x1xf32>
    %87 = vector.shape_cast %86 : vector<1x8x1xf32> to vector<8x1xf32>
    %88 = vector.shape_cast %85 : vector<8x1xf32> to vector<1x8x1xf32>
    tpu.vector_store %arg17[%c1_66, %c0_67, %c0_68], %88 {strides = array<i32>} : memref<8x8x1xf32, #tpu.memory_space<vmem>>, vector<1x8x1xf32>,
    %c1_69 = arith.constant 1 : index
    %c0_70 = arith.constant 0 : index
    %c0_71 = arith.constant 0 : index
    %89 = vector.load %arg15[%c1_69, %c0_70, %c0_71] : memref<8x8x4xf32, #tpu.memory_space<vmem>>, vector<1x8x4xf32>
    %90 = vector.shape_cast %89 : vector<1x8x4xf32> to vector<8x4xf32>
    %91 = vector.broadcast %76 : vector<8x1xf32> to vector<8x4xf32>
    %92 = arith.mulf %91, %90 : vector<8x4xf32>
    %cst_72 = arith.constant dense<0.000000e+00> : vector<8x4xf32>
    %93 = tpu.matmul %79, %66, %cst_72 {dimension_numbers = #tpu.dot_dimension_numbers<[1], [0], [0], [1], [0, 0, 1, 1], [], []>} : vector<8x8xf32>, vector<8x4xf32>, vector<8x4xf32> -> vector<8x4xf32>
    %94 = arith.addf %92, %93 : vector<8x4xf32>
    %c1_73 = arith.constant 1 : index
    %c0_74 = arith.constant 0 : index
    %c0_75 = arith.constant 0 : index
    %95 = vector.load %arg15[%c1_73, %c0_74, %c0_75] : memref<8x8x4xf32, #tpu.memory_space<vmem>>, vector<1x8x4xf32>
    %96 = vector.shape_cast %95 : vector<1x8x4xf32> to vector<8x4xf32>
    %97 = vector.shape_cast %94 : vector<8x4xf32> to vector<1x8x4xf32>
    tpu.vector_store %arg15[%c1_73, %c0_74, %c0_75], %97 {strides = array<i32>} : memref<8x8x4xf32, #tpu.memory_space<vmem>>, vector<1x8x4xf32>,
    %c1_76 = arith.constant 1 : index
    %c0_77 = arith.constant 0 : index
    %c0_78 = arith.constant 0 : index
    %98 = vector.load %arg16[%c1_76, %c0_77, %c0_78] : memref<8x8x1xf32, #tpu.memory_space<vmem>>, vector<1x8x1xf32>
    %99 = vector.shape_cast %98 : vector<1x8x1xf32> to vector<8x1xf32>
    %100 = vector.shape_cast %74 : vector<8x1xf32> to vector<1x8x1xf32>
    tpu.vector_store %arg16[%c1_76, %c0_77, %c0_78], %100 {strides = array<i32>} : memref<8x8x1xf32, #tpu.memory_space<vmem>>, vector<1x8x1xf32>,
    %c2 = arith.constant 2 : index
    %c0_79 = arith.constant 0 : index
    %c0_80 = arith.constant 0 : index
    %101 = vector.load %arg7[%c2, %c0_79, %c0_80] : memref<8x32x4xf32, #tpu.memory_space<vmem>>, vector<1x32x4xf32>
    %102 = vector.shape_cast %101 : vector<1x32x4xf32> to vector<32x4xf32>
    %cst_81 = arith.constant dense<0.000000e+00> : vector<8x4xf32>
    %103 = tpu.matmul %4, %102, %cst_81 {dimension_numbers = #tpu.dot_dimension_numbers<[1], [0], [0], [1], [0, 0, 1, 1], [], []>} : vector<8x32xf32>, vector<32x4xf32>, vector<8x4xf32> -> vector<8x4xf32>
    %c2_82 = arith.constant 2 : index
    %c0_83 = arith.constant 0 : index
    %c0_84 = arith.constant 0 : index
    %104 = vector.load %arg8[%c2_82, %c0_83, %c0_84] : memref<8x1x4xf32, #tpu.memory_space<vmem>>, vector<1x1x4xf32>
    %105 = vector.shape_cast %104 : vector<1x1x4xf32> to vector<1x4xf32>
    %106 = vector.broadcast %105 : vector<1x4xf32> to vector<8x4xf32>
    %107 = arith.addf %103, %106 : vector<8x4xf32>
    %c2_85 = arith.constant 2 : index
    %c0_86 = arith.constant 0 : index
    %c0_87 = arith.constant 0 : index
    %108 = vector.load %arg9[%c2_85, %c0_86, %c0_87] : memref<8x32x4xf32, #tpu.memory_space<vmem>>, vector<1x32x4xf32>
    %109 = vector.shape_cast %108 : vector<1x32x4xf32> to vector<32x4xf32>
    %cst_88 = arith.constant dense<0.000000e+00> : vector<8x4xf32>
    %110 = tpu.matmul %4, %109, %cst_88 {dimension_numbers = #tpu.dot_dimension_numbers<[1], [0], [0], [1], [0, 0, 1, 1], [], []>} : vector<8x32xf32>, vector<32x4xf32>, vector<8x4xf32> -> vector<8x4xf32>
    %c2_89 = arith.constant 2 : index
    %c0_90 = arith.constant 0 : index
    %c0_91 = arith.constant 0 : index
    %111 = vector.load %arg10[%c2_89, %c0_90, %c0_91] : memref<8x1x4xf32, #tpu.memory_space<vmem>>, vector<1x1x4xf32>
    %112 = vector.shape_cast %111 : vector<1x1x4xf32> to vector<1x4xf32>
    %113 = vector.broadcast %112 : vector<1x4xf32> to vector<8x4xf32>
    %114 = arith.addf %110, %113 : vector<8x4xf32>
    %c2_92 = arith.constant 2 : index
    %c0_93 = arith.constant 0 : index
    %c0_94 = arith.constant 0 : index
    %115 = vector.load %arg14[%c2_92, %c0_93, %c0_94] : memref<8x8x4xf32, #tpu.memory_space<vmem>>, vector<1x8x4xf32>
    %116 = vector.shape_cast %115 : vector<1x8x4xf32> to vector<8x4xf32>
    %cst_95 = arith.constant dense<0.000000e+00> : vector<8x8xf32>
    %117 = tpu.matmul %116, %107, %cst_95 {dimension_numbers = #tpu.dot_dimension_numbers<[1], [1], [0], [0], [0, 0, 1, 0], [], []>} : vector<8x4xf32>, vector<8x4xf32>, vector<8x8xf32> -> vector<8x8xf32>
    %c2_96 = arith.constant 2 : index
    %c0_97 = arith.constant 0 : index
    %c0_98 = arith.constant 0 : index
    %118 = vector.load %arg16[%c2_96, %c0_97, %c0_98] : memref<8x8x1xf32, #tpu.memory_space<vmem>>, vector<1x8x1xf32>
    %119 = vector.shape_cast %118 : vector<1x8x1xf32> to vector<8x1xf32>
    %cst_99 = arith.constant dense<0xFF800000> : vector<8xf32>
    %120 = vector.multi_reduction <maximumf>, %117, %cst_99 [1] : vector<8x8xf32> to vector<8xf32>
    %121 = vector.shape_cast %120 : vector<8xf32> to vector<8x1xf32>
    %122 = arith.maximumf %119, %121 : vector<8x1xf32>
    %123 = arith.subf %119, %122 : vector<8x1xf32>
    %124 = math.exp %123 : vector<8x1xf32>
    %125 = vector.broadcast %122 : vector<8x1xf32> to vector<8x8xf32>
    %126 = arith.subf %117, %125 : vector<8x8xf32>
    %127 = math.exp %126 : vector<8x8xf32>
    %c2_100 = arith.constant 2 : index
    %c0_101 = arith.constant 0 : index
    %c0_102 = arith.constant 0 : index
    %128 = vector.load %arg17[%c2_100, %c0_101, %c0_102] : memref<8x8x1xf32, #tpu.memory_space<vmem>>, vector<1x8x1xf32>
    %129 = vector.shape_cast %128 : vector<1x8x1xf32> to vector<8x1xf32>
    %130 = arith.mulf %124, %129 : vector<8x1xf32>
    %cst_103 = arith.constant dense<0.000000e+00> : vector<8xf32>
    %131 = vector.multi_reduction <add>, %127, %cst_103 [1] : vector<8x8xf32> to vector<8xf32>
    %132 = vector.shape_cast %131 : vector<8xf32> to vector<8x1xf32>
    %133 = arith.addf %130, %132 : vector<8x1xf32>
    %c2_104 = arith.constant 2 : index
    %c0_105 = arith.constant 0 : index
    %c0_106 = arith.constant 0 : index
    %134 = vector.load %arg17[%c2_104, %c0_105, %c0_106] : memref<8x8x1xf32, #tpu.memory_space<vmem>>, vector<1x8x1xf32>
    %135 = vector.shape_cast %134 : vector<1x8x1xf32> to vector<8x1xf32>
    %136 = vector.shape_cast %133 : vector<8x1xf32> to vector<1x8x1xf32>
    tpu.vector_store %arg17[%c2_104, %c0_105, %c0_106], %136 {strides = array<i32>} : memref<8x8x1xf32, #tpu.memory_space<vmem>>, vector<1x8x1xf32>,
    %c2_107 = arith.constant 2 : index
    %c0_108 = arith.constant 0 : index
    %c0_109 = arith.constant 0 : index
    %137 = vector.load %arg15[%c2_107, %c0_108, %c0_109] : memref<8x8x4xf32, #tpu.memory_space<vmem>>, vector<1x8x4xf32>
    %138 = vector.shape_cast %137 : vector<1x8x4xf32> to vector<8x4xf32>
    %139 = vector.broadcast %124 : vector<8x1xf32> to vector<8x4xf32>
    %140 = arith.mulf %139, %138 : vector<8x4xf32>
    %cst_110 = arith.constant dense<0.000000e+00> : vector<8x4xf32>
    %141 = tpu.matmul %127, %114, %cst_110 {dimension_numbers = #tpu.dot_dimension_numbers<[1], [0], [0], [1], [0, 0, 1, 1], [], []>} : vector<8x8xf32>, vector<8x4xf32>, vector<8x4xf32> -> vector<8x4xf32>
    %142 = arith.addf %140, %141 : vector<8x4xf32>
    %c2_111 = arith.constant 2 : index
    %c0_112 = arith.constant 0 : index
    %c0_113 = arith.constant 0 : index
    %143 = vector.load %arg15[%c2_111, %c0_112, %c0_113] : memref<8x8x4xf32, #tpu.memory_space<vmem>>, vector<1x8x4xf32>
    %144 = vector.shape_cast %143 : vector<1x8x4xf32> to vector<8x4xf32>
    %145 = vector.shape_cast %142 : vector<8x4xf32> to vector<1x8x4xf32>
    tpu.vector_store %arg15[%c2_111, %c0_112, %c0_113], %145 {strides = array<i32>} : memref<8x8x4xf32, #tpu.memory_space<vmem>>, vector<1x8x4xf32>,
    %c2_114 = arith.constant 2 : index
    %c0_115 = arith.constant 0 : index
    %c0_116 = arith.constant 0 : index
    %146 = vector.load %arg16[%c2_114, %c0_115, %c0_116] : memref<8x8x1xf32, #tpu.memory_space<vmem>>, vector<1x8x1xf32>
    %147 = vector.shape_cast %146 : vector<1x8x1xf32> to vector<8x1xf32>
    %148 = vector.shape_cast %122 : vector<8x1xf32> to vector<1x8x1xf32>
    tpu.vector_store %arg16[%c2_114, %c0_115, %c0_116], %148 {strides = array<i32>} : memref<8x8x1xf32, #tpu.memory_space<vmem>>, vector<1x8x1xf32>,
    %c3 = arith.constant 3 : index
    %c0_117 = arith.constant 0 : index
    %c0_118 = arith.constant 0 : index
    %149 = vector.load %arg7[%c3, %c0_117, %c0_118] : memref<8x32x4xf32, #tpu.memory_space<vmem>>, vector<1x32x4xf32>
    %150 = vector.shape_cast %149 : vector<1x32x4xf32> to vector<32x4xf32>
    %cst_119 = arith.constant dense<0.000000e+00> : vector<8x4xf32>
    %151 = tpu.matmul %4, %150, %cst_119 {dimension_numbers = #tpu.dot_dimension_numbers<[1], [0], [0], [1], [0, 0, 1, 1], [], []>} : vector<8x32xf32>, vector<32x4xf32>, vector<8x4xf32> -> vector<8x4xf32>
    %c3_120 = arith.constant 3 : index
    %c0_121 = arith.constant 0 : index
    %c0_122 = arith.constant 0 : index
    %152 = vector.load %arg8[%c3_120, %c0_121, %c0_122] : memref<8x1x4xf32, #tpu.memory_space<vmem>>, vector<1x1x4xf32>
    %153 = vector.shape_cast %152 : vector<1x1x4xf32> to vector<1x4xf32>
    %154 = vector.broadcast %153 : vector<1x4xf32> to vector<8x4xf32>
    %155 = arith.addf %151, %154 : vector<8x4xf32>
    %c3_123 = arith.constant 3 : index
    %c0_124 = arith.constant 0 : index
    %c0_125 = arith.constant 0 : index
    %156 = vector.load %arg9[%c3_123, %c0_124, %c0_125] : memref<8x32x4xf32, #tpu.memory_space<vmem>>, vector<1x32x4xf32>
    %157 = vector.shape_cast %156 : vector<1x32x4xf32> to vector<32x4xf32>
    %cst_126 = arith.constant dense<0.000000e+00> : vector<8x4xf32>
    %158 = tpu.matmul %4, %157, %cst_126 {dimension_numbers = #tpu.dot_dimension_numbers<[1], [0], [0], [1], [0, 0, 1, 1], [], []>} : vector<8x32xf32>, vector<32x4xf32>, vector<8x4xf32> -> vector<8x4xf32>
    %c3_127 = arith.constant 3 : index
    %c0_128 = arith.constant 0 : index
    %c0_129 = arith.constant 0 : index
    %159 = vector.load %arg10[%c3_127, %c0_128, %c0_129] : memref<8x1x4xf32, #tpu.memory_space<vmem>>, vector<1x1x4xf32>
    %160 = vector.shape_cast %159 : vector<1x1x4xf32> to vector<1x4xf32>
    %161 = vector.broadcast %160 : vector<1x4xf32> to vector<8x4xf32>
    %162 = arith.addf %158, %161 : vector<8x4xf32>
    %c3_130 = arith.constant 3 : index
    %c0_131 = arith.constant 0 : index
    %c0_132 = arith.constant 0 : index
    %163 = vector.load %arg14[%c3_130, %c0_131, %c0_132] : memref<8x8x4xf32, #tpu.memory_space<vmem>>, vector<1x8x4xf32>
    %164 = vector.shape_cast %163 : vector<1x8x4xf32> to vector<8x4xf32>
    %cst_133 = arith.constant dense<0.000000e+00> : vector<8x8xf32>
    %165 = tpu.matmul %164, %155, %cst_133 {dimension_numbers = #tpu.dot_dimension_numbers<[1], [1], [0], [0], [0, 0, 1, 0], [], []>} : vector<8x4xf32>, vector<8x4xf32>, vector<8x8xf32> -> vector<8x8xf32>
    %c3_134 = arith.constant 3 : index
    %c0_135 = arith.constant 0 : index
    %c0_136 = arith.constant 0 : index
    %166 = vector.load %arg16[%c3_134, %c0_135, %c0_136] : memref<8x8x1xf32, #tpu.memory_space<vmem>>, vector<1x8x1xf32>
    %167 = vector.shape_cast %166 : vector<1x8x1xf32> to vector<8x1xf32>
    %cst_137 = arith.constant dense<0xFF800000> : vector<8xf32>
    %168 = vector.multi_reduction <maximumf>, %165, %cst_137 [1] : vector<8x8xf32> to vector<8xf32>
    %169 = vector.shape_cast %168 : vector<8xf32> to vector<8x1xf32>
    %170 = arith.maximumf %167, %169 : vector<8x1xf32>
    %171 = arith.subf %167, %170 : vector<8x1xf32>
    %172 = math.exp %171 : vector<8x1xf32>
    %173 = vector.broadcast %170 : vector<8x1xf32> to vector<8x8xf32>
    %174 = arith.subf %165, %173 : vector<8x8xf32>
    %175 = math.exp %174 : vector<8x8xf32>
    %c3_138 = arith.constant 3 : index
    %c0_139 = arith.constant 0 : index
    %c0_140 = arith.constant 0 : index
    %176 = vector.load %arg17[%c3_138, %c0_139, %c0_140] : memref<8x8x1xf32, #tpu.memory_space<vmem>>, vector<1x8x1xf32>
    %177 = vector.shape_cast %176 : vector<1x8x1xf32> to vector<8x1xf32>
    %178 = arith.mulf %172, %177 : vector<8x1xf32>
    %cst_141 = arith.constant dense<0.000000e+00> : vector<8xf32>
    %179 = vector.multi_reduction <add>, %175, %cst_141 [1] : vector<8x8xf32> to vector<8xf32>
    %180 = vector.shape_cast %179 : vector<8xf32> to vector<8x1xf32>
    %181 = arith.addf %178, %180 : vector<8x1xf32>
    %c3_142 = arith.constant 3 : index
    %c0_143 = arith.constant 0 : index
    %c0_144 = arith.constant 0 : index
    %182 = vector.load %arg17[%c3_142, %c0_143, %c0_144] : memref<8x8x1xf32, #tpu.memory_space<vmem>>, vector<1x8x1xf32>
    %183 = vector.shape_cast %182 : vector<1x8x1xf32> to vector<8x1xf32>
    %184 = vector.shape_cast %181 : vector<8x1xf32> to vector<1x8x1xf32>
    tpu.vector_store %arg17[%c3_142, %c0_143, %c0_144], %184 {strides = array<i32>} : memref<8x8x1xf32, #tpu.memory_space<vmem>>, vector<1x8x1xf32>,
    %c3_145 = arith.constant 3 : index
    %c0_146 = arith.constant 0 : index
    %c0_147 = arith.constant 0 : index
    %185 = vector.load %arg15[%c3_145, %c0_146, %c0_147] : memref<8x8x4xf32, #tpu.memory_space<vmem>>, vector<1x8x4xf32>
    %186 = vector.shape_cast %185 : vector<1x8x4xf32> to vector<8x4xf32>
    %187 = vector.broadcast %172 : vector<8x1xf32> to vector<8x4xf32>
    %188 = arith.mulf %187, %186 : vector<8x4xf32>
    %cst_148 = arith.constant dense<0.000000e+00> : vector<8x4xf32>
    %189 = tpu.matmul %175, %162, %cst_148 {dimension_numbers = #tpu.dot_dimension_numbers<[1], [0], [0], [1], [0, 0, 1, 1], [], []>} : vector<8x8xf32>, vector<8x4xf32>, vector<8x4xf32> -> vector<8x4xf32>
    %190 = arith.addf %188, %189 : vector<8x4xf32>
    %c3_149 = arith.constant 3 : index
    %c0_150 = arith.constant 0 : index
    %c0_151 = arith.constant 0 : index
    %191 = vector.load %arg15[%c3_149, %c0_150, %c0_151] : memref<8x8x4xf32, #tpu.memory_space<vmem>>, vector<1x8x4xf32>
    %192 = vector.shape_cast %191 : vector<1x8x4xf32> to vector<8x4xf32>
    %193 = vector.shape_cast %190 : vector<8x4xf32> to vector<1x8x4xf32>
    tpu.vector_store %arg15[%c3_149, %c0_150, %c0_151], %193 {strides = array<i32>} : memref<8x8x4xf32, #tpu.memory_space<vmem>>, vector<1x8x4xf32>,
    %c3_152 = arith.constant 3 : index
    %c0_153 = arith.constant 0 : index
    %c0_154 = arith.constant 0 : index
    %194 = vector.load %arg16[%c3_152, %c0_153, %c0_154] : memref<8x8x1xf32, #tpu.memory_space<vmem>>, vector<1x8x1xf32>
    %195 = vector.shape_cast %194 : vector<1x8x1xf32> to vector<8x1xf32>
    %196 = vector.shape_cast %170 : vector<8x1xf32> to vector<1x8x1xf32>
    tpu.vector_store %arg16[%c3_152, %c0_153, %c0_154], %196 {strides = array<i32>} : memref<8x8x1xf32, #tpu.memory_space<vmem>>, vector<1x8x1xf32>,
    %c4 = arith.constant 4 : index
    %c0_155 = arith.constant 0 : index
    %c0_156 = arith.constant 0 : index
    %197 = vector.load %arg7[%c4, %c0_155, %c0_156] : memref<8x32x4xf32, #tpu.memory_space<vmem>>, vector<1x32x4xf32>
    %198 = vector.shape_cast %197 : vector<1x32x4xf32> to vector<32x4xf32>
    %cst_157 = arith.constant dense<0.000000e+00> : vector<8x4xf32>
    %199 = tpu.matmul %4, %198, %cst_157 {dimension_numbers = #tpu.dot_dimension_numbers<[1], [0], [0], [1], [0, 0, 1, 1], [], []>} : vector<8x32xf32>, vector<32x4xf32>, vector<8x4xf32> -> vector<8x4xf32>
    %c4_158 = arith.constant 4 : index
    %c0_159 = arith.constant 0 : index
    %c0_160 = arith.constant 0 : index
    %200 = vector.load %arg8[%c4_158, %c0_159, %c0_160] : memref<8x1x4xf32, #tpu.memory_space<vmem>>, vector<1x1x4xf32>
    %201 = vector.shape_cast %200 : vector<1x1x4xf32> to vector<1x4xf32>
    %202 = vector.broadcast %201 : vector<1x4xf32> to vector<8x4xf32>
    %203 = arith.addf %199, %202 : vector<8x4xf32>
    %c4_161 = arith.constant 4 : index
    %c0_162 = arith.constant 0 : index
    %c0_163 = arith.constant 0 : index
    %204 = vector.load %arg9[%c4_161, %c0_162, %c0_163] : memref<8x32x4xf32, #tpu.memory_space<vmem>>, vector<1x32x4xf32>
    %205 = vector.shape_cast %204 : vector<1x32x4xf32> to vector<32x4xf32>
    %cst_164 = arith.constant dense<0.000000e+00> : vector<8x4xf32>
    %206 = tpu.matmul %4, %205, %cst_164 {dimension_numbers = #tpu.dot_dimension_numbers<[1], [0], [0], [1], [0, 0, 1, 1], [], []>} : vector<8x32xf32>, vector<32x4xf32>, vector<8x4xf32> -> vector<8x4xf32>
    %c4_165 = arith.constant 4 : index
    %c0_166 = arith.constant 0 : index
    %c0_167 = arith.constant 0 : index
    %207 = vector.load %arg10[%c4_165, %c0_166, %c0_167] : memref<8x1x4xf32, #tpu.memory_space<vmem>>, vector<1x1x4xf32>
    %208 = vector.shape_cast %207 : vector<1x1x4xf32> to vector<1x4xf32>
    %209 = vector.broadcast %208 : vector<1x4xf32> to vector<8x4xf32>
    %210 = arith.addf %206, %209 : vector<8x4xf32>
    %c4_168 = arith.constant 4 : index
    %c0_169 = arith.constant 0 : index
    %c0_170 = arith.constant 0 : index
    %211 = vector.load %arg14[%c4_168, %c0_169, %c0_170] : memref<8x8x4xf32, #tpu.memory_space<vmem>>, vector<1x8x4xf32>
    %212 = vector.shape_cast %211 : vector<1x8x4xf32> to vector<8x4xf32>
    %cst_171 = arith.constant dense<0.000000e+00> : vector<8x8xf32>
    %213 = tpu.matmul %212, %203, %cst_171 {dimension_numbers = #tpu.dot_dimension_numbers<[1], [1], [0], [0], [0, 0, 1, 0], [], []>} : vector<8x4xf32>, vector<8x4xf32>, vector<8x8xf32> -> vector<8x8xf32>
    %c4_172 = arith.constant 4 : index
    %c0_173 = arith.constant 0 : index
    %c0_174 = arith.constant 0 : index
    %214 = vector.load %arg16[%c4_172, %c0_173, %c0_174] : memref<8x8x1xf32, #tpu.memory_space<vmem>>, vector<1x8x1xf32>
    %215 = vector.shape_cast %214 : vector<1x8x1xf32> to vector<8x1xf32>
    %cst_175 = arith.constant dense<0xFF800000> : vector<8xf32>
    %216 = vector.multi_reduction <maximumf>, %213, %cst_175 [1] : vector<8x8xf32> to vector<8xf32>
    %217 = vector.shape_cast %216 : vector<8xf32> to vector<8x1xf32>
    %218 = arith.maximumf %215, %217 : vector<8x1xf32>
    %219 = arith.subf %215, %218 : vector<8x1xf32>
    %220 = math.exp %219 : vector<8x1xf32>
    %221 = vector.broadcast %218 : vector<8x1xf32> to vector<8x8xf32>
    %222 = arith.subf %213, %221 : vector<8x8xf32>
    %223 = math.exp %222 : vector<8x8xf32>
    %c4_176 = arith.constant 4 : index
    %c0_177 = arith.constant 0 : index
    %c0_178 = arith.constant 0 : index
    %224 = vector.load %arg17[%c4_176, %c0_177, %c0_178] : memref<8x8x1xf32, #tpu.memory_space<vmem>>, vector<1x8x1xf32>
    %225 = vector.shape_cast %224 : vector<1x8x1xf32> to vector<8x1xf32>
    %226 = arith.mulf %220, %225 : vector<8x1xf32>
    %cst_179 = arith.constant dense<0.000000e+00> : vector<8xf32>
    %227 = vector.multi_reduction <add>, %223, %cst_179 [1] : vector<8x8xf32> to vector<8xf32>
    %228 = vector.shape_cast %227 : vector<8xf32> to vector<8x1xf32>
    %229 = arith.addf %226, %228 : vector<8x1xf32>
    %c4_180 = arith.constant 4 : index
    %c0_181 = arith.constant 0 : index
    %c0_182 = arith.constant 0 : index
    %230 = vector.load %arg17[%c4_180, %c0_181, %c0_182] : memref<8x8x1xf32, #tpu.memory_space<vmem>>, vector<1x8x1xf32>
    %231 = vector.shape_cast %230 : vector<1x8x1xf32> to vector<8x1xf32>
    %232 = vector.shape_cast %229 : vector<8x1xf32> to vector<1x8x1xf32>
    tpu.vector_store %arg17[%c4_180, %c0_181, %c0_182], %232 {strides = array<i32>} : memref<8x8x1xf32, #tpu.memory_space<vmem>>, vector<1x8x1xf32>,
    %c4_183 = arith.constant 4 : index
    %c0_184 = arith.constant 0 : index
    %c0_185 = arith.constant 0 : index
    %233 = vector.load %arg15[%c4_183, %c0_184, %c0_185] : memref<8x8x4xf32, #tpu.memory_space<vmem>>, vector<1x8x4xf32>
    %234 = vector.shape_cast %233 : vector<1x8x4xf32> to vector<8x4xf32>
    %235 = vector.broadcast %220 : vector<8x1xf32> to vector<8x4xf32>
    %236 = arith.mulf %235, %234 : vector<8x4xf32>
    %cst_186 = arith.constant dense<0.000000e+00> : vector<8x4xf32>
    %237 = tpu.matmul %223, %210, %cst_186 {dimension_numbers = #tpu.dot_dimension_numbers<[1], [0], [0], [1], [0, 0, 1, 1], [], []>} : vector<8x8xf32>, vector<8x4xf32>, vector<8x4xf32> -> vector<8x4xf32>
    %238 = arith.addf %236, %237 : vector<8x4xf32>
    %c4_187 = arith.constant 4 : index
    %c0_188 = arith.constant 0 : index
    %c0_189 = arith.constant 0 : index
    %239 = vector.load %arg15[%c4_187, %c0_188, %c0_189] : memref<8x8x4xf32, #tpu.memory_space<vmem>>, vector<1x8x4xf32>
    %240 = vector.shape_cast %239 : vector<1x8x4xf32> to vector<8x4xf32>
    %241 = vector.shape_cast %238 : vector<8x4xf32> to vector<1x8x4xf32>
    tpu.vector_store %arg15[%c4_187, %c0_188, %c0_189], %241 {strides = array<i32>} : memref<8x8x4xf32, #tpu.memory_space<vmem>>, vector<1x8x4xf32>,
    %c4_190 = arith.constant 4 : index
    %c0_191 = arith.constant 0 : index
    %c0_192 = arith.constant 0 : index
    %242 = vector.load %arg16[%c4_190, %c0_191, %c0_192] : memref<8x8x1xf32, #tpu.memory_space<vmem>>, vector<1x8x1xf32>
    %243 = vector.shape_cast %242 : vector<1x8x1xf32> to vector<8x1xf32>
    %244 = vector.shape_cast %218 : vector<8x1xf32> to vector<1x8x1xf32>
    tpu.vector_store %arg16[%c4_190, %c0_191, %c0_192], %244 {strides = array<i32>} : memref<8x8x1xf32, #tpu.memory_space<vmem>>, vector<1x8x1xf32>,
    %c5 = arith.constant 5 : index
    %c0_193 = arith.constant 0 : index
    %c0_194 = arith.constant 0 : index
    %245 = vector.load %arg7[%c5, %c0_193, %c0_194] : memref<8x32x4xf32, #tpu.memory_space<vmem>>, vector<1x32x4xf32>
    %246 = vector.shape_cast %245 : vector<1x32x4xf32> to vector<32x4xf32>
    %cst_195 = arith.constant dense<0.000000e+00> : vector<8x4xf32>
    %247 = tpu.matmul %4, %246, %cst_195 {dimension_numbers = #tpu.dot_dimension_numbers<[1], [0], [0], [1], [0, 0, 1, 1], [], []>} : vector<8x32xf32>, vector<32x4xf32>, vector<8x4xf32> -> vector<8x4xf32>
    %c5_196 = arith.constant 5 : index
    %c0_197 = arith.constant 0 : index
    %c0_198 = arith.constant 0 : index
    %248 = vector.load %arg8[%c5_196, %c0_197, %c0_198] : memref<8x1x4xf32, #tpu.memory_space<vmem>>, vector<1x1x4xf32>
    %249 = vector.shape_cast %248 : vector<1x1x4xf32> to vector<1x4xf32>
    %250 = vector.broadcast %249 : vector<1x4xf32> to vector<8x4xf32>
    %251 = arith.addf %247, %250 : vector<8x4xf32>
    %c5_199 = arith.constant 5 : index
    %c0_200 = arith.constant 0 : index
    %c0_201 = arith.constant 0 : index
    %252 = vector.load %arg9[%c5_199, %c0_200, %c0_201] : memref<8x32x4xf32, #tpu.memory_space<vmem>>, vector<1x32x4xf32>
    %253 = vector.shape_cast %252 : vector<1x32x4xf32> to vector<32x4xf32>
    %cst_202 = arith.constant dense<0.000000e+00> : vector<8x4xf32>
    %254 = tpu.matmul %4, %253, %cst_202 {dimension_numbers = #tpu.dot_dimension_numbers<[1], [0], [0], [1], [0, 0, 1, 1], [], []>} : vector<8x32xf32>, vector<32x4xf32>, vector<8x4xf32> -> vector<8x4xf32>
    %c5_203 = arith.constant 5 : index
    %c0_204 = arith.constant 0 : index
    %c0_205 = arith.constant 0 : index
    %255 = vector.load %arg10[%c5_203, %c0_204, %c0_205] : memref<8x1x4xf32, #tpu.memory_space<vmem>>, vector<1x1x4xf32>
    %256 = vector.shape_cast %255 : vector<1x1x4xf32> to vector<1x4xf32>
    %257 = vector.broadcast %256 : vector<1x4xf32> to vector<8x4xf32>
    %258 = arith.addf %254, %257 : vector<8x4xf32>
    %c5_206 = arith.constant 5 : index
    %c0_207 = arith.constant 0 : index
    %c0_208 = arith.constant 0 : index
    %259 = vector.load %arg14[%c5_206, %c0_207, %c0_208] : memref<8x8x4xf32, #tpu.memory_space<vmem>>, vector<1x8x4xf32>
    %260 = vector.shape_cast %259 : vector<1x8x4xf32> to vector<8x4xf32>
    %cst_209 = arith.constant dense<0.000000e+00> : vector<8x8xf32>
    %261 = tpu.matmul %260, %251, %cst_209 {dimension_numbers = #tpu.dot_dimension_numbers<[1], [1], [0], [0], [0, 0, 1, 0], [], []>} : vector<8x4xf32>, vector<8x4xf32>, vector<8x8xf32> -> vector<8x8xf32>
    %c5_210 = arith.constant 5 : index
    %c0_211 = arith.constant 0 : index
    %c0_212 = arith.constant 0 : index
    %262 = vector.load %arg16[%c5_210, %c0_211, %c0_212] : memref<8x8x1xf32, #tpu.memory_space<vmem>>, vector<1x8x1xf32>
    %263 = vector.shape_cast %262 : vector<1x8x1xf32> to vector<8x1xf32>
    %cst_213 = arith.constant dense<0xFF800000> : vector<8xf32>
    %264 = vector.multi_reduction <maximumf>, %261, %cst_213 [1] : vector<8x8xf32> to vector<8xf32>
    %265 = vector.shape_cast %264 : vector<8xf32> to vector<8x1xf32>
    %266 = arith.maximumf %263, %265 : vector<8x1xf32>
    %267 = arith.subf %263, %266 : vector<8x1xf32>
    %268 = math.exp %267 : vector<8x1xf32>
    %269 = vector.broadcast %266 : vector<8x1xf32> to vector<8x8xf32>
    %270 = arith.subf %261, %269 : vector<8x8xf32>
    %271 = math.exp %270 : vector<8x8xf32>
    %c5_214 = arith.constant 5 : index
    %c0_215 = arith.constant 0 : index
    %c0_216 = arith.constant 0 : index
    %272 = vector.load %arg17[%c5_214, %c0_215, %c0_216] : memref<8x8x1xf32, #tpu.memory_space<vmem>>, vector<1x8x1xf32>
    %273 = vector.shape_cast %272 : vector<1x8x1xf32> to vector<8x1xf32>
    %274 = arith.mulf %268, %273 : vector<8x1xf32>
    %cst_217 = arith.constant dense<0.000000e+00> : vector<8xf32>
    %275 = vector.multi_reduction <add>, %271, %cst_217 [1] : vector<8x8xf32> to vector<8xf32>
    %276 = vector.shape_cast %275 : vector<8xf32> to vector<8x1xf32>
    %277 = arith.addf %274, %276 : vector<8x1xf32>
    %c5_218 = arith.constant 5 : index
    %c0_219 = arith.constant 0 : index
    %c0_220 = arith.constant 0 : index
    %278 = vector.load %arg17[%c5_218, %c0_219, %c0_220] : memref<8x8x1xf32, #tpu.memory_space<vmem>>, vector<1x8x1xf32>
    %279 = vector.shape_cast %278 : vector<1x8x1xf32> to vector<8x1xf32>
    %280 = vector.shape_cast %277 : vector<8x1xf32> to vector<1x8x1xf32>
    tpu.vector_store %arg17[%c5_218, %c0_219, %c0_220], %280 {strides = array<i32>} : memref<8x8x1xf32, #tpu.memory_space<vmem>>, vector<1x8x1xf32>,
    %c5_221 = arith.constant 5 : index
    %c0_222 = arith.constant 0 : index
    %c0_223 = arith.constant 0 : index
    %281 = vector.load %arg15[%c5_221, %c0_222, %c0_223] : memref<8x8x4xf32, #tpu.memory_space<vmem>>, vector<1x8x4xf32>
    %282 = vector.shape_cast %281 : vector<1x8x4xf32> to vector<8x4xf32>
    %283 = vector.broadcast %268 : vector<8x1xf32> to vector<8x4xf32>
    %284 = arith.mulf %283, %282 : vector<8x4xf32>
    %cst_224 = arith.constant dense<0.000000e+00> : vector<8x4xf32>
    %285 = tpu.matmul %271, %258, %cst_224 {dimension_numbers = #tpu.dot_dimension_numbers<[1], [0], [0], [1], [0, 0, 1, 1], [], []>} : vector<8x8xf32>, vector<8x4xf32>, vector<8x4xf32> -> vector<8x4xf32>
    %286 = arith.addf %284, %285 : vector<8x4xf32>
    %c5_225 = arith.constant 5 : index
    %c0_226 = arith.constant 0 : index
    %c0_227 = arith.constant 0 : index
    %287 = vector.load %arg15[%c5_225, %c0_226, %c0_227] : memref<8x8x4xf32, #tpu.memory_space<vmem>>, vector<1x8x4xf32>
    %288 = vector.shape_cast %287 : vector<1x8x4xf32> to vector<8x4xf32>
    %289 = vector.shape_cast %286 : vector<8x4xf32> to vector<1x8x4xf32>
    tpu.vector_store %arg15[%c5_225, %c0_226, %c0_227], %289 {strides = array<i32>} : memref<8x8x4xf32, #tpu.memory_space<vmem>>, vector<1x8x4xf32>,
    %c5_228 = arith.constant 5 : index
    %c0_229 = arith.constant 0 : index
    %c0_230 = arith.constant 0 : index
    %290 = vector.load %arg16[%c5_228, %c0_229, %c0_230] : memref<8x8x1xf32, #tpu.memory_space<vmem>>, vector<1x8x1xf32>
    %291 = vector.shape_cast %290 : vector<1x8x1xf32> to vector<8x1xf32>
    %292 = vector.shape_cast %266 : vector<8x1xf32> to vector<1x8x1xf32>
    tpu.vector_store %arg16[%c5_228, %c0_229, %c0_230], %292 {strides = array<i32>} : memref<8x8x1xf32, #tpu.memory_space<vmem>>, vector<1x8x1xf32>,
    %c6 = arith.constant 6 : index
    %c0_231 = arith.constant 0 : index
    %c0_232 = arith.constant 0 : index
    %293 = vector.load %arg7[%c6, %c0_231, %c0_232] : memref<8x32x4xf32, #tpu.memory_space<vmem>>, vector<1x32x4xf32>
    %294 = vector.shape_cast %293 : vector<1x32x4xf32> to vector<32x4xf32>
    %cst_233 = arith.constant dense<0.000000e+00> : vector<8x4xf32>
    %295 = tpu.matmul %4, %294, %cst_233 {dimension_numbers = #tpu.dot_dimension_numbers<[1], [0], [0], [1], [0, 0, 1, 1], [], []>} : vector<8x32xf32>, vector<32x4xf32>, vector<8x4xf32> -> vector<8x4xf32>
    %c6_234 = arith.constant 6 : index
    %c0_235 = arith.constant 0 : index
    %c0_236 = arith.constant 0 : index
    %296 = vector.load %arg8[%c6_234, %c0_235, %c0_236] : memref<8x1x4xf32, #tpu.memory_space<vmem>>, vector<1x1x4xf32>
    %297 = vector.shape_cast %296 : vector<1x1x4xf32> to vector<1x4xf32>
    %298 = vector.broadcast %297 : vector<1x4xf32> to vector<8x4xf32>
    %299 = arith.addf %295, %298 : vector<8x4xf32>
    %c6_237 = arith.constant 6 : index
    %c0_238 = arith.constant 0 : index
    %c0_239 = arith.constant 0 : index
    %300 = vector.load %arg9[%c6_237, %c0_238, %c0_239] : memref<8x32x4xf32, #tpu.memory_space<vmem>>, vector<1x32x4xf32>
    %301 = vector.shape_cast %300 : vector<1x32x4xf32> to vector<32x4xf32>
    %cst_240 = arith.constant dense<0.000000e+00> : vector<8x4xf32>
    %302 = tpu.matmul %4, %301, %cst_240 {dimension_numbers = #tpu.dot_dimension_numbers<[1], [0], [0], [1], [0, 0, 1, 1], [], []>} : vector<8x32xf32>, vector<32x4xf32>, vector<8x4xf32> -> vector<8x4xf32>
    %c6_241 = arith.constant 6 : index
    %c0_242 = arith.constant 0 : index
    %c0_243 = arith.constant 0 : index
    %303 = vector.load %arg10[%c6_241, %c0_242, %c0_243] : memref<8x1x4xf32, #tpu.memory_space<vmem>>, vector<1x1x4xf32>
    %304 = vector.shape_cast %303 : vector<1x1x4xf32> to vector<1x4xf32>
    %305 = vector.broadcast %304 : vector<1x4xf32> to vector<8x4xf32>
    %306 = arith.addf %302, %305 : vector<8x4xf32>
    %c6_244 = arith.constant 6 : index
    %c0_245 = arith.constant 0 : index
    %c0_246 = arith.constant 0 : index
    %307 = vector.load %arg14[%c6_244, %c0_245, %c0_246] : memref<8x8x4xf32, #tpu.memory_space<vmem>>, vector<1x8x4xf32>
    %308 = vector.shape_cast %307 : vector<1x8x4xf32> to vector<8x4xf32>
    %cst_247 = arith.constant dense<0.000000e+00> : vector<8x8xf32>
    %309 = tpu.matmul %308, %299, %cst_247 {dimension_numbers = #tpu.dot_dimension_numbers<[1], [1], [0], [0], [0, 0, 1, 0], [], []>} : vector<8x4xf32>, vector<8x4xf32>, vector<8x8xf32> -> vector<8x8xf32>
    %c6_248 = arith.constant 6 : index
    %c0_249 = arith.constant 0 : index
    %c0_250 = arith.constant 0 : index
    %310 = vector.load %arg16[%c6_248, %c0_249, %c0_250] : memref<8x8x1xf32, #tpu.memory_space<vmem>>, vector<1x8x1xf32>
    %311 = vector.shape_cast %310 : vector<1x8x1xf32> to vector<8x1xf32>
    %cst_251 = arith.constant dense<0xFF800000> : vector<8xf32>
    %312 = vector.multi_reduction <maximumf>, %309, %cst_251 [1] : vector<8x8xf32> to vector<8xf32>
    %313 = vector.shape_cast %312 : vector<8xf32> to vector<8x1xf32>
    %314 = arith.maximumf %311, %313 : vector<8x1xf32>
    %315 = arith.subf %311, %314 : vector<8x1xf32>
    %316 = math.exp %315 : vector<8x1xf32>
    %317 = vector.broadcast %314 : vector<8x1xf32> to vector<8x8xf32>
    %318 = arith.subf %309, %317 : vector<8x8xf32>
    %319 = math.exp %318 : vector<8x8xf32>
    %c6_252 = arith.constant 6 : index
    %c0_253 = arith.constant 0 : index
    %c0_254 = arith.constant 0 : index
    %320 = vector.load %arg17[%c6_252, %c0_253, %c0_254] : memref<8x8x1xf32, #tpu.memory_space<vmem>>, vector<1x8x1xf32>
    %321 = vector.shape_cast %320 : vector<1x8x1xf32> to vector<8x1xf32>
    %322 = arith.mulf %316, %321 : vector<8x1xf32>
    %cst_255 = arith.constant dense<0.000000e+00> : vector<8xf32>
    %323 = vector.multi_reduction <add>, %319, %cst_255 [1] : vector<8x8xf32> to vector<8xf32>
    %324 = vector.shape_cast %323 : vector<8xf32> to vector<8x1xf32>
    %325 = arith.addf %322, %324 : vector<8x1xf32>
    %c6_256 = arith.constant 6 : index
    %c0_257 = arith.constant 0 : index
    %c0_258 = arith.constant 0 : index
    %326 = vector.load %arg17[%c6_256, %c0_257, %c0_258] : memref<8x8x1xf32, #tpu.memory_space<vmem>>, vector<1x8x1xf32>
    %327 = vector.shape_cast %326 : vector<1x8x1xf32> to vector<8x1xf32>
    %328 = vector.shape_cast %325 : vector<8x1xf32> to vector<1x8x1xf32>
    tpu.vector_store %arg17[%c6_256, %c0_257, %c0_258], %328 {strides = array<i32>} : memref<8x8x1xf32, #tpu.memory_space<vmem>>, vector<1x8x1xf32>,
    %c6_259 = arith.constant 6 : index
    %c0_260 = arith.constant 0 : index
    %c0_261 = arith.constant 0 : index
    %329 = vector.load %arg15[%c6_259, %c0_260, %c0_261] : memref<8x8x4xf32, #tpu.memory_space<vmem>>, vector<1x8x4xf32>
    %330 = vector.shape_cast %329 : vector<1x8x4xf32> to vector<8x4xf32>
    %331 = vector.broadcast %316 : vector<8x1xf32> to vector<8x4xf32>
    %332 = arith.mulf %331, %330 : vector<8x4xf32>
    %cst_262 = arith.constant dense<0.000000e+00> : vector<8x4xf32>
    %333 = tpu.matmul %319, %306, %cst_262 {dimension_numbers = #tpu.dot_dimension_numbers<[1], [0], [0], [1], [0, 0, 1, 1], [], []>} : vector<8x8xf32>, vector<8x4xf32>, vector<8x4xf32> -> vector<8x4xf32>
    %334 = arith.addf %332, %333 : vector<8x4xf32>
    %c6_263 = arith.constant 6 : index
    %c0_264 = arith.constant 0 : index
    %c0_265 = arith.constant 0 : index
    %335 = vector.load %arg15[%c6_263, %c0_264, %c0_265] : memref<8x8x4xf32, #tpu.memory_space<vmem>>, vector<1x8x4xf32>
    %336 = vector.shape_cast %335 : vector<1x8x4xf32> to vector<8x4xf32>
    %337 = vector.shape_cast %334 : vector<8x4xf32> to vector<1x8x4xf32>
    tpu.vector_store %arg15[%c6_263, %c0_264, %c0_265], %337 {strides = array<i32>} : memref<8x8x4xf32, #tpu.memory_space<vmem>>, vector<1x8x4xf32>,
    %c6_266 = arith.constant 6 : index
    %c0_267 = arith.constant 0 : index
    %c0_268 = arith.constant 0 : index
    %338 = vector.load %arg16[%c6_266, %c0_267, %c0_268] : memref<8x8x1xf32, #tpu.memory_space<vmem>>, vector<1x8x1xf32>
    %339 = vector.shape_cast %338 : vector<1x8x1xf32> to vector<8x1xf32>
    %340 = vector.shape_cast %314 : vector<8x1xf32> to vector<1x8x1xf32>
    tpu.vector_store %arg16[%c6_266, %c0_267, %c0_268], %340 {strides = array<i32>} : memref<8x8x1xf32, #tpu.memory_space<vmem>>, vector<1x8x1xf32>,
    %c7 = arith.constant 7 : index
    %c0_269 = arith.constant 0 : index
    %c0_270 = arith.constant 0 : index
    %341 = vector.load %arg7[%c7, %c0_269, %c0_270] : memref<8x32x4xf32, #tpu.memory_space<vmem>>, vector<1x32x4xf32>
    %342 = vector.shape_cast %341 : vector<1x32x4xf32> to vector<32x4xf32>
    %cst_271 = arith.constant dense<0.000000e+00> : vector<8x4xf32>
    %343 = tpu.matmul %4, %342, %cst_271 {dimension_numbers = #tpu.dot_dimension_numbers<[1], [0], [0], [1], [0, 0, 1, 1], [], []>} : vector<8x32xf32>, vector<32x4xf32>, vector<8x4xf32> -> vector<8x4xf32>
    %c7_272 = arith.constant 7 : index
    %c0_273 = arith.constant 0 : index
    %c0_274 = arith.constant 0 : index
    %344 = vector.load %arg8[%c7_272, %c0_273, %c0_274] : memref<8x1x4xf32, #tpu.memory_space<vmem>>, vector<1x1x4xf32>
    %345 = vector.shape_cast %344 : vector<1x1x4xf32> to vector<1x4xf32>
    %346 = vector.broadcast %345 : vector<1x4xf32> to vector<8x4xf32>
    %347 = arith.addf %343, %346 : vector<8x4xf32>
    %c7_275 = arith.constant 7 : index
    %c0_276 = arith.constant 0 : index
    %c0_277 = arith.constant 0 : index
    %348 = vector.load %arg9[%c7_275, %c0_276, %c0_277] : memref<8x32x4xf32, #tpu.memory_space<vmem>>, vector<1x32x4xf32>
    %349 = vector.shape_cast %348 : vector<1x32x4xf32> to vector<32x4xf32>
    %cst_278 = arith.constant dense<0.000000e+00> : vector<8x4xf32>
    %350 = tpu.matmul %4, %349, %cst_278 {dimension_numbers = #tpu.dot_dimension_numbers<[1], [0], [0], [1], [0, 0, 1, 1], [], []>} : vector<8x32xf32>, vector<32x4xf32>, vector<8x4xf32> -> vector<8x4xf32>
    %c7_279 = arith.constant 7 : index
    %c0_280 = arith.constant 0 : index
    %c0_281 = arith.constant 0 : index
    %351 = vector.load %arg10[%c7_279, %c0_280, %c0_281] : memref<8x1x4xf32, #tpu.memory_space<vmem>>, vector<1x1x4xf32>
    %352 = vector.shape_cast %351 : vector<1x1x4xf32> to vector<1x4xf32>
    %353 = vector.broadcast %352 : vector<1x4xf32> to vector<8x4xf32>
    %354 = arith.addf %350, %353 : vector<8x4xf32>
    %c7_282 = arith.constant 7 : index
    %c0_283 = arith.constant 0 : index
    %c0_284 = arith.constant 0 : index
    %355 = vector.load %arg14[%c7_282, %c0_283, %c0_284] : memref<8x8x4xf32, #tpu.memory_space<vmem>>, vector<1x8x4xf32>
    %356 = vector.shape_cast %355 : vector<1x8x4xf32> to vector<8x4xf32>
    %cst_285 = arith.constant dense<0.000000e+00> : vector<8x8xf32>
    %357 = tpu.matmul %356, %347, %cst_285 {dimension_numbers = #tpu.dot_dimension_numbers<[1], [1], [0], [0], [0, 0, 1, 0], [], []>} : vector<8x4xf32>, vector<8x4xf32>, vector<8x8xf32> -> vector<8x8xf32>
    %c7_286 = arith.constant 7 : index
    %c0_287 = arith.constant 0 : index
    %c0_288 = arith.constant 0 : index
    %358 = vector.load %arg16[%c7_286, %c0_287, %c0_288] : memref<8x8x1xf32, #tpu.memory_space<vmem>>, vector<1x8x1xf32>
    %359 = vector.shape_cast %358 : vector<1x8x1xf32> to vector<8x1xf32>
    %cst_289 = arith.constant dense<0xFF800000> : vector<8xf32>
    %360 = vector.multi_reduction <maximumf>, %357, %cst_289 [1] : vector<8x8xf32> to vector<8xf32>
    %361 = vector.shape_cast %360 : vector<8xf32> to vector<8x1xf32>
    %362 = arith.maximumf %359, %361 : vector<8x1xf32>
    %363 = arith.subf %359, %362 : vector<8x1xf32>
    %364 = math.exp %363 : vector<8x1xf32>
    %365 = vector.broadcast %362 : vector<8x1xf32> to vector<8x8xf32>
    %366 = arith.subf %357, %365 : vector<8x8xf32>
    %367 = math.exp %366 : vector<8x8xf32>
    %c7_290 = arith.constant 7 : index
    %c0_291 = arith.constant 0 : index
    %c0_292 = arith.constant 0 : index
    %368 = vector.load %arg17[%c7_290, %c0_291, %c0_292] : memref<8x8x1xf32, #tpu.memory_space<vmem>>, vector<1x8x1xf32>
    %369 = vector.shape_cast %368 : vector<1x8x1xf32> to vector<8x1xf32>
    %370 = arith.mulf %364, %369 : vector<8x1xf32>
    %cst_293 = arith.constant dense<0.000000e+00> : vector<8xf32>
    %371 = vector.multi_reduction <add>, %367, %cst_293 [1] : vector<8x8xf32> to vector<8xf32>
    %372 = vector.shape_cast %371 : vector<8xf32> to vector<8x1xf32>
    %373 = arith.addf %370, %372 : vector<8x1xf32>
    %c7_294 = arith.constant 7 : index
    %c0_295 = arith.constant 0 : index
    %c0_296 = arith.constant 0 : index
    %374 = vector.load %arg17[%c7_294, %c0_295, %c0_296] : memref<8x8x1xf32, #tpu.memory_space<vmem>>, vector<1x8x1xf32>
    %375 = vector.shape_cast %374 : vector<1x8x1xf32> to vector<8x1xf32>
    %376 = vector.shape_cast %373 : vector<8x1xf32> to vector<1x8x1xf32>
    tpu.vector_store %arg17[%c7_294, %c0_295, %c0_296], %376 {strides = array<i32>} : memref<8x8x1xf32, #tpu.memory_space<vmem>>, vector<1x8x1xf32>,
    %c7_297 = arith.constant 7 : index
    %c0_298 = arith.constant 0 : index
    %c0_299 = arith.constant 0 : index
    %377 = vector.load %arg15[%c7_297, %c0_298, %c0_299] : memref<8x8x4xf32, #tpu.memory_space<vmem>>, vector<1x8x4xf32>
    %378 = vector.shape_cast %377 : vector<1x8x4xf32> to vector<8x4xf32>
    %379 = vector.broadcast %364 : vector<8x1xf32> to vector<8x4xf32>
    %380 = arith.mulf %379, %378 : vector<8x4xf32>
    %cst_300 = arith.constant dense<0.000000e+00> : vector<8x4xf32>
    %381 = tpu.matmul %367, %354, %cst_300 {dimension_numbers = #tpu.dot_dimension_numbers<[1], [0], [0], [1], [0, 0, 1, 1], [], []>} : vector<8x8xf32>, vector<8x4xf32>, vector<8x4xf32> -> vector<8x4xf32>
    %382 = arith.addf %380, %381 : vector<8x4xf32>
    %c7_301 = arith.constant 7 : index
    %c0_302 = arith.constant 0 : index
    %c0_303 = arith.constant 0 : index
    %383 = vector.load %arg15[%c7_301, %c0_302, %c0_303] : memref<8x8x4xf32, #tpu.memory_space<vmem>>, vector<1x8x4xf32>
    %384 = vector.shape_cast %383 : vector<1x8x4xf32> to vector<8x4xf32>
    %385 = vector.shape_cast %382 : vector<8x4xf32> to vector<1x8x4xf32>
    tpu.vector_store %arg15[%c7_301, %c0_302, %c0_303], %385 {strides = array<i32>} : memref<8x8x4xf32, #tpu.memory_space<vmem>>, vector<1x8x4xf32>,
    %c7_304 = arith.constant 7 : index
    %c0_305 = arith.constant 0 : index
    %c0_306 = arith.constant 0 : index
    %386 = vector.load %arg16[%c7_304, %c0_305, %c0_306] : memref<8x8x1xf32, #tpu.memory_space<vmem>>, vector<1x8x1xf32>
    %387 = vector.shape_cast %386 : vector<1x8x1xf32> to vector<8x1xf32>
    %388 = vector.shape_cast %362 : vector<8x1xf32> to vector<1x8x1xf32>
    tpu.vector_store %arg16[%c7_304, %c0_305, %c0_306], %388 {strides = array<i32>} : memref<8x8x1xf32, #tpu.memory_space<vmem>>, vector<1x8x1xf32>,
    %c0_i32_307 = arith.constant 0 : i32
    %389 = arith.cmpi eq, %arg2, %c0_i32_307 : i32
    %390 = arith.extui %389 : i1 to i32
    %c0_i32_308 = arith.constant 0 : i32
    %391 = arith.cmpi ne, %390, %c0_i32_308 : i32
    scf.if %391 {
      %cst_309 = arith.constant 0.000000e+00 : f32
      %392 = vector.broadcast %cst_309 : f32 to vector<8x32xf32>
      %c0_310 = arith.constant 0 : index
      %c0_311 = arith.constant 0 : index
      %c0_312 = arith.constant 0 : index
      %393 = vector.load %arg17[%c0_310, %c0_311, %c0_312] : memref<8x8x1xf32, #tpu.memory_space<vmem>>, vector<1x8x1xf32>
      %394 = vector.shape_cast %393 : vector<1x8x1xf32> to vector<8x1xf32>
      %cst_313 = arith.constant 1.000000e+00 : f32
      %395 = vector.broadcast %cst_313 : f32 to vector<8x1xf32>
      %396 = arith.divf %395, %394 : vector<8x1xf32>
      %c0_314 = arith.constant 0 : index
      %c0_315 = arith.constant 0 : index
      %c0_316 = arith.constant 0 : index
      %397 = vector.load %arg15[%c0_314, %c0_315, %c0_316] : memref<8x8x4xf32, #tpu.memory_space<vmem>>, vector<1x8x4xf32>
      %398 = vector.shape_cast %397 : vector<1x8x4xf32> to vector<8x4xf32>
      %399 = vector.broadcast %396 : vector<8x1xf32> to vector<8x4xf32>
      %400 = arith.mulf %398, %399 : vector<8x4xf32>
      %c0_317 = arith.constant 0 : index
      %c0_318 = arith.constant 0 : index
      %c0_319 = arith.constant 0 : index
      %401 = vector.load %arg11[%c0_317, %c0_318, %c0_319] : memref<8x4x32xf32, #tpu.memory_space<vmem>>, vector<1x4x32xf32>
      %402 = vector.shape_cast %401 : vector<1x4x32xf32> to vector<4x32xf32>
      %cst_320 = arith.constant dense<0.000000e+00> : vector<8x32xf32>
      %403 = tpu.matmul %400, %402, %cst_320 {dimension_numbers = #tpu.dot_dimension_numbers<[1], [0], [0], [1], [0, 0, 1, 1], [], []>} : vector<8x4xf32>, vector<4x32xf32>, vector<8x32xf32> -> vector<8x32xf32>
      %404 = arith.addf %392, %403 : vector<8x32xf32>
      %c1_321 = arith.constant 1 : index
      %c0_322 = arith.constant 0 : index
      %c0_323 = arith.constant 0 : index
      %405 = vector.load %arg17[%c1_321, %c0_322, %c0_323] : memref<8x8x1xf32, #tpu.memory_space<vmem>>, vector<1x8x1xf32>
      %406 = vector.shape_cast %405 : vector<1x8x1xf32> to vector<8x1xf32>
      %cst_324 = arith.constant 1.000000e+00 : f32
      %407 = vector.broadcast %cst_324 : f32 to vector<8x1xf32>
      %408 = arith.divf %407, %406 : vector<8x1xf32>
      %c1_325 = arith.constant 1 : index
      %c0_326 = arith.constant 0 : index
      %c0_327 = arith.constant 0 : index
      %409 = vector.load %arg15[%c1_325, %c0_326, %c0_327] : memref<8x8x4xf32, #tpu.memory_space<vmem>>, vector<1x8x4xf32>
      %410 = vector.shape_cast %409 : vector<1x8x4xf32> to vector<8x4xf32>
      %411 = vector.broadcast %408 : vector<8x1xf32> to vector<8x4xf32>
      %412 = arith.mulf %410, %411 : vector<8x4xf32>
      %c1_328 = arith.constant 1 : index
      %c0_329 = arith.constant 0 : index
      %c0_330 = arith.constant 0 : index
      %413 = vector.load %arg11[%c1_328, %c0_329, %c0_330] : memref<8x4x32xf32, #tpu.memory_space<vmem>>, vector<1x4x32xf32>
      %414 = vector.shape_cast %413 : vector<1x4x32xf32> to vector<4x32xf32>
      %cst_331 = arith.constant dense<0.000000e+00> : vector<8x32xf32>
      %415 = tpu.matmul %412, %414, %cst_331 {dimension_numbers = #tpu.dot_dimension_numbers<[1], [0], [0], [1], [0, 0, 1, 1], [], []>} : vector<8x4xf32>, vector<4x32xf32>, vector<8x32xf32> -> vector<8x32xf32>
      %416 = arith.addf %404, %415 : vector<8x32xf32>
      %c2_332 = arith.constant 2 : index
      %c0_333 = arith.constant 0 : index
      %c0_334 = arith.constant 0 : index
      %417 = vector.load %arg17[%c2_332, %c0_333, %c0_334] : memref<8x8x1xf32, #tpu.memory_space<vmem>>, vector<1x8x1xf32>
      %418 = vector.shape_cast %417 : vector<1x8x1xf32> to vector<8x1xf32>
      %cst_335 = arith.constant 1.000000e+00 : f32
      %419 = vector.broadcast %cst_335 : f32 to vector<8x1xf32>
      %420 = arith.divf %419, %418 : vector<8x1xf32>
      %c2_336 = arith.constant 2 : index
      %c0_337 = arith.constant 0 : index
      %c0_338 = arith.constant 0 : index
      %421 = vector.load %arg15[%c2_336, %c0_337, %c0_338] : memref<8x8x4xf32, #tpu.memory_space<vmem>>, vector<1x8x4xf32>
      %422 = vector.shape_cast %421 : vector<1x8x4xf32> to vector<8x4xf32>
      %423 = vector.broadcast %420 : vector<8x1xf32> to vector<8x4xf32>
      %424 = arith.mulf %422, %423 : vector<8x4xf32>
      %c2_339 = arith.constant 2 : index
      %c0_340 = arith.constant 0 : index
      %c0_341 = arith.constant 0 : index
      %425 = vector.load %arg11[%c2_339, %c0_340, %c0_341] : memref<8x4x32xf32, #tpu.memory_space<vmem>>, vector<1x4x32xf32>
      %426 = vector.shape_cast %425 : vector<1x4x32xf32> to vector<4x32xf32>
      %cst_342 = arith.constant dense<0.000000e+00> : vector<8x32xf32>
      %427 = tpu.matmul %424, %426, %cst_342 {dimension_numbers = #tpu.dot_dimension_numbers<[1], [0], [0], [1], [0, 0, 1, 1], [], []>} : vector<8x4xf32>, vector<4x32xf32>, vector<8x32xf32> -> vector<8x32xf32>
      %428 = arith.addf %416, %427 : vector<8x32xf32>
      %c3_343 = arith.constant 3 : index
      %c0_344 = arith.constant 0 : index
      %c0_345 = arith.constant 0 : index
      %429 = vector.load %arg17[%c3_343, %c0_344, %c0_345] : memref<8x8x1xf32, #tpu.memory_space<vmem>>, vector<1x8x1xf32>
      %430 = vector.shape_cast %429 : vector<1x8x1xf32> to vector<8x1xf32>
      %cst_346 = arith.constant 1.000000e+00 : f32
      %431 = vector.broadcast %cst_346 : f32 to vector<8x1xf32>
      %432 = arith.divf %431, %430 : vector<8x1xf32>
      %c3_347 = arith.constant 3 : index
      %c0_348 = arith.constant 0 : index
      %c0_349 = arith.constant 0 : index
      %433 = vector.load %arg15[%c3_347, %c0_348, %c0_349] : memref<8x8x4xf32, #tpu.memory_space<vmem>>, vector<1x8x4xf32>
      %434 = vector.shape_cast %433 : vector<1x8x4xf32> to vector<8x4xf32>
      %435 = vector.broadcast %432 : vector<8x1xf32> to vector<8x4xf32>
      %436 = arith.mulf %434, %435 : vector<8x4xf32>
      %c3_350 = arith.constant 3 : index
      %c0_351 = arith.constant 0 : index
      %c0_352 = arith.constant 0 : index
      %437 = vector.load %arg11[%c3_350, %c0_351, %c0_352] : memref<8x4x32xf32, #tpu.memory_space<vmem>>, vector<1x4x32xf32>
      %438 = vector.shape_cast %437 : vector<1x4x32xf32> to vector<4x32xf32>
      %cst_353 = arith.constant dense<0.000000e+00> : vector<8x32xf32>
      %439 = tpu.matmul %436, %438, %cst_353 {dimension_numbers = #tpu.dot_dimension_numbers<[1], [0], [0], [1], [0, 0, 1, 1], [], []>} : vector<8x4xf32>, vector<4x32xf32>, vector<8x32xf32> -> vector<8x32xf32>
      %440 = arith.addf %428, %439 : vector<8x32xf32>
      %c4_354 = arith.constant 4 : index
      %c0_355 = arith.constant 0 : index
      %c0_356 = arith.constant 0 : index
      %441 = vector.load %arg17[%c4_354, %c0_355, %c0_356] : memref<8x8x1xf32, #tpu.memory_space<vmem>>, vector<1x8x1xf32>
      %442 = vector.shape_cast %441 : vector<1x8x1xf32> to vector<8x1xf32>
      %cst_357 = arith.constant 1.000000e+00 : f32
      %443 = vector.broadcast %cst_357 : f32 to vector<8x1xf32>
      %444 = arith.divf %443, %442 : vector<8x1xf32>
      %c4_358 = arith.constant 4 : index
      %c0_359 = arith.constant 0 : index
      %c0_360 = arith.constant 0 : index
      %445 = vector.load %arg15[%c4_358, %c0_359, %c0_360] : memref<8x8x4xf32, #tpu.memory_space<vmem>>, vector<1x8x4xf32>
      %446 = vector.shape_cast %445 : vector<1x8x4xf32> to vector<8x4xf32>
      %447 = vector.broadcast %444 : vector<8x1xf32> to vector<8x4xf32>
      %448 = arith.mulf %446, %447 : vector<8x4xf32>
      %c4_361 = arith.constant 4 : index
      %c0_362 = arith.constant 0 : index
      %c0_363 = arith.constant 0 : index
      %449 = vector.load %arg11[%c4_361, %c0_362, %c0_363] : memref<8x4x32xf32, #tpu.memory_space<vmem>>, vector<1x4x32xf32>
      %450 = vector.shape_cast %449 : vector<1x4x32xf32> to vector<4x32xf32>
      %cst_364 = arith.constant dense<0.000000e+00> : vector<8x32xf32>
      %451 = tpu.matmul %448, %450, %cst_364 {dimension_numbers = #tpu.dot_dimension_numbers<[1], [0], [0], [1], [0, 0, 1, 1], [], []>} : vector<8x4xf32>, vector<4x32xf32>, vector<8x32xf32> -> vector<8x32xf32>
      %452 = arith.addf %440, %451 : vector<8x32xf32>
      %c5_365 = arith.constant 5 : index
      %c0_366 = arith.constant 0 : index
      %c0_367 = arith.constant 0 : index
      %453 = vector.load %arg17[%c5_365, %c0_366, %c0_367] : memref<8x8x1xf32, #tpu.memory_space<vmem>>, vector<1x8x1xf32>
      %454 = vector.shape_cast %453 : vector<1x8x1xf32> to vector<8x1xf32>
      %cst_368 = arith.constant 1.000000e+00 : f32
      %455 = vector.broadcast %cst_368 : f32 to vector<8x1xf32>
      %456 = arith.divf %455, %454 : vector<8x1xf32>
      %c5_369 = arith.constant 5 : index
      %c0_370 = arith.constant 0 : index
      %c0_371 = arith.constant 0 : index
      %457 = vector.load %arg15[%c5_369, %c0_370, %c0_371] : memref<8x8x4xf32, #tpu.memory_space<vmem>>, vector<1x8x4xf32>
      %458 = vector.shape_cast %457 : vector<1x8x4xf32> to vector<8x4xf32>
      %459 = vector.broadcast %456 : vector<8x1xf32> to vector<8x4xf32>
      %460 = arith.mulf %458, %459 : vector<8x4xf32>
      %c5_372 = arith.constant 5 : index
      %c0_373 = arith.constant 0 : index
      %c0_374 = arith.constant 0 : index
      %461 = vector.load %arg11[%c5_372, %c0_373, %c0_374] : memref<8x4x32xf32, #tpu.memory_space<vmem>>, vector<1x4x32xf32>
      %462 = vector.shape_cast %461 : vector<1x4x32xf32> to vector<4x32xf32>
      %cst_375 = arith.constant dense<0.000000e+00> : vector<8x32xf32>
      %463 = tpu.matmul %460, %462, %cst_375 {dimension_numbers = #tpu.dot_dimension_numbers<[1], [0], [0], [1], [0, 0, 1, 1], [], []>} : vector<8x4xf32>, vector<4x32xf32>, vector<8x32xf32> -> vector<8x32xf32>
      %464 = arith.addf %452, %463 : vector<8x32xf32>
      %c6_376 = arith.constant 6 : index
      %c0_377 = arith.constant 0 : index
      %c0_378 = arith.constant 0 : index
      %465 = vector.load %arg17[%c6_376, %c0_377, %c0_378] : memref<8x8x1xf32, #tpu.memory_space<vmem>>, vector<1x8x1xf32>
      %466 = vector.shape_cast %465 : vector<1x8x1xf32> to vector<8x1xf32>
      %cst_379 = arith.constant 1.000000e+00 : f32
      %467 = vector.broadcast %cst_379 : f32 to vector<8x1xf32>
      %468 = arith.divf %467, %466 : vector<8x1xf32>
      %c6_380 = arith.constant 6 : index
      %c0_381 = arith.constant 0 : index
      %c0_382 = arith.constant 0 : index
      %469 = vector.load %arg15[%c6_380, %c0_381, %c0_382] : memref<8x8x4xf32, #tpu.memory_space<vmem>>, vector<1x8x4xf32>
      %470 = vector.shape_cast %469 : vector<1x8x4xf32> to vector<8x4xf32>
      %471 = vector.broadcast %468 : vector<8x1xf32> to vector<8x4xf32>
      %472 = arith.mulf %470, %471 : vector<8x4xf32>
      %c6_383 = arith.constant 6 : index
      %c0_384 = arith.constant 0 : index
      %c0_385 = arith.constant 0 : index
      %473 = vector.load %arg11[%c6_383, %c0_384, %c0_385] : memref<8x4x32xf32, #tpu.memory_space<vmem>>, vector<1x4x32xf32>
      %474 = vector.shape_cast %473 : vector<1x4x32xf32> to vector<4x32xf32>
      %cst_386 = arith.constant dense<0.000000e+00> : vector<8x32xf32>
      %475 = tpu.matmul %472, %474, %cst_386 {dimension_numbers = #tpu.dot_dimension_numbers<[1], [0], [0], [1], [0, 0, 1, 1], [], []>} : vector<8x4xf32>, vector<4x32xf32>, vector<8x32xf32> -> vector<8x32xf32>
      %476 = arith.addf %464, %475 : vector<8x32xf32>
      %c7_387 = arith.constant 7 : index
      %c0_388 = arith.constant 0 : index
      %c0_389 = arith.constant 0 : index
      %477 = vector.load %arg17[%c7_387, %c0_388, %c0_389] : memref<8x8x1xf32, #tpu.memory_space<vmem>>, vector<1x8x1xf32>
      %478 = vector.shape_cast %477 : vector<1x8x1xf32> to vector<8x1xf32>
      %cst_390 = arith.constant 1.000000e+00 : f32
      %479 = vector.broadcast %cst_390 : f32 to vector<8x1xf32>
      %480 = arith.divf %479, %478 : vector<8x1xf32>
      %c7_391 = arith.constant 7 : index
      %c0_392 = arith.constant 0 : index
      %c0_393 = arith.constant 0 : index
      %481 = vector.load %arg15[%c7_391, %c0_392, %c0_393] : memref<8x8x4xf32, #tpu.memory_space<vmem>>, vector<1x8x4xf32>
      %482 = vector.shape_cast %481 : vector<1x8x4xf32> to vector<8x4xf32>
      %483 = vector.broadcast %480 : vector<8x1xf32> to vector<8x4xf32>
      %484 = arith.mulf %482, %483 : vector<8x4xf32>
      %c7_394 = arith.constant 7 : index
      %c0_395 = arith.constant 0 : index
      %c0_396 = arith.constant 0 : index
      %485 = vector.load %arg11[%c7_394, %c0_395, %c0_396] : memref<8x4x32xf32, #tpu.memory_space<vmem>>, vector<1x4x32xf32>
      %486 = vector.shape_cast %485 : vector<1x4x32xf32> to vector<4x32xf32>
      %cst_397 = arith.constant dense<0.000000e+00> : vector<8x32xf32>
      %487 = tpu.matmul %484, %486, %cst_397 {dimension_numbers = #tpu.dot_dimension_numbers<[1], [0], [0], [1], [0, 0, 1, 1], [], []>} : vector<8x4xf32>, vector<4x32xf32>, vector<8x32xf32> -> vector<8x32xf32>
      %488 = arith.addf %476, %487 : vector<8x32xf32>
      %c0_398 = arith.constant 0 : index
      %c0_399 = arith.constant 0 : index
      %489 = vector.load %arg12[%c0_398, %c0_399] : memref<1x32xf32, #tpu.memory_space<vmem>>, vector<1x32xf32>
      %490 = vector.broadcast %489 : vector<1x32xf32> to vector<8x32xf32>
      %491 = arith.addf %488, %490 : vector<8x32xf32>
      %c0_400 = arith.constant 0 : index
      %c0_401 = arith.constant 0 : index
      %c0_402 = arith.constant 0 : index
      %492 = vector.load %arg13[%c0_400, %c0_401, %c0_402] : memref<1x8x32xf32, #tpu.memory_space<vmem>>, vector<1x8x32xf32>
      %493 = vector.shape_cast %492 : vector<1x8x32xf32> to vector<8x32xf32>
      %494 = vector.shape_cast %491 : vector<8x32xf32> to vector<1x8x32xf32>
      tpu.vector_store %arg13[%c0_400, %c0_401, %c0_402], %494 {strides = array<i32>} : memref<1x8x32xf32, #tpu.memory_space<vmem>>, vector<1x8x32xf32>,
    } else {
    }
    return
  }
  func.func @transform_0(%arg0: i32, %arg1: i32, %arg2: i32) -> (i32, i32, i32) {
    %c0_i32 = arith.constant 0 : i32
    %c0_i32_0 = arith.constant 0 : i32
    return %arg0, %arg1, %c0_i32 : i32, i32, i32
  }
  func.func @transform_1(%arg0: i32, %arg1: i32, %arg2: i32) -> (i32, i32, i32) {
    %c0_i32 = arith.constant 0 : i32
    %c0_i32_0 = arith.constant 0 : i32
    return %arg0, %arg2, %c0_i32 : i32, i32, i32
  }
  func.func @transform_2(%arg0: i32, %arg1: i32, %arg2: i32) -> (i32, i32, i32) {
    %c0_i32 = arith.constant 0 : i32
    %c0_i32_0 = arith.constant 0 : i32
    %c0_i32_1 = arith.constant 0 : i32
    %c0_i32_2 = arith.constant 0 : i32
    return %c0_i32, %c0_i32_0, %c0_i32_1 : i32, i32, i32
  }
  func.func @transform_3(%arg0: i32, %arg1: i32, %arg2: i32) -> (i32, i32, i32) {
    %c0_i32 = arith.constant 0 : i32
    %c0_i32_0 = arith.constant 0 : i32
    %c0_i32_1 = arith.constant 0 : i32
    %c0_i32_2 = arith.constant 0 : i32
    return %c0_i32, %c0_i32_0, %c0_i32_1 : i32, i32, i32
  }
  func.func @transform_4(%arg0: i32, %arg1: i32, %arg2: i32) -> (i32, i32, i32) {
    %c0_i32 = arith.constant 0 : i32
    %c0_i32_0 = arith.constant 0 : i32
    %c0_i32_1 = arith.constant 0 : i32
    %c0_i32_2 = arith.constant 0 : i32
    return %c0_i32, %c0_i32_0, %c0_i32_1 : i32, i32, i32
  }
  func.func @transform_5(%arg0: i32, %arg1: i32, %arg2: i32) -> (i32, i32, i32) {
    %c0_i32 = arith.constant 0 : i32
    %c0_i32_0 = arith.constant 0 : i32
    %c0_i32_1 = arith.constant 0 : i32
    %c0_i32_2 = arith.constant 0 : i32
    return %c0_i32, %c0_i32_0, %c0_i32_1 : i32, i32, i32
  }
  func.func @transform_6(%arg0: i32, %arg1: i32, %arg2: i32) -> (i32, i32, i32) {
    %c0_i32 = arith.constant 0 : i32
    %c0_i32_0 = arith.constant 0 : i32
    %c0_i32_1 = arith.constant 0 : i32
    %c0_i32_2 = arith.constant 0 : i32
    return %c0_i32, %c0_i32_0, %c0_i32_1 : i32, i32, i32
  }
  func.func @transform_7(%arg0: i32, %arg1: i32, %arg2: i32) -> (i32, i32, i32) {
    %c0_i32 = arith.constant 0 : i32
    %c0_i32_0 = arith.constant 0 : i32
    %c0_i32_1 = arith.constant 0 : i32
    %c0_i32_2 = arith.constant 0 : i32
    return %c0_i32, %c0_i32_0, %c0_i32_1 : i32, i32, i32
  }
  func.func @transform_8(%arg0: i32, %arg1: i32, %arg2: i32) -> (i32, i32, i32) {
    %c0_i32 = arith.constant 0 : i32
    %c0_i32_0 = arith.constant 0 : i32
    %c0_i32_1 = arith.constant 0 : i32
    %c0_i32_2 = arith.constant 0 : i32
    return %c0_i32, %c0_i32_0, %c0_i32_1 : i32, i32, i32
  }
  func.func @transform_9(%arg0: i32, %arg1: i32, %arg2: i32) -> (i32, i32) {
    %c0_i32 = arith.constant 0 : i32
    %c0_i32_0 = arith.constant 0 : i32
    %c0_i32_1 = arith.constant 0 : i32
    return %c0_i32, %c0_i32_0 : i32, i32
  }
  func.func @transform_10(%arg0: i32, %arg1: i32, %arg2: i32) -> (i32, i32, i32) {
    %c0_i32 = arith.constant 0 : i32
    %c0_i32_0 = arith.constant 0 : i32
    return %arg0, %arg1, %c0_i32 : i32, i32, i32
  }
}

</mosaic_0001>

<bundles_post_ra>
// kernel: tpu_custom_call.1
= control target key start
LH: loop header
LB: loop body
LE: loop exit
PB: predicated region body
PF: predicated region fallthrough
CT: control target
= control target key end

     0   :  { %15 = vsyncpa [#allocation7], 0  ;;  %s3695_s0 = inlined_call_operand.vmem [shape: f32[2,8,32], index: 0, kind: input, shape index: {}]   ;;  %s3696_s1 = inlined_call_operand.vmem [shape: f32[2,8,32], index: 1, kind: input, shape index: {}]   ;;  %s3697_s2 = inlined_call_operand.vmem [shape: f32[8,32,4], index: 2, kind: input, shape index: {}]   ;;  %s3698_s3 = inlined_call_operand.vmem [shape: f32[8,1,4], index: 3, kind: input, shape index: {}]   ;;  %s3699_s4 = inlined_call_operand.vmem [shape: f32[8,32,4], index: 4, kind: input, shape index: {}]   ;;  %s3700_s5 = inlined_call_operand.vmem [shape: f32[8,1,4], index: 5, kind: input, shape index: {}]   ;;  %s3701_s6 = inlined_call_operand.vmem [shape: f32[8,32,4], index: 6, kind: input, shape index: {}]   ;;  %s3702_s7 = inlined_call_operand.vmem [shape: f32[8,1,4], index: 7, kind: input, shape index: {}]   ;;  %s3703_s8 = inlined_call_operand.vmem [shape: f32[8,4,32], index: 8, kind: input, shape index: {}]   ;;  %s3704_s9 = inlined_call_operand.vmem [shape: f32[1,32], index: 9, kind: input, shape index: {}]   ;;  %s3705_s10 = inlined_call_operand.hbm [shape: f32[2,8,32], index: 10, kind: output, shape index: {}]  }
   0x1   :  { %17 = vsyncpa [#allocation7 + $0x1], 0  ;;  %s2868_s13 = smov 0   ;;  %s2870_s14 = smov 0  }
   0x2   :  { %s2872_s15 = smov 0   ;;  %s2874_s16 = smov 0  }
   0x3   :  { %s2876_s17 = smov 0   ;;  %s2878_s18 = smov 0  }
   0x4 LB: > { %3708 = sst [smem:[#allocation9_spill]] %s2804_s17  ;;  %s2408_s19 = sadd.s32 4294967295, %s2808_s18   ;;  %s2808_s18 = sphi %s2878_s18, %s23_s18   ;;  %s2804_s17 = sphi %s2876_s17, %s3721_s17   ;;  %s2800_s16 = sphi %s2874_s16, %s3720_s16   ;;  %s2796_s15 = sphi %s2872_s15, %s3724_s15   ;;  %s2792_s14 = sphi %s2870_s14, %s3723_s14   ;;  %s2788_s13 = sphi %s2868_s13, %s3722_s13  }
   0x5   : > { %s2409_s20 = sadd.s32 4294967294, %s2808_s18   ;;  %s42_s21 = sadd.s32 1, %s2804_s17 }
   0x6   : > { %s275_s22 = sadd.s32 1, %s2796_s15  ;;  %p44_p0 = scmp.ge.s32.totalorder %s42_s21, 2 }
   0x7   : > { %p285_p1 = scmp.ne.s32.totalorder %s2796_s15, %s2792_s14  ;;  %p286_p2 = scmp.eq.s32.totalorder %s2408_s19, 1 }
   0x8   : > { %p291_p3 = scmp.ne.s32.totalorder %s2792_s14, %s2788_s13  ;;  %s3726_s21 = smov (%p44_p0, %s42_s21), 0 }
   0x9   : > { %3709 = sst [smem:[#allocation10_spill]] %s3726_s21  ;;  %p2908_p4 = por %p286_p2, %p285_p1 }
   0xa   : > { %p292_p5 = scmp.eq.s32.totalorder %s2409_s20, 1  ;;  %s270_s24 = ssub.s32 %s2804_s17, %s3726_s21 }
   0xb   : > { %p2412_p6 = scmp.ge.s32.totalorder %s2808_s18, 1  ;;  %p273_p7 = scmp.eq.s32.totalorder %s270_s24, 0 }
   0xc   : > { %p2915_p8 = por %p292_p5, %p291_p3  ;;  %p354_p9 = scmp.lt.s32.totalorder %s2808_s18, 3 }
   0xd   : > { %s2921_s26 = scalar_select %p273_p7, %s2796_s15, %s275_s22  }
   0xe   : > { %p355_p10 = pnand %p2412_p6, %p354_p9 }
   0xf   : > { %3712 = sst [smem:[#allocation11_spill]] %s2921_s26  ;;  %p401_p11 = scmp.lt.s32.totalorder (!%p355_p10), %s2800_s16, 1 }
  0x10   : > { %358 = sbr.rel (%p355_p10) target bundleno = 1134 (0x46e), region = 60  ;;  %s398_s29 = sand.u32 (!%p355_p10), 1, %s2792_s14  }
  0x11   : > { %s2413_s30 = sshll.u32 (!%p355_p10), %s398_s29, 3  ;;  %s2593_s17 = sshll.u32 (!%p355_p10), %s2800_s16, 3 }
  0x12   : > { %s400_s26 = scalar_lea.vmem (!%p355_p10), [#allocation6], %s2413_s30  ;;  %s2750_s30 = scalar_lea.hbm (!%p355_p10), %s3705_s10, 16 }
  0x15   : > { %v449_v0 = vld [vmem:[%s3697_s2 + $0x18] sm:$0xff]  ;;  %v448_v1 = vld [vmem:[%s3697_s2 + $0x10] sm:$0xff]  ;;  %v447_v2 = vld [vmem:[%s3697_s2 + $0x8] sm:$0xff]  ;;  %s2934_s19 = scalar_select %p401_p11, %s2800_s16, 1  ;;  %vm454_vm0 = vcmask 261120   ;;  %vm436_vm1 = vcmask 31744  }
  0x16   : > { %470 = vmatpush.msra.mxu0 %v449_v0  ;;  %v2420_v3 = vld [vmem:[%s3697_s2 + $0x38] sm:$0xff]  ;;  %v446_v4 = vld [vmem:[%s3697_s2] sm:$0xff]  ;;  %v2419_v5 = vld [vmem:[%s3697_s2 + $0x30] sm:$0xff]  ;;  %vm793_vm2 = vcmask 64512   ;;  %vm419_vm3 = vcmask 7168   ;;  %s2303_s16 = scalar_lea.sflag [#allocation7], %s398_s29 }
  0x17   : > { %s2414_s28 = sshll.u32 %s2934_s19, 3  ;;  %501 = vmatpush.msra.mxu1 %v2420_v3  ;;  %v2426_v6 = vld [vmem:[%s3697_s2 + $0x58] sm:$0xff]  ;;  %v2418_v7 = vld [vmem:[%s3697_s2 + $0x28] sm:$0xff]  ;;  %v2425_v8 = vld [vmem:[%s3697_s2 + $0x50] sm:$0xff] }
  0x18   : > { %471 = vmatpush.msra.mxu0 %v448_v1  ;;  %s407_s20 = scalar_lea.vmem %s3695_s0, %s2414_s28  ;;  %533 = vmatpush.msra.mxu2 %v2426_v6  ;;  %v2438_v10 = vld [vmem:[%s3697_s2 + $0x98] sm:$0xff]  ;;  %v2417_v11 = vld [vmem:[%s3697_s2 + $0x20] sm:$0xff]  ;;  %v2424_v12 = vld [vmem:[%s3697_s2 + $0x48] sm:$0xff]  ;;  %s414_s22 = scalar_lea.vmem %s3696_s1, %s2414_s28 }
  0x19   : > { %v2960_v9 = vld [vmem:[%s407_s20] sm:$0xff]  ;;  %502 = vmatpush.msra.mxu1 %v2419_v5  ;;  %v2437_v13 = vld [vmem:[%s3697_s2 + $0x90] sm:$0xff]  ;;  %v2432_v14 = vld [vmem:[%s3697_s2 + $0x78] sm:$0xff]  ;;  %s2314_s28 = scalar_lea.hbm %s3705_s10, %s2593_s17  ;;  %s2316_s20 = sshll.u32 %s400_s26, 4  ;;  %s2317_s20 = int_to_ptr.vmem [resolvable:$true] %s2316_s20 }
  0x1a   : > { %472 = vmatpush.msra.mxu0 %v447_v2  ;;  %534 = vmatpush.msra.mxu2 %v2425_v8  ;;  %v2423_v15 = vld [vmem:[%s3697_s2 + $0x40] sm:$0xff]  ;;  %v2431_v16 = vld [vmem:[%s3697_s2 + $0x70] sm:$0xff]  ;;  %v2436_v17 = vld [vmem:[%s3697_s2 + $0x88] sm:$0xff] }
  0x1b   : > { %503 = vmatpush.msra.mxu1 %v2418_v7  ;;  %565 = vmatpush.msra.mxu3 %v2432_v14  ;;  %v2435_v18 = vld [vmem:[%s3697_s2 + $0x80] sm:$0xff]  ;;  %v2430_v19 = vld [vmem:[%s3697_s2 + $0x68] sm:$0xff]  ;;  %v707_v20 = vld [vmem:[%s3699_s4 + $0x18] sm:$0xff] }
  0x1c   : > { %473 = vmatpush.msra.mxu0 %v446_v4  ;;  %535 = vmatpush.msra.mxu2 %v2424_v12  ;;  %v2429_v21 = vld [vmem:[%s3697_s2 + $0x60] sm:$0xff]  ;;  %v706_v22 = vld [vmem:[%s3699_s4 + $0x10] sm:$0xff]  ;;  %v705_v23 = vld [vmem:[%s3699_s4 + $0x8] sm:$0xff] }
  0x1d   : > { %2416 = vmatmul.msk.f32.vlgmr.msra.gmra.mxu0 %vm454_vm0, %v2960_v9  ;;  %504 = vmatpush.msra.mxu1 %v2417_v11  ;;  %v704_v24 = vld [vmem:[%s3699_s4] sm:$0xff]  ;;  %v2467_v26 = vld [vmem:[%s3699_s4 + $0x38] sm:$0xff]  ;;  %v2466_v27 = vld [vmem:[%s3699_s4 + $0x30] sm:$0xff] }
  0x1e   : > { %597 = vmatpush.msrb.mxu0 %v2438_v10  ;;  %2422 = vmatmul.msk.f32.vlgmr.msra.gmra.mxu1 %vm454_vm0, %v2960_v9  ;;  %v3022_v25 = vld [vmem:[%s414_s22] sm:$0xff]  ;;  %v2444_v28 = vld [vmem:[%s3697_s2 + $0xb8] sm:$0xff]  ;;  %v2443_v29 = vld [vmem:[%s3697_s2 + $0xb0] sm:$0xff]  ;;  %s2318_s22 = sshll.u32 %s2314_s28, 4  ;;  %s2319_s22 = int_to_ptr.hbm [resolvable:$true] %s2318_s22 }
  0x1f   : > { %536 = vmatpush.msra.mxu2 %v2423_v15  ;;  %566 = vmatpush.msra.mxu3 %v2431_v16  ;;  %v2450_v30 = vld [vmem:[%s3697_s2 + $0xd8] sm:$0xff]  ;;  %v2449_v31 = vld [vmem:[%s3697_s2 + $0xd0] sm:$0xff]  ;;  %v2465_v32 = vld [vmem:[%s3699_s4 + $0x28] sm:$0xff]  ;;  %s2744_s24 = sshra.s32 %s2319_s22, 4  ;;  %s2745_s24 = int_to_ptr.hbm [resolvable:$true] %s2744_s24 }
  0x20   : > { %598 = vmatpush.msrb.mxu0 %v2437_v13  ;;  %2428 = vmatmul.msk.f32.vlgmr.msra.gmra.mxu2 %vm454_vm0, %v2960_v9  ;;  %v2442_v33 = vld [vmem:[%s3697_s2 + $0xa8] sm:$0xff]  ;;  %v2464_v35 = vld [vmem:[%s3699_s4 + $0x20] sm:$0xff]  ;;  %v2482_v37 = vld [vmem:[%s3699_s4 + $0x58] sm:$0xff]  ;;  %s2746_s27 = scalar_lea.hbm %s2745_s24, 8  ;;  %p2751_p1 = scmp.lt.s32.totalorder %s2745_s24, %s3705_s10 }
  0x21   : > { %567 = vmatpush.msra.mxu3 %v2430_v19  ;;  %629 = vmatpush.msrb.mxu1 %v2444_v28  ;;  %v2448_v34 = vld [vmem:[%s3697_s2 + $0xc8] sm:$0xff]  ;;  %v2441_v36 = vld [vmem:[%s3697_s2 + $0xa0] sm:$0xff]  ;;  %v2481_v39 = vld [vmem:[%s3699_s4 + $0x50] sm:$0xff]  ;;  %p2747_p12 = scmp.ne.s32.totalorder %s2745_s24, %s2746_s27  ;;  %p2752_p2 = scmp.lt.s32.totalorder %s2750_s30, %s2746_s27 }
  0x22   : > { %599 = vmatpush.msrb.mxu0 %v2436_v17  ;;  %661 = vmatpush.msrb.mxu2 %v2450_v30  ;;  %v2447_v38 = vld [vmem:[%s3697_s2 + $0xc0] sm:$0xff]  ;;  %v2480_v40 = vld [vmem:[%s3699_s4 + $0x48] sm:$0xff]  ;;  %v2497_v42 = vld [vmem:[%s3699_s4 + $0x78] sm:$0xff] }
  0x23   : > { %568 = vmatpush.msra.mxu3 %v2429_v21  ;;  %630 = vmatpush.msrb.mxu1 %v2443_v29  ;;  %v2479_v41 = vld [vmem:[%s3699_s4 + $0x40] sm:$0xff]  ;;  %v2496_v43 = vld [vmem:[%s3699_s4 + $0x70] sm:$0xff]  ;;  %v2495_v44 = vld [vmem:[%s3699_s4 + $0x68] sm:$0xff]  ;;  %p2748_p13 = pnand %p2747_p12, %p2908_p4  ;;  %p2753_p3 = por %p2752_p2, %p2751_p1 }
  0x24   : > { %600 = vmatpush.msrb.mxu0 %v2435_v18  ;;  %2434 = vmatmul.msk.f32.vlgmr.msra.gmra.mxu3 %vm454_vm0, %v2960_v9  ;;  %v2494_v45 = vld [vmem:[%s3699_s4 + $0x60] sm:$0xff]  ;;  %v2512_v46 = vld [vmem:[%s3699_s4 + $0x98] sm:$0xff]  ;;  %v2511_v47 = vld [vmem:[%s3699_s4 + $0x90] sm:$0xff] }
  0x25   : > { %2440 = vmatmul.msk.f32.vlgmr.msrb.gmra.mxu0 %vm454_vm0, %v2960_v9  ;;  %662 = vmatpush.msrb.mxu2 %v2449_v31  ;;  %v2510_v48 = vld [vmem:[%s3699_s4 + $0x88] sm:$0xff]  ;;  %v2509_v49 = vld [vmem:[%s3699_s4 + $0x80] sm:$0xff]  ;;  %v2527_v50 = vld [vmem:[%s3699_s4 + $0xb8] sm:$0xff]  ;;  %p2749_p0 = pneg %p2748_p13 }
  0x26   : > { %728 = vmatpush.msra.mxu0 %v707_v20  ;;  %631 = vmatpush.msrb.mxu1 %v2442_v33  ;;  %v2526_v51 = vld [vmem:[%s3699_s4 + $0xb0] sm:$0xff]  ;;  %v2525_v52 = vld [vmem:[%s3699_s4 + $0xa8] sm:$0xff]  ;;  %v2524_v53 = vld [vmem:[%s3699_s4 + $0xa0] sm:$0xff] }
  0x27   : > { %663 = vmatpush.msrb.mxu2 %v2448_v34  ;;  %v2542_v54 = vld [vmem:[%s3699_s4 + $0xd8] sm:$0xff]  ;;  %v2541_v55 = vld [vmem:[%s3699_s4 + $0xd0] sm:$0xff]  ;;  %v2540_v56 = vld [vmem:[%s3699_s4 + $0xc8] sm:$0xff]  ;;  %p2754_p5 = pnand %p2753_p3, %p2749_p0 }
  0x28   : > { %729 = vmatpush.msra.mxu0 %v706_v22  ;;  %632 = vmatpush.msrb.mxu1 %v2441_v36  ;;  %v2539_v57 = vld [vmem:[%s3699_s4 + $0xc0] sm:$0xff]  ;;  %v2456_v3 = vld [vmem:[%s3697_s2 + $0xf8] sm:$0xff]  ;;  %v2455_v5 = vld [vmem:[%s3697_s2 + $0xf0] sm:$0xff] }
  0x29   : > { %2446 = vmatmul.msk.f32.vlgmr.msrb.gmra.mxu1 %vm454_vm0, %v2960_v9  ;;  %664 = vmatpush.msrb.mxu2 %v2447_v38  ;;  %v2657_v58 = vld [vmem:[%s3698_s3] ss:$0 sm:$0xff]  ;;  %v2660_v60 = vld [vmem:[%s3698_s3 + $0x1] ss:$0 sm:$0xff]  ;;  %v2658_v0 = vld [vmem:[%s3698_s3 + $0x4] ss:$0 sm:$0xff] }
  0x2a   : > { %730 = vmatpush.msra.mxu0 %v705_v23  ;;  %2452 = vmatmul.msk.f32.vlgmr.msrb.gmra.mxu2 %vm454_vm0, %v2960_v9  ;;  %v2662_v2 = vld [vmem:[%s3698_s3 + $0x2] ss:$0 sm:$0xff]  ;;  %v2454_v7 = vld [vmem:[%s3697_s2 + $0xe8] sm:$0xff]  ;;  %v2664_v10 = vld [vmem:[%s3698_s3 + $0x3] ss:$0 sm:$0xff] }
  0x2b   : > { %693 = vmatpush.msrb.mxu3 %v2456_v3  ;;  %v2659_v11 = vld [vmem:[%s3700_s5] ss:$0 sm:$0xff]  ;;  %v2557_v17 = vld [vmem:[%s3699_s4 + $0xf8] sm:$0xff]  ;;  %v2661_v19 = vld [vmem:[%s3700_s5 + $0x1] ss:$0 sm:$0xff] }
  0x2c   : > { %731 = vmatpush.msra.mxu0 %v704_v24  ;;  %v2453_v12 = vld [vmem:[%s3697_s2 + $0xe0] sm:$0xff]  ;;  %v2556_v20 = vld [vmem:[%s3699_s4 + $0xf0] sm:$0xff]  ;;  %v737_v3 = vld [vmem:[%s3701_s6 + $0x8] sm:$0xff] }
  0x2d   : > { %2459 = vmatmul.msk.f32.vlgmr.msra.gmra.mxu0 %vm454_vm0, %v3022_v25  ;;  %694 = vmatpush.msrb.mxu3 %v2455_v5  ;;  %v2667_v21 = vld [vmem:[%s3698_s3 + $0x5] ss:$0 sm:$0xff]  ;;  %v2663_v29 = vld [vmem:[%s3700_s5 + $0x2] ss:$0 sm:$0xff]  ;;  %v2669_v30 = vld [vmem:[%s3698_s3 + $0x6] ss:$0 sm:$0xff] }
  0x2e   : > { %872 = vmatpush.msrb.mxu0 %v2467_v26  ;;  %v2554_v22 = vld [vmem:[%s3699_s4 + $0xe0] sm:$0xff] }
  0x2f   : > { %695 = vmatpush.msrb.mxu3 %v2454_v7  ;;  %v2665_v36 = vld [vmem:[%s3700_s5 + $0x3] ss:$0 sm:$0xff] }
  0x30   : > { %873 = vmatpush.msrb.mxu0 %v2466_v27 }
  0x31   : > { %696 = vmatpush.msrb.mxu3 %v2453_v12 }
  0x32   : > { %874 = vmatpush.msrb.mxu0 %v2465_v32  ;;  %2458 = vmatmul.msk.f32.vlgmr.msrb.gmra.mxu3 %vm454_vm0, %v2960_v9  ;;  %v2555_v9 = vld [vmem:[%s3699_s4 + $0xe8] sm:$0xff] }
  0x34   : > { %875 = vmatpush.msrb.mxu0 %v2464_v35 }
  0x35   : > { %2469 = vmatmul.msk.f32.vlgmr.msrb.gmra.mxu0 %vm454_vm0, %v3022_v25 }
  0x36   : > { %1019 = vmatpush.msra.mxu0 %v2482_v37 }
  0x38   : > { %1020 = vmatpush.msra.mxu0 %v2481_v39 }
  0x3a   : > { %1021 = vmatpush.msra.mxu0 %v2480_v40  ;;  %v2666_v40 = vld [vmem:[%s3700_s5 + $0x4] ss:$0 sm:$0xff] }
  0x3c   : > { %1022 = vmatpush.msra.mxu0 %v2479_v41 }
  0x3d   : > { %2484 = vmatmul.msk.f32.vlgmr.msra.gmra.mxu0 %vm454_vm0, %v3022_v25 }
  0x3e   : > { %1166 = vmatpush.msrb.mxu0 %v2497_v42 }
  0x40   : > { %1167 = vmatpush.msrb.mxu0 %v2496_v43 }
  0x42   : > { %1168 = vmatpush.msrb.mxu0 %v2495_v44  ;;  %v2668_v44 = vld [vmem:[%s3700_s5 + $0x5] ss:$0 sm:$0xff] }
  0x44   : > { %1169 = vmatpush.msrb.mxu0 %v2494_v45 }
  0x45   : > { %2499 = vmatmul.msk.f32.vlgmr.msrb.gmra.mxu0 %vm454_vm0, %v3022_v25 }
  0x46   : > { %1313 = vmatpush.msra.mxu0 %v2512_v46 }
  0x48   : > { %1314 = vmatpush.msra.mxu0 %v2511_v47 }
  0x4a   : > { %1315 = vmatpush.msra.mxu0 %v2510_v48  ;;  %v2670_v48 = vld [vmem:[%s3700_s5 + $0x6] ss:$0 sm:$0xff] }
  0x4c   : > { %1316 = vmatpush.msra.mxu0 %v2509_v49 }
  0x4d   : > { %2514 = vmatmul.msk.f32.vlgmr.msra.gmra.mxu0 %vm454_vm0, %v3022_v25 }
  0x4e   : > { %1460 = vmatpush.msrb.mxu0 %v2527_v50 }
  0x50   : > { %1461 = vmatpush.msrb.mxu0 %v2526_v51 }
  0x52   : > { %1462 = vmatpush.msrb.mxu0 %v2525_v52  ;;  %v2671_v52 = vld [vmem:[%s3698_s3 + $0x7] ss:$0 sm:$0xff] }
  0x54   : > { %1463 = vmatpush.msrb.mxu0 %v2524_v53 }
  0x55   : > { %2529 = vmatmul.msk.f32.vlgmr.msrb.gmra.mxu0 %vm454_vm0, %v3022_v25 }
  0x56   : > { %1607 = vmatpush.msra.mxu0 %v2542_v54 }
  0x58   : > { %1608 = vmatpush.msra.mxu0 %v2541_v55  ;;  %v2672_v55 = vld [vmem:[%s3700_s5 + $0x7] ss:$0 sm:$0xff] }
  0x5a   : > { %1609 = vmatpush.msra.mxu0 %v2540_v56 }
  0x5c   : > { %1610 = vmatpush.msra.mxu0 %v2539_v57 }
  0x5d   : > { %2544 = vmatmul.msk.f32.vlgmr.msra.gmra.mxu0 %vm454_vm0, %v3022_v25 }
  0x5e   : > { %1754 = vmatpush.msrb.mxu0 %v2557_v17  ;;  %v2470_v17 = vld [vmem:[%s3701_s6 + $0x20] sm:$0xff] }
  0x60   : > { %1755 = vmatpush.msrb.mxu0 %v2556_v20 }
  0x62   : > { %1756 = vmatpush.msrb.mxu0 %v2555_v9 }
  0x64   : > { %1757 = vmatpush.msrb.mxu0 %v2554_v22 }
  0x65   : > { %2559 = vmatmul.msk.f32.vlgmr.msrb.gmra.mxu0 %vm454_vm0, %v3022_v25 }
  0x9a   : > { %v475_v59 = vpop.f32.mrf.mxu0 }
  0x9b   : > { %v476_v61 = vadd.f32 %v2657_v58, %v475_v59  ;;  %v506_v62 = vpop.f32.mrf.mxu1 }
  0x9c   : > { %v507_v63 = vadd.f32 %v2660_v60, %v506_v62 }
  0x9d   : > { %478 = vst.msk [vmem:[#allocation2] sm:$0xff] %vm436_vm1, %v476_v61 }
  0x9e   : > { %510 = vst.msk [vmem:[#allocation2 + $0x8] sm:$0xff] %vm436_vm1, %v507_v63 }
  0xa2   : > { %v602_v1 = vpop.f32.mrf.mxu0 }
  0xa3   : > { %v603_v4 = vadd.f32 %v2658_v0, %v602_v1  ;;  %v538_v6 = vpop.f32.mrf.mxu2  ;;  %v739_v0 = vld [vmem:[%s3701_s6 + $0x18] sm:$0xff]  ;;  %v738_v1 = vld [vmem:[%s3701_s6 + $0x10] sm:$0xff] }
  0xa4   : > { %v539_v8 = vadd.f32 %v2662_v2, %v538_v6  ;;  %v764_v18 = vld [vmem:[#allocation2] sm:$0xff]  ;;  %756 = vmatpush.msra.mxu1 %v739_v0  ;;  %v2810_v2 = vmov -inf  }
  0xa5   : > { %606 = vst.msk [vmem:[#allocation2 + $0x20] sm:$0xff] %vm436_vm1, %v603_v4  ;;  %v911_v28 = vld [vmem:[#allocation2 + $0x8] sm:$0xff]  ;;  %v736_v4 = vld [vmem:[%s3701_s6] sm:$0xff] }
  0xa6   : > { %542 = vst.msk [vmem:[#allocation2 + $0x10] sm:$0xff] %vm436_vm1, %v539_v8  ;;  %v634_v24 = vpop.f32.mrf.mxu1  ;;  %757 = vmatpush.msra.mxu1 %v738_v1  ;;  %v2502_v1 = vld [vmem:[%s3701_s6 + $0x70] sm:$0xff] }
  0xa7   : > { %v570_v13 = vpop.f32.mrf.mxu3  ;;  %v635_v27 = vadd.f32 %v2667_v21, %v634_v24  ;;  %420 = vst.msk [vmem:[#allocation4] sm:$0xff] %vm419_vm3, %v2810_v2 }
  0xa8   : > { %v571_v15 = vadd.f32 %v2664_v10, %v570_v13  ;;  %421 = vst.msk [vmem:[#allocation4 + $0x8] sm:$0xff] %vm419_vm3, %v2810_v2  ;;  %758 = vmatpush.msra.mxu1 %v737_v3  ;;  %v2473_v13 = vld [vmem:[%s3701_s6 + $0x38] sm:$0xff]  ;;  %v2500_v3 = vld [vmem:[%s3701_s6 + $0x60] sm:$0xff] }
  0xa9   : > { %638 = vst.msk [vmem:[#allocation2 + $0x28] sm:$0xff] %vm436_vm1, %v635_v27 }
  0xaa   : > { %v733_v14 = vpop.f32.mrf.mxu0  ;;  %574 = vst.msk [vmem:[#allocation2 + $0x18] sm:$0xff] %vm436_vm1, %v571_v15  ;;  %759 = vmatpush.msra.mxu1 %v736_v4  ;;  %v2472_v15 = vld [vmem:[%s3701_s6 + $0x30] sm:$0xff]  ;;  %v2518_v4 = vld [vmem:[%s3701_s6 + $0x98] sm:$0xff] }
  0xab   : > { %v734_v16 = vadd.f32 %v2659_v11, %v733_v14  ;;  %422 = vst.msk [vmem:[#allocation4 + $0x10] sm:$0xff] %vm419_vm3, %v2810_v2  ;;  %2460 = vmatmul.msk.f32.vlgmr.msra.gmra.mxu1 %vm454_vm0, %v3022_v25  ;;  %v2811_v14 = vmov 0  }
  0xac   : > { %v1352_v43 = vld [vmem:[#allocation2 + $0x20] sm:$0xff]  ;;  %423 = vst.msk [vmem:[#allocation4 + $0x18] sm:$0xff] %vm419_vm3, %v2810_v2  ;;  %902 = vmatpush.msrb.mxu1 %v2473_v13  ;;  %2654 = vset.pattern.permute.xlu0 %v2811_v14  ;;  %v2533_v13 = vld [vmem:[%s3701_s6 + $0xb8] sm:$0xff] }
  0xad   : > { %2461 = vmatpush.xpose.msk.msra.mxu2 %vm436_vm1, %v734_v16  ;;  %v666_v32 = vpop.f32.mrf.mxu2  ;;  %v1058_v35 = vld [vmem:[#allocation2 + $0x10] sm:$0xff]  ;;  %424 = vst.msk [vmem:[#allocation4 + $0x20] sm:$0xff] %vm419_vm3, %v2810_v2  ;;  %2655 = vset.pattern.permute.xlu2 %v2811_v14  ;;  %v2471_v16 = vld [vmem:[%s3701_s6 + $0x28] sm:$0xff] }
  0xae   : > { %v667_v34 = vadd.f32 %v2669_v30, %v666_v32  ;;  %425 = vst.msk [vmem:[#allocation4 + $0x28] sm:$0xff] %vm419_vm3, %v2810_v2  ;;  %903 = vmatpush.msrb.mxu1 %v2472_v15  ;;  %2656 = vset.pattern.permute.xlu1 %v2811_v14  ;;  %v2532_v14 = vld [vmem:[%s3701_s6 + $0xb0] sm:$0xff]  ;;  %v2531_v15 = vld [vmem:[%s3701_s6 + $0xa8] sm:$0xff] }
  0xaf   : > { %426 = vst.msk [vmem:[#allocation4 + $0x30] sm:$0xff] %vm419_vm3, %v2810_v2 }
  0xb0   : > { %2462 = vmatmul.msk.f32.vlgmr.msra.gmra.mxu2 %vm436_vm1, %v764_v18  ;;  %670 = vst.msk [vmem:[#allocation2 + $0x30] sm:$0xff] %vm436_vm1, %v667_v34  ;;  %v1499_v47 = vld [vmem:[#allocation2 + $0x28] sm:$0xff]  ;;  %904 = vmatpush.msrb.mxu1 %v2471_v16  ;;  %v2812_v18 = vmov 0.0   ;;  %v2530_v16 = vld [vmem:[%s3701_s6 + $0xa0] sm:$0xff] }
  0xb1   : > { %v1205_v39 = vld [vmem:[#allocation2 + $0x18] sm:$0xff]  ;;  %427 = vst.msk [vmem:[#allocation4 + $0x38] sm:$0xff] %vm419_vm3, %v2810_v2  ;;  %v2501_v2 = vld [vmem:[%s3701_s6 + $0x68] sm:$0xff] }
  0xb2   : > { %v877_v23 = vpop.f32.mrf.mxu0  ;;  %437 = vst.msk [vmem:[#allocation3] sm:$0xff] %vm436_vm1, %v2812_v18  ;;  %905 = vmatpush.msrb.mxu1 %v2470_v17 }
  0xb3   : > { %v878_v26 = vadd.f32 %v2661_v19, %v877_v23  ;;  %428 = vst.msk [vmem:[#allocation5] sm:$0xff] %vm419_vm3, %v2812_v18  ;;  %2475 = vmatmul.msk.f32.vlgmr.msrb.gmra.mxu1 %vm454_vm0, %v3022_v25  ;;  %v792_v19 = vld [vmem:[#allocation4] sm:$0xff]  ;;  %v939_v23 = vld [vmem:[#allocation4 + $0x8] sm:$0xff] }
  0xb4   : > { %429 = vst.msk [vmem:[#allocation5 + $0x8] sm:$0xff] %vm419_vm3, %v2812_v18  ;;  %v3424_v17 = vld [vmem:[#allocation4 + $0x20] sm:$0xff] }
  0xb5   : > { %2476 = vmatpush.xpose.msk.msrb.mxu2 %vm436_vm1, %v878_v26  ;;  %v698_v53 = vpop.f32.mrf.mxu3  ;;  %430 = vst.msk [vmem:[#allocation5 + $0x10] sm:$0xff] %vm419_vm3, %v2812_v18 }
  0xb6   : > { %v699_v54 = vadd.f32 %v2671_v52, %v698_v53  ;;  %431 = vst.msk [vmem:[#allocation5 + $0x18] sm:$0xff] %vm419_vm3, %v2812_v18 }
  0xb7   : > { %v1646_v51 = vld [vmem:[#allocation2 + $0x30] sm:$0xff]  ;;  %432 = vst.msk [vmem:[#allocation5 + $0x20] sm:$0xff] %vm419_vm3, %v2812_v18 }
  0xb8   : > { %2477 = vmatmul.msk.f32.vlgmr.msrb.gmra.mxu2 %vm436_vm1, %v911_v28  ;;  %702 = vst.msk [vmem:[#allocation2 + $0x38] sm:$0xff] %vm436_vm1, %v699_v54  ;;  %v3319_v28 = vld [vmem:[#allocation4 + $0x18] sm:$0xff] }
  0xb9   : > { %433 = vst.msk [vmem:[#allocation5 + $0x28] sm:$0xff] %vm419_vm3, %v2812_v18 }
  0xba   : > { %v1024_v31 = vpop.f32.mrf.mxu0  ;;  %434 = vst.msk [vmem:[#allocation5 + $0x30] sm:$0xff] %vm419_vm3, %v2812_v18 }
  0xbb   : > { %v1025_v33 = vadd.f32 %v2663_v29, %v1024_v31  ;;  %435 = vst.msk [vmem:[#allocation5 + $0x38] sm:$0xff] %vm419_vm3, %v2812_v18 }
  0xbc   : > { %438 = vst.msk [vmem:[#allocation3 + $0x8] sm:$0xff] %vm436_vm1, %v2812_v18 }
  0xbd   : > { %2491 = vmatpush.xpose.msk.msra.mxu2 %vm436_vm1, %v1025_v33  ;;  %439 = vst.msk [vmem:[#allocation3 + $0x10] sm:$0xff] %vm436_vm1, %v2812_v18 }
  0xbe   : > { %440 = vst.msk [vmem:[#allocation3 + $0x18] sm:$0xff] %vm436_vm1, %v2812_v18 }
  0xbf   : > { %v1793_v60 = vld [vmem:[#allocation2 + $0x38] sm:$0xff]  ;;  %441 = vst.msk [vmem:[#allocation3 + $0x20] sm:$0xff] %vm436_vm1, %v2812_v18 }
  0xc0   : > { %2492 = vmatmul.msk.f32.vlgmr.msra.gmra.mxu2 %vm436_vm1, %v1058_v35  ;;  %442 = vst.msk [vmem:[#allocation3 + $0x28] sm:$0xff] %vm436_vm1, %v2812_v18 }
  0xc1   : > { %443 = vst.msk [vmem:[#allocation3 + $0x30] sm:$0xff] %vm436_vm1, %v2812_v18 }
  0xc2   : > { %v1171_v37 = vpop.f32.mrf.mxu0  ;;  %444 = vst.msk [vmem:[#allocation3 + $0x38] sm:$0xff] %vm436_vm1, %v2812_v18  ;;  %v2548_v18 = vld [vmem:[%s3701_s6 + $0xd8] sm:$0xff] }
  0xc3   : > { %v1172_v38 = vadd.f32 %v2665_v36, %v1171_v37 }
  0xc5   : > { %2506 = vmatpush.xpose.msk.msrb.mxu2 %vm436_vm1, %v1172_v38  ;;  %v3337_v38 = vld [vmem:[#allocation4 + $0x28] sm:$0xff] }
  0xc8   : > { %2507 = vmatmul.msk.f32.vlgmr.msrb.gmra.mxu2 %vm436_vm1, %v1205_v39 }
  0xca   : > { %v1318_v41 = vpop.f32.mrf.mxu0 }
  0xcb   : > { %v1319_v42 = vadd.f32 %v2666_v40, %v1318_v41 }
  0xcd   : > { %2521 = vmatpush.xpose.msk.msra.mxu2 %vm436_vm1, %v1319_v42  ;;  %v3347_v42 = vld [vmem:[#allocation4 + $0x30] sm:$0xff] }
  0xd0   : > { %2522 = vmatmul.msk.f32.vlgmr.msra.gmra.mxu2 %vm436_vm1, %v1352_v43 }
  0xd2   : > { %v1465_v45 = vpop.f32.mrf.mxu0 }
  0xd3   : > { %v1466_v46 = vadd.f32 %v2668_v44, %v1465_v45  ;;  %v2673_v44 = vld [vmem:[%s3702_s7] ss:$0 sm:$0xff] }
  0xd5   : > { %2536 = vmatpush.xpose.msk.msrb.mxu2 %vm436_vm1, %v1466_v46 }
  0xd8   : > { %2537 = vmatmul.msk.f32.vlgmr.msrb.gmra.mxu2 %vm436_vm1, %v1499_v47 }
  0xda   : > { %v1612_v49 = vpop.f32.mrf.mxu0 }
  0xdb   : > { %v1613_v50 = vadd.f32 %v2670_v48, %v1612_v49  ;;  %v2674_v48 = vld [vmem:[%s3702_s7 + $0x1] ss:$0 sm:$0xff] }
  0xdd   : > { %2551 = vmatpush.xpose.msk.msra.mxu2 %vm436_vm1, %v1613_v50 }
  0xe0   : > { %2552 = vmatmul.msk.f32.vlgmr.msra.gmra.mxu2 %vm436_vm1, %v1646_v51  ;;  %v2488_v51 = vld [vmem:[%s3701_s6 + $0x58] sm:$0xff] }
  0xe1   : > { %1049 = vmatpush.msra.mxu1 %v2488_v51 }
  0xe2   : > { %v1759_v56 = vpop.f32.mrf.mxu0 }
  0xe3   : > { %v1760_v58 = vadd.f32 %v2672_v55, %v1759_v56 }
  0xe5   : > { %2566 = vmatpush.xpose.msk.msrb.mxu2 %vm436_vm1, %v1760_v58 }
  0xe8   : > { %2567 = vmatmul.msk.f32.vlgmr.msrb.gmra.mxu2 %vm436_vm1, %v1793_v60  ;;  %v2487_v60 = vld [vmem:[%s3701_s6 + $0x50] sm:$0xff] }
  0xe9   : > { %1050 = vmatpush.msra.mxu1 %v2487_v60 }
 0x128   : > { %v761_v45 = vpop.f32.mrf.mxu1 }
 0x129   : > { %v762_v47 = vadd.f32 %v2673_v44, %v761_v45  ;;  %v2560_v45 = vld [vmem:[%s3701_s6 + $0xe0] sm:$0xff] }
 0x12b   : > { %842 = vmatpush.msra.mxu3 %v762_v47 }
 0x130   : > { %v907_v49 = vpop.f32.mrf.mxu1 }
 0x131   : > { %v908_v50 = vadd.f32 %v2674_v48, %v907_v49 }
 0x133   : > { %v3236_v57 = vpop.f32.mrf.mxu2  ;;  %989 = vmatpush.msrb.mxu3 %v908_v50 }
 0x134   : > { %v794_v59 = vsel %vm793_vm2, %v3236_v57, -inf }
 0x135   : > { %795 = vmax.xlane.f32.xlu0 %v794_v59 }
 0x13b   : > { %v3242_v61 = vpop.f32.mrf.mxu2 }
 0x13c   : > { %v940_v62 = vsel %vm793_vm2, %v3242_v61, -inf }
 0x13d   : > { %941 = vmax.xlane.f32.xlu2 %v940_v62  ;;  %v2503_v62 = vld [vmem:[%s3701_s6 + $0x78] sm:$0xff] }
 0x143   : > { %v3246_v63 = vpop.f32.mrf.mxu2 }
 0x144   : > { %v1087_v35 = vsel %vm793_vm2, %v3246_v63, -inf }
 0x14b   : > { %v3265_v5 = vpop.f32.mrf.mxu2 }
 0x14c   : > { %v1234_v6 = vsel %vm793_vm2, %v3265_v5, -inf }
 0x14d   : > { %1235 = vmax.xlane.f32.xlu1 %v1234_v6  ;;  %v2517_v6 = vld [vmem:[%s3701_s6 + $0x90] sm:$0xff] }
 0x153   : > { %v3274_v7 = vpop.f32.mrf.mxu2 }
 0x154   : > { %v1381_v32 = vsel %vm793_vm2, %v3274_v7, -inf }
 0x15b   : > { %v3276_v8 = vpop.f32.mrf.mxu2 }
 0x15c   : > { %v1528_v10 = vsel %vm793_vm2, %v3276_v8, -inf }
 0x15d   : > { %1529 = vmax.xlane.f32.xlu1 %v1528_v10  ;;  %v2516_v10 = vld [vmem:[%s3701_s6 + $0x88] sm:$0xff] }
 0x163   : > { %v3280_v11 = vpop.f32.mrf.mxu2 }
 0x164   : > { %v1675_v12 = vsel %vm793_vm2, %v3280_v11, -inf }
 0x165   : > { %1676 = vmax.xlane.f32.xlu1 %v1675_v12  ;;  %v2515_v12 = vld [vmem:[%s3701_s6 + $0x80] sm:$0xff] }
 0x16b   : > { %v3330_v33 = vpop.f32.mrf.mxu2 }
 0x16c   : > { %v1822_v34 = vsel %vm793_vm2, %v3330_v33, -inf }
 0x1a8   : > { %v796_v20 = vpop.xlane.xlu0 %795 }
 0x1a9   : > { %v797_v9 = vmax.f32 %v792_v19, %v796_v20  ;;  %v2547_v20 = vld [vmem:[%s3701_s6 + $0xd0] sm:$0xff] }
 0x1ab   : > { %v798_v21 = vsub.f32 %v792_v19, %v797_v9  ;;  %849 = vst.msk [vmem:[#allocation4] sm:$0xff] %vm419_vm3, %v797_v9  ;;  %803 = vperm.xlu0 %2654, %v797_v9  }
 0x1ad   : > { %v799_v22 = vmul.f32 1.442695, %v798_v21  ;;  %v2546_v21 = vld [vmem:[%s3701_s6 + $0xc8] sm:$0xff] }
 0x1af   : > { %2682 = vpow2.f32 %v799_v22 }
 0x1b0   : > { %v942_v24 = vpop.xlane.xlu2 %941 }
 0x1b1   : > { %v943_v26 = vmax.f32 %v939_v23, %v942_v24  ;;  %v1086_v24 = vld [vmem:[#allocation4 + $0x10] sm:$0xff] }
 0x1b3   : > { %996 = vst.msk [vmem:[#allocation4 + $0x8] sm:$0xff] %vm419_vm3, %v943_v26  ;;  %949 = vperm.xlu2 %2655, %v943_v26   ;;  %v944_v36 = vsub.f32 %v939_v23, %v943_v26  ;;  %v2545_v23 = vld [vmem:[%s3701_s6 + $0xc0] sm:$0xff]  ;;  %v2563_v26 = vld [vmem:[%s3701_s6 + $0xf8] sm:$0xff] }
 0x1b5   : > { %v3316_v27 = vpop.eup %2682  ;;  %v945_v37 = vmul.f32 1.442695, %v944_v36 }
 0x1b6   : > { %820 = vperm.xlu1 %2656, %v3316_v27  }
 0x1b7   : > { %2684 = vpow2.f32 %v945_v37 }
 0x1bd   : > { %v3339_v40 = vpop.eup %2684 }
 0x1c0   : > { %v1236_v29 = vpop.xlane.xlu1 %1235 }
 0x1c1   : > { %v3322_v30 = vmax.f32 %v3319_v28, %v1236_v29  ;;  %v3451_v29 = vld [vmem:[#allocation4 + $0x38] sm:$0xff] }
 0x1c3   : > { %v1238_v31 = vsub.f32 %v3319_v28, %v3322_v30  ;;  %1290 = vst.msk [vmem:[#allocation4 + $0x18] sm:$0xff] %vm419_vm3, %v3322_v30  ;;  %v2677_v28 = vld [vmem:[%s3702_s7 + $0x4] ss:$0 sm:$0xff] }
 0x1d0   : > { %v1530_v39 = vpop.xlane.xlu1 %1529 }
 0x1d1   : > { %v3342_v41 = vmax.f32 %v3337_v38, %v1530_v39  ;;  %v2561_v39 = vld [vmem:[%s3701_s6 + $0xe8] sm:$0xff] }
 0x1d3   : > { %1584 = vst.msk [vmem:[#allocation4 + $0x28] sm:$0xff] %vm419_vm3, %v3342_v41 }
 0x1d5   : > { %1382 = vmax.xlane.f32.xlu0 %v1381_v32 }
 0x1d8   : > { %v1677_v43 = vpop.xlane.xlu1 %1676 }
 0x1d9   : > { %v3353_v46 = vmax.f32 %v3347_v42, %v1677_v43 }
 0x1db   : > { %1731 = vst.msk [vmem:[#allocation4 + $0x30] sm:$0xff] %vm419_vm3, %v3353_v46 }
 0x1dc   : > { %1088 = vmax.xlane.f32.xlu2 %v1087_v35 }
 0x1dd   : > { %1823 = vmax.xlane.f32.xlu0 %v1822_v34  ;;  %v2562_v34 = vld [vmem:[%s3701_s6 + $0xf0] sm:$0xff] }
 0x1f1   : > { %1243 = vperm.xlu0 %2654, %v3322_v30  }
 0x1f4   : > { %967 = vperm.xlu2 %2655, %v3339_v40  }
 0x20d   : > { %v950_v54 = vpop.permute.xlu2 %949 }
 0x20e   : > { %v952_v56 = vsub.f32 %v3242_v61, %v950_v54  ;;  %v2485_v61 = vld [vmem:[%s3701_s6 + $0x40] sm:$0xff] }
 0x210   : > { %v953_v58 = vmul.f32 1.442695, %v952_v56 }
 0x21d   : > { %v804_v52 = vpop.permute.xlu0 %803 }
 0x21e   : > { %v806_v53 = vsub.f32 %v3236_v57, %v804_v52  ;;  %v2486_v57 = vld [vmem:[%s3701_s6 + $0x48] sm:$0xff] }
 0x21f   : > { %1051 = vmatpush.msra.mxu1 %v2486_v57 }
 0x220   : > { %v807_v55 = vmul.f32 1.442695, %v806_v53 }
 0x221   : > { %1052 = vmatpush.msra.mxu1 %v2485_v61 }
 0x222   : > { %2686 = vpow2.f32 %v807_v55  ;;  %2490 = vmatmul.msk.f32.vlgmr.msra.gmra.mxu1 %vm454_vm0, %v3022_v25 }
 0x223   : > { %2688 = vpow2.f32 %v953_v58  ;;  %1196 = vmatpush.msrb.mxu1 %v2503_v62  ;;  %v817_v58 = vld [vmem:[#allocation3] sm:$0xff] }
 0x224   : > { %v2675_v62 = vld [vmem:[%s3702_s7 + $0x2] ss:$0 sm:$0xff] }
 0x225   : > { %1197 = vmatpush.msrb.mxu1 %v2502_v1 }
 0x227   : > { %1198 = vmatpush.msrb.mxu1 %v2501_v2 }
 0x228   : > { %v3365_v59 = vpop.eup %2686  ;;  %v821_v60 = vpop.permute.xlu1 %820 }
 0x229   : > { %2463 = vmatmul.msk.f32.vlgmr.msra.gmra.mxu3 %vm793_vm2, %v3365_v59  ;;  %v3383_v0 = vpop.eup %2688  ;;  %1199 = vmatpush.msrb.mxu1 %v2500_v3  ;;  %v811_v54 = vsel %vm793_vm2, %v3365_v59, 0.0  ;;  %v823_v61 = vmul.f32 %v821_v60, %v817_v58  ;;  %v2680_v58 = vld [vmem:[%s3702_s7 + $0x7] ss:$0 sm:$0xff] }
 0x22a   : > { %2505 = vmatmul.msk.f32.vlgmr.msrb.gmra.mxu1 %vm454_vm0, %v3022_v25  ;;  %v958_v53 = vsel %vm793_vm2, %v3383_v0, 0.0 }
 0x22b   : > { %1343 = vmatpush.msra.mxu1 %v2518_v4  ;;  %v964_v4 = vld [vmem:[#allocation3 + $0x8] sm:$0xff] }
 0x22d   : > { %1344 = vmatpush.msra.mxu1 %v2517_v6 }
 0x22f   : > { %1345 = vmatpush.msra.mxu1 %v2516_v10  ;;  %v2676_v10 = vld [vmem:[%s3702_s7 + $0x3] ss:$0 sm:$0xff] }
 0x231   : > { %2478 = vmatmul.msk.f32.vlgmr.msrb.gmra.mxu3 %vm793_vm2, %v3383_v0  ;;  %1346 = vmatpush.msra.mxu1 %v2515_v12 }
 0x232   : > { %2520 = vmatmul.msk.f32.vlgmr.msra.gmra.mxu1 %vm454_vm0, %v3022_v25 }
 0x233   : > { %1490 = vmatpush.msrb.mxu1 %v2533_v13 }
 0x235   : > { %1491 = vmatpush.msrb.mxu1 %v2532_v14 }
 0x237   : > { %1492 = vmatpush.msrb.mxu1 %v2531_v15 }
 0x239   : > { %1493 = vmatpush.msrb.mxu1 %v2530_v16  ;;  %v1239_v16 = vmul.f32 1.442695, %v1238_v31 }
 0x23a   : > { %2535 = vmatmul.msk.f32.vlgmr.msrb.gmra.mxu1 %vm454_vm0, %v3022_v25 }
 0x23b   : > { %1637 = vmatpush.msra.mxu1 %v2548_v18  ;;  %v1679_v18 = vsub.f32 %v3347_v42, %v3353_v46 }
 0x23d   : > { %1638 = vmatpush.msra.mxu1 %v2547_v20 }
 0x23f   : > { %1639 = vmatpush.msra.mxu1 %v2546_v21 }
 0x241   : > { %1640 = vmatpush.msra.mxu1 %v2545_v23 }
 0x242   : > { %2550 = vmatmul.msk.f32.vlgmr.msra.gmra.mxu1 %vm454_vm0, %v3022_v25 }
 0x243   : > { %1784 = vmatpush.msrb.mxu1 %v2563_v26 }
 0x245   : > { %1785 = vmatpush.msrb.mxu1 %v2562_v34 }
 0x247   : > { %1786 = vmatpush.msrb.mxu1 %v2561_v39 }
 0x248   : > { %v1383_v19 = vpop.xlane.xlu0 %1382 }
 0x249   : > { %v3435_v9 = vmax.f32 %v3424_v17, %v1383_v19  ;;  %1787 = vmatpush.msrb.mxu1 %v2560_v45 }
 0x24a   : > { %2565 = vmatmul.msk.f32.vlgmr.msrb.gmra.mxu1 %vm454_vm0, %v3022_v25 }
 0x24b   : > { %v1385_v22 = vsub.f32 %v3424_v17, %v3435_v9  ;;  %1437 = vst.msk [vmem:[#allocation4 + $0x20] sm:$0xff] %vm419_vm3, %v3435_v9  ;;  %1390 = vperm.xlu2 %2655, %v3435_v9  }
 0x24f   : > { %v1089_v32 = vpop.xlane.xlu2 %1088 }
 0x250   : > { %v1090_v35 = vmax.f32 %v1086_v24, %v1089_v32  ;;  %v1824_v36 = vpop.xlane.xlu0 %1823  ;;  %v1680_v32 = vmul.f32 1.442695, %v1679_v18 }
 0x251   : > { %v3459_v37 = vmax.f32 %v3451_v29, %v1824_v36 }
 0x252   : > { %1143 = vst.msk [vmem:[#allocation4 + $0x10] sm:$0xff] %vm419_vm3, %v1090_v35  ;;  %1096 = vperm.xlu1 %2656, %v1090_v35   ;;  %v1091_v43 = vsub.f32 %v1086_v24, %v1090_v35 }
 0x253   : > { %v1826_v44 = vsub.f32 %v3451_v29, %v3459_v37  ;;  %1878 = vst.msk [vmem:[#allocation4 + $0x38] sm:$0xff] %vm419_vm3, %v3459_v37  ;;  %1537 = vperm.xlu2 %2655, %v3342_v41   ;;  %1831 = vperm.xlu0 %2654, %v3459_v37  }
 0x254   : > { %v1092_v47 = vmul.f32 1.442695, %v1091_v43 }
 0x256   : > { %2690 = vpow2.f32 %v1092_v47 }
 0x257   : > { %v968_v55 = vpop.permute.xlu2 %967 }
 0x258   : > { %v970_v6 = vmul.f32 %v968_v55, %v964_v4  ;;  %v1386_v55 = vmul.f32 1.442695, %v1385_v22  ;;  %v1532_v22 = vsub.f32 %v3337_v38, %v3342_v41  ;;  %v809_v4 = vld [vmem:[#allocation5] sm:$0xff] }
 0x25a   : > { %1684 = vperm.xlu1 %2656, %v3353_v46  }
 0x25c   : > { %v3477_v48 = vpop.eup %2690 }
 0x262   : > { %1114 = vperm.xlu1 %2656, %v3477_v48  }
 0x263   : > { %v1244_v49 = vpop.permute.xlu0 %1243 }
 0x264   : > { %v1246_v50 = vsub.f32 %v3265_v5, %v1244_v49 }
 0x266   : > { %v1247_v51 = vmul.f32 1.442695, %v1246_v50 }
 0x268   : > { %2692 = vpow2.f32 %v1247_v51 }
 0x26e   : > { %v3481_v52 = vpop.eup %2692 }
 0x26f   : > { %v1252_v25 = vsel %vm793_vm2, %v3481_v52, 0.0 }
 0x27c   : > { %959 = vadd.xlane.f32.xlu2 %v958_v53 }
 0x27d   : > { %1253 = vadd.xlane.f32.xlu0 %v1252_v25 }
 0x28c   : > { %812 = vadd.xlane.f32.xlu1 %v811_v54  ;;  %v2679_v54 = vld [vmem:[%s3702_s7 + $0x6] ss:$0 sm:$0xff] }
 0x29f   : > { %v1054_v1 = vpop.f32.mrf.mxu1 }
 0x2a0   : > { %v1055_v3 = vadd.f32 %v2675_v62, %v1054_v1  ;;  %v1250_v62 = vld [vmem:[#allocation5 + $0x18] sm:$0xff]  ;;  %v1533_v1 = vmul.f32 1.442695, %v1532_v22 }
 0x2a2   : > { %1136 = vmatpush.msra.mxu3 %v1055_v3 }
 0x2a5   : > { %v1391_v56 = vpop.permute.xlu2 %1390 }
 0x2a6   : > { %v1393_v5 = vsub.f32 %v3274_v7, %v1391_v56 }
 0x2a7   : > { %v1201_v13 = vpop.f32.mrf.mxu1 }
 0x2a8   : > { %v1394_v57 = vmul.f32 1.442695, %v1393_v5  ;;  %v1202_v15 = vadd.f32 %v2676_v10, %v1201_v13 }
 0x2aa   : > { %2694 = vpow2.f32 %v1394_v57  ;;  %1283 = vmatpush.msrb.mxu3 %v1202_v15  ;;  %v1827_v57 = vmul.f32 1.442695, %v1826_v44 }
 0x2ab   : > { %2696 = vpow2.f32 %v1239_v16 }
 0x2ac   : > { %v844_v0 = vpop.f32.mrf.mxu3 }
 0x2ad   : > { %v847_v2 = vadd.f32 %v844_v0, %v823_v61  ;;  %v1538_v31 = vpop.permute.xlu2 %1537  ;;  %v956_v61 = vld [vmem:[#allocation5 + $0x8] sm:$0xff] }
 0x2ae   : > { %v957_v29 = vmul.f32 %v3339_v40, %v956_v61  ;;  %v1691_v61 = vld [vmem:[#allocation5 + $0x30] sm:$0xff] }
 0x2af   : > { %848 = vst.msk [vmem:[#allocation3] sm:$0xff] %vm436_vm1, %v847_v2  ;;  %v1348_v20 = vpop.f32.mrf.mxu1 }
 0x2b0   : > { %v2695_v59 = vpop.eup %2694 }
 0x2b1   : > { %v1399_v7 = vsel %vm793_vm2, %v2695_v59, 0.0  ;;  %v2697_v30 = vpop.eup %2696 }
 0x2b2   : > { %1400 = vadd.xlane.f32.xlu1 %v1399_v7  ;;  %v1251_v44 = vmul.f32 %v2697_v30, %v1250_v62  ;;  %v810_v7 = vmul.f32 %v3316_v27, %v809_v4 }
 0x2b4   : > { %v991_v12 = vpop.f32.mrf.mxu3 }
 0x2b5   : > { %v994_v14 = vadd.f32 %v991_v12, %v970_v6 }
 0x2b7   : > { %995 = vst.msk [vmem:[#allocation3 + $0x8] sm:$0xff] %vm436_vm1, %v994_v14  ;;  %v1495_v35 = vpop.f32.mrf.mxu1 }
 0x2bf   : > { %v1642_v25 = vpop.f32.mrf.mxu1 }
 0x2c0   : > { %v1643_v5 = vadd.f32 %v2679_v54, %v1642_v25 }
 0x2c4   : > { %v1097_v19 = vpop.permute.xlu1 %1096 }
 0x2c5   : > { %v1099_v21 = vsub.f32 %v3246_v63, %v1097_v19  ;;  %v1832_v23 = vpop.permute.xlu0 %1831  ;;  %v1349_v63 = vadd.f32 %v2677_v28, %v1348_v20 }
 0x2c6   : > { %v1834_v24 = vsub.f32 %v3330_v33, %v1832_v23  ;;  %v1540_v33 = vsub.f32 %v3276_v8, %v1538_v31 }
 0x2c7   : > { %v1100_v26 = vmul.f32 1.442695, %v1099_v21  ;;  %v1789_v60 = vpop.f32.mrf.mxu1 }
 0x2c8   : > { %v1835_v34 = vmul.f32 1.442695, %v1834_v24  ;;  %v1541_v50 = vmul.f32 1.442695, %v1540_v33  ;;  %v1790_v9 = vadd.f32 %v2680_v58, %v1789_v60 }
 0x2c9   : > { %2698 = vpow2.f32 %v1100_v26 }
 0x2ca   : > { %2700 = vpow2.f32 %v1835_v34 }
 0x2cb   : > { %1261 = vperm.xlu1 %2656, %v2697_v30   ;;  %2702 = vpow2.f32 %v1680_v32 }
 0x2cc   : > { %v1685_v42 = vpop.permute.xlu1 %1684 }
 0x2cd   : > { %v1687_v46 = vsub.f32 %v3280_v11, %v1685_v42  ;;  %v2678_v11 = vld [vmem:[%s3702_s7 + $0x5] ss:$0 sm:$0xff] }
 0x2ce   : > { %v1496_v8 = vadd.f32 %v2678_v11, %v1495_v35 }
 0x2cf   : > { %v2699_v36 = vpop.eup %2698  ;;  %v1688_v39 = vmul.f32 1.442695, %v1687_v46 }
 0x2d0   : > { %v2701_v43 = vpop.eup %2700  ;;  %2493 = vmatmul.msk.f32.vlgmr.msra.gmra.mxu3 %vm793_vm2, %v2699_v36  ;;  %v1105_v45 = vsel %vm793_vm2, %v2699_v36, 0.0 }
 0x2d1   : > { %2704 = vpow2.f32 %v1688_v39  ;;  %1106 = vadd.xlane.f32.xlu2 %v1105_v45  ;;  %v1840_v47 = vsel %vm793_vm2, %v2701_v43, 0.0  ;;  %1430 = vmatpush.msra.mxu3 %v1349_v63  ;;  %v3517_v49 = vpop.eup %2702 }
 0x2d2   : > { %1841 = vadd.xlane.f32.xlu0 %v1840_v47  ;;  %2706 = vpow2.f32 %v1541_v50  ;;  %v1692_v62 = vmul.f32 %v3517_v49, %v1691_v61 }
 0x2d3   : > { %1702 = vperm.xlu1 %2656, %v3517_v49   ;;  %2708 = vpow2.f32 %v1386_v55 }
 0x2d4   : > { %2710 = vpow2.f32 %v1827_v57  ;;  %v3550_v38 = vpop.permute.xlu1 %1114 }
 0x2d5   : > { %2712 = vpow2.f32 %v1533_v1 }
 0x2d7   : > { %v2705_v51 = vpop.eup %2704 }
 0x2d8   : > { %2508 = vmatmul.msk.f32.vlgmr.msrb.gmra.mxu3 %vm793_vm2, %v3481_v52  ;;  %v1693_v53 = vsel %vm793_vm2, %v2705_v51, 0.0  ;;  %v2707_v56 = vpop.eup %2706 }
 0x2d9   : > { %1694 = vadd.xlane.f32.xlu2 %v1693_v53  ;;  %1577 = vmatpush.msrb.mxu3 %v1496_v8  ;;  %v1546_v52 = vsel %vm793_vm2, %v2707_v56, 0.0  ;;  %v3537_v17 = vpop.eup %2708 }
 0x2da   : > { %v3543_v0 = vpop.eup %2710 }
 0x2db   : > { %v3552_v41 = vpop.eup %2712 }
 0x2e0   : > { %2523 = vmatmul.msk.f32.vlgmr.msra.gmra.mxu3 %vm793_vm2, %v2695_v59 }
 0x2e1   : > { %1547 = vadd.xlane.f32.xlu2 %v1546_v52  ;;  %1724 = vmatpush.msra.mxu3 %v1643_v5  ;;  %v1838_v5 = vld [vmem:[#allocation5 + $0x38] sm:$0xff] }
 0x2e2   : > { %v1839_v60 = vmul.f32 %v3543_v0, %v1838_v5 }
 0x2e6   : > { %1408 = vperm.xlu0 %2654, %v3537_v17  }
 0x2e8   : > { %2538 = vmatmul.msk.f32.vlgmr.msrb.gmra.mxu3 %vm793_vm2, %v2707_v56  ;;  %v1103_v56 = vld [vmem:[#allocation5 + $0x10] sm:$0xff] }
 0x2e9   : > { %1871 = vmatpush.msrb.mxu3 %v1790_v9  ;;  %v1104_v52 = vmul.f32 %v3477_v48, %v1103_v56 }
 0x2ee   : > { %1849 = vperm.xlu0 %2654, %v3543_v0  }
 0x2ef   : > { %v960_v37 = vpop.xlane.xlu2 %959 }
 0x2f0   : > { %v961_v2 = vadd.f32 %v960_v37, %v957_v29  ;;  %v1254_v3 = vpop.xlane.xlu0 %1253  ;;  %2553 = vmatmul.msk.f32.vlgmr.msra.gmra.mxu3 %vm793_vm2, %v2705_v51  ;;  %v1397_v51 = vld [vmem:[#allocation5 + $0x20] sm:$0xff]  ;;  %v1111_v37 = vld [vmem:[#allocation3 + $0x10] sm:$0xff] }
 0x2f1   : > { %v1255_v59 = vadd.f32 %v1254_v3, %v1251_v44  ;;  %v1398_v25 = vmul.f32 %v3537_v17, %v1397_v51  ;;  %v1544_v44 = vld [vmem:[#allocation5 + $0x28] sm:$0xff]  ;;  %v1117_v3 = vmul.f32 %v3550_v38, %v1111_v37  ;;  %v1905_v38 = vld [vmem:[%s3703_s8] sm:$0xf] }
 0x2f2   : > { %962 = vst.msk [vmem:[#allocation5 + $0x8] sm:$0xff] %vm419_vm3, %v961_v2 }
 0x2f3   : > { %1256 = vst.msk [vmem:[#allocation5 + $0x18] sm:$0xff] %vm419_vm3, %v1255_v59 }
 0x2f8   : > { %2568 = vmatmul.msk.f32.vlgmr.msrb.gmra.mxu3 %vm793_vm2, %v2701_v43  ;;  %vm1934_vm2 = vcmask 1043456  }
 0x2f9   : > { %1555 = vperm.xlu2 %2655, %v3552_v41   ;;  %v1906_v40 = vld [vmem:[#allocation5 + $0x8] sm:$0xff]  ;;  %2572 = vmatpush.msk.msra.mxu1 %vm1934_vm2, %v1905_v38 }
 0x2fa   : > { %2714 = vrcp.f32 %v1906_v40  ;;  %v2036_v15 = vld [vmem:[#allocation5 + $0x18] sm:$0xff]  ;;  %v1918_v16 = vand.u32 2147483648, %v1906_v40  ;;  %v1916_v19 = vand.u32 2147483647, %v1906_v40  ;;  %vm1912_vm5 = vweird.f32 %v1906_v40 }
 0x2fb   : > { %2716 = vrcp.f32 %v2036_v15  ;;  %v2048_v47 = vand.u32 2147483648, %v2036_v15  ;;  %vm2042_vm13 = vweird.f32 %v2036_v15  ;;  %v2046_v11 = vand.u32 2147483647, %v2036_v15 }
 0x2fc   : > { %v1919_v21 = vor.u32 1.1754944e-38, %v1918_v16  ;;  %vm1917_vm7 = vcmp.eq.f32.partialorder %v1916_v19, 8.507059e+37 }
 0x2fd   : > { %v2049_v8 = vor.u32 1.1754944e-38, %v2048_v47  ;;  %vm2047_vm15 = vcmp.eq.f32.partialorder %v2046_v11, 8.507059e+37  ;;  %v2569_v11 = vld [vmem:[%s3703_s8 + $0x4] sm:$0xf] }
 0x2fe   : > { %2570 = vmatpush.msk.msra.mxu0 %vm1934_vm2, %v2569_v11  ;;  %v2586_v11 = vld [vmem:[%s3703_s8 + $0x18] sm:$0xf] }
 0x2ff   : > { %v813_v6 = vpop.xlane.xlu1 %812 }
 0x300   : > { %v2715_v10 = vpop.eup %2714  ;;  %v814_v12 = vadd.f32 %v813_v6, %v810_v7 }
 0x301   : > { %v1908_v13 = vmul.f32 %v2715_v10, %v1906_v40  ;;  %vm1913_vm4 = vweird.f32 %v2715_v10  ;;  %v2717_v26 = vpop.eup %2716  ;;  %v1545_v40 = vmul.f32 %v3552_v41, %v1544_v44 }
 0x302   : > { %816 = vst.msk [vmem:[#allocation5] sm:$0xff] %vm419_vm3, %v814_v12  ;;  %vm1914_vm6 = vmor %vm1912_vm5, %vm1913_vm4  ;;  %v2038_v32 = vmul.f32 %v2717_v26, %v2036_v15  ;;  %vm2043_vm12 = vweird.f32 %v2717_v26  ;;  %v1258_v15 = vld [vmem:[#allocation3 + $0x18] sm:$0xff] }
 0x303   : > { %v1909_v14 = vsub.f32 1.0, %v1908_v13  ;;  %vm2044_vm14 = vmor %vm2042_vm13, %vm2043_vm12 }
 0x304   : > { %v2039_v31 = vsub.f32 1.0, %v2038_v32 }
 0x305   : > { %v1910_v18 = vmul.f32 %v2715_v10, %v1909_v14 }
 0x306   : > { %v2040_v36 = vmul.f32 %v2717_v26, %v2039_v31 }
 0x307   : > { %v1911_v20 = vadd.f32 %v2715_v10, %v1910_v18 }
 0x308   : > { %v2041_v45 = vadd.f32 %v2717_v26, %v2040_v36 }
 0x309   : > { %v1915_v23 = vsel %vm1914_vm6, %v2715_v10, %v1911_v20  ;;  %v1882_v27 = vld [vmem:[#allocation5] sm:$0xff] }
 0x30a   : > { %v1920_v24 = vsel %vm1917_vm7, %v1919_v21, %v1915_v23  ;;  %2718 = vrcp.f32 %v1882_v27  ;;  %v1894_v42 = vand.u32 2147483648, %v1882_v27  ;;  %v1892_v63 = vand.u32 2147483647, %v1882_v27 }
 0x30b   : > { %1925 = vperm.xlu0 %2654, %v1920_v24   ;;  %vm1888_vm9 = vweird.f32 %v1882_v27  ;;  %v2045_v50 = vsel %vm2044_vm14, %v2717_v26, %v2041_v45 }
 0x30c   : > { %v1895_v33 = vor.u32 1.1754944e-38, %v1894_v42  ;;  %vm1893_vm11 = vcmp.eq.f32.partialorder %v1892_v63, 8.507059e+37  ;;  %v2050_v53 = vsel %vm2047_vm15, %v2049_v8, %v2045_v50  ;;  %v2577_v50 = vld [vmem:[%s3703_s8 + $0xc] sm:$0xf]  ;;  %v1405_v8 = vld [vmem:[#allocation3 + $0x20] sm:$0xff] }
 0x30d   : > { %2578 = vmatpush.msk.msra.mxu3 %vm1934_vm2, %v2577_v50 }
 0x310   : > { %v2719_v34 = vpop.eup %2718 }
 0x311   : > { %v1884_v28 = vmul.f32 %v2719_v34, %v1882_v27  ;;  %vm1889_vm8 = vweird.f32 %v2719_v34 }
 0x312   : > { %vm1890_vm10 = vmor %vm1888_vm9, %vm1889_vm8 }
 0x313   : > { %v1885_v30 = vsub.f32 1.0, %v1884_v28 }
 0x315   : > { %v1886_v46 = vmul.f32 %v2719_v34, %v1885_v30 }
 0x317   : > { %v1887_v35 = vadd.f32 %v2719_v34, %v1886_v46 }
 0x319   : > { %v1891_v39 = vsel %vm1890_vm10, %v2719_v34, %v1887_v35 }
 0x31a   : > { %v1896_v43 = vsel %vm1893_vm11, %v1895_v33, %v1891_v39  ;;  %v2589_v33 = vld [vmem:[%s3703_s8 + $0x1c] sm:$0xf] }
 0x31b   : > { %1901 = vperm.xlu2 %2655, %v1896_v43   ;;  %2590 = vmatpush.msk.msrb.mxu3 %vm1934_vm2, %v2589_v33 }
 0x323   : > { %2055 = vperm.xlu2 %2655, %v2050_v53  }
 0x325   : > { %v1401_v54 = vpop.xlane.xlu1 %1400 }
 0x326   : > { %v1402_v55 = vadd.f32 %v1401_v54, %v1398_v25 }
 0x328   : > { %1403 = vst.msk [vmem:[#allocation5 + $0x20] sm:$0xff] %vm419_vm3, %v1402_v55 }
 0x32f   : > { %v3564_v17 = vld [vmem:[#allocation5 + $0x20] sm:$0xff] }
 0x330   : > { %2720 = vrcp.f32 %v3564_v17  ;;  %vm2094_vm12 = vweird.f32 %v3564_v17 }
 0x336   : > { %v3569_v2 = vpop.eup %2720 }
 0x337   : > { %v2090_v7 = vmul.f32 %v3569_v2, %v3564_v17  ;;  %vm2095_vm11 = vweird.f32 %v3569_v2 }
 0x338   : > { %vm3614_vm14 = vmor %vm2094_vm12, %vm2095_vm11 }
 0x339   : > { %v2091_v20 = vsub.f32 1.0, %v2090_v7 }
 0x33b   : > { %v2092_v46 = vmul.f32 %v3569_v2, %v2091_v20 }
 0x33d   : > { %v1262_v41 = vpop.permute.xlu1 %1261  ;;  %v2093_v56 = vadd.f32 %v3569_v2, %v2092_v46 }
 0x33e   : > { %v1264_v24 = vmul.f32 %v1262_v41, %v1258_v15  ;;  %v1699_v41 = vld [vmem:[#allocation3 + $0x30] sm:$0xff] }
 0x344   : > { %v1107_v58 = vpop.xlane.xlu2 %1106 }
 0x345   : > { %v1108_v57 = vadd.f32 %v1107_v58, %v1104_v52  ;;  %v1842_v9 = vpop.xlane.xlu0 %1841  ;;  %v2098_v52 = vand.u32 2147483647, %v3564_v17  ;;  %v2100_v58 = vand.u32 2147483648, %v3564_v17 }
 0x346   : > { %v1843_v22 = vadd.f32 %v1842_v9, %v1839_v60 }
 0x347   : > { %1109 = vst.msk [vmem:[#allocation5 + $0x10] sm:$0xff] %vm419_vm3, %v1108_v57  ;;  %v2101_v37 = vor.u32 1.1754944e-38, %v2100_v58 }
 0x348   : > { %1844 = vst.msk [vmem:[#allocation5 + $0x38] sm:$0xff] %vm419_vm3, %v1843_v22 }
 0x34c   : > { %v1695_v1 = vpop.xlane.xlu2 %1694 }
 0x34d   : > { %v1696_v29 = vadd.f32 %v1695_v1, %v1692_v62 }
 0x34e   : > { %v1984_v48 = vld [vmem:[#allocation5 + $0x10] sm:$0xff] }
 0x34f   : > { %1697 = vst.msk [vmem:[#allocation5 + $0x30] sm:$0xff] %vm419_vm3, %v1696_v29  ;;  %2722 = vrcp.f32 %v1984_v48  ;;  %v2244_v0 = vld [vmem:[#allocation5 + $0x38] sm:$0xff]  ;;  %v1994_v19 = vand.u32 2147483647, %v1984_v48  ;;  %v1996_v21 = vand.u32 2147483648, %v1984_v48  ;;  %vm1990_vm6 = vweird.f32 %v1984_v48 }
 0x350   : > { %2724 = vrcp.f32 %v2244_v0  ;;  %v2256_v27 = vand.u32 2147483648, %v2244_v0  ;;  %v2254_v28 = vand.u32 2147483647, %v2244_v0  ;;  %vm2250_vm7 = vweird.f32 %v2244_v0 }
 0x351   : > { %vm1995_vm8 = vcmp.eq.f32.partialorder %v1994_v19, 8.507059e+37  ;;  %v1997_v35 = vor.u32 1.1754944e-38, %v1996_v21  ;;  %v2097_v29 = vsel %vm3614_vm14, %v3569_v2, %v2093_v56 }
 0x352   : > { %v2257_v39 = vor.u32 1.1754944e-38, %v2256_v27  ;;  %vm2255_vm10 = vcmp.eq.f32.partialorder %v2254_v28, 8.507059e+37  ;;  %v1898_v27 = vld [vmem:[#allocation3] sm:$0xff] }
 0x353   : > { %v1138_v59 = vpop.f32.mrf.mxu3 }
 0x354   : > { %v1141_v49 = vadd.f32 %v1138_v59, %v1117_v3  ;;  %v1548_v4 = vpop.xlane.xlu2 %1547  ;;  %v1552_v3 = vld [vmem:[#allocation3 + $0x28] sm:$0xff] }
 0x355   : > { %v2723_v6 = vpop.eup %2722  ;;  %v1549_v10 = vadd.f32 %v1548_v4, %v1545_v40 }
 0x356   : > { %v2725_v12 = vpop.eup %2724  ;;  %1142 = vst.msk [vmem:[#allocation3 + $0x10] sm:$0xff] %vm436_vm1, %v1141_v49  ;;  %v1986_v13 = vmul.f32 %v2723_v6, %v1984_v48  ;;  %v3576_v14 = vld [vmem:[#allocation5 + $0x30] sm:$0xff]  ;;  %vm1991_vm4 = vweird.f32 %v2723_v6 }
 0x357   : > { %1550 = vst.msk [vmem:[#allocation5 + $0x28] sm:$0xff] %vm419_vm3, %v1549_v10  ;;  %v2246_v16 = vmul.f32 %v2725_v12, %v2244_v0  ;;  %2726 = vrcp.f32 %v3576_v14  ;;  %vm2251_vm5 = vweird.f32 %v2725_v12  ;;  %vm3584_vm3 = vmor %vm1990_vm6, %vm1991_vm4  ;;  %v2204_v5 = vand.u32 2147483648, %v3576_v14 }
 0x358   : > { %v1987_v18 = vsub.f32 1.0, %v1986_v13  ;;  %vm3589_vm9 = vmor %vm2250_vm7, %vm2251_vm5  ;;  %v1409_v51 = vpop.permute.xlu0 %1408  ;;  %v2202_v9 = vand.u32 2147483647, %v3576_v14  ;;  %vm2198_vm15 = vweird.f32 %v3576_v14  ;;  %vm2099_vm6 = vcmp.eq.f32.partialorder %v2098_v52, 8.507059e+37 }
 0x359   : > { %v2247_v23 = vsub.f32 1.0, %v2246_v16  ;;  %v1411_v60 = vmul.f32 %v1409_v51, %v1405_v8  ;;  %v2205_v17 = vor.u32 1.1754944e-38, %v2204_v5  ;;  %v2102_v49 = vsel %vm2099_vm6, %v2101_v37, %v2097_v29  ;;  %v1703_v16 = vpop.permute.xlu1 %1702  ;;  %v2583_v8 = vld [vmem:[%s3703_s8 + $0x14] sm:$0xf] }
 0x35a   : > { %v1988_v26 = vmul.f32 %v2723_v6, %v1987_v18  ;;  %vm2203_vm5 = vcmp.eq.f32.partialorder %v2202_v9, 8.507059e+37  ;;  %v1705_v19 = vmul.f32 %v1703_v16, %v1699_v41  ;;  %2584 = vmatpush.msk.msrb.mxu1 %vm1934_vm2, %v2583_v8 }
 0x35b   : > { %v1285_v32 = vpop.f32.mrf.mxu3  ;;  %v2248_v34 = vmul.f32 %v2725_v12, %v2247_v23 }
 0x35c   : > { %v1288_v30 = vadd.f32 %v1285_v32, %v1264_v24  ;;  %v1989_v31 = vadd.f32 %v2723_v6, %v1988_v26  ;;  %v1556_v59 = vpop.permute.xlu2 %1555  ;;  %v1846_v32 = vld [vmem:[#allocation3 + $0x38] sm:$0xff] }
 0x35d   : > { %v2727_v63 = vpop.eup %2726  ;;  %v2249_v36 = vadd.f32 %v2725_v12, %v2248_v34  ;;  %v2000_v51 = vld [vmem:[#allocation3 + $0x10] sm:$0xff] }
 0x35e   : > { %1289 = vst.msk [vmem:[#allocation3 + $0x18] sm:$0xff] %vm436_vm1, %v1288_v30  ;;  %v1993_v43 = vsel %vm3584_vm3, %v2723_v6, %v1989_v31  ;;  %v2194_v45 = vmul.f32 %v2727_v63, %v3576_v14  ;;  %v2140_v47 = vld [vmem:[#allocation5 + $0x28] sm:$0xff]  ;;  %vm2199_vm13 = vweird.f32 %v2727_v63  ;;  %v1558_v6 = vmul.f32 %v1556_v59, %v1552_v3 }
 0x35f   : > { %v1998_v53 = vsel %vm1995_vm8, %v1997_v35, %v1993_v43  ;;  %v2253_v25 = vsel %vm3589_vm9, %v2725_v12, %v2249_v36  ;;  %2728 = vrcp.f32 %v2140_v47  ;;  %vm2200_vm4 = vmor %vm2198_vm15, %vm2199_vm13  ;;  %v2152_v7 = vand.u32 2147483648, %v2140_v47  ;;  %v1922_v31 = vld [vmem:[#allocation3 + $0x8] sm:$0xff] }
 0x360   : > { %2003 = vperm.xlu1 %2656, %v1998_v53   ;;  %v2258_v54 = vsel %vm2255_vm10, %v2257_v39, %v2253_v25  ;;  %v2195_v55 = vsub.f32 1.0, %v2194_v45  ;;  %v2150_v10 = vand.u32 2147483647, %v2140_v47  ;;  %vm2146_vm7 = vweird.f32 %v2140_v47  ;;  %v1850_v23 = vpop.permute.xlu0 %1849  ;;  %v2574_v39 = vld [vmem:[%s3703_s8 + $0x8] sm:$0xf] }
 0x361   : > { %2263 = vperm.xlu2 %2655, %v2258_v54   ;;  %v2153_v38 = vor.u32 1.1754944e-38, %v2152_v7  ;;  %v1852_v34 = vmul.f32 %v1850_v23, %v1846_v32  ;;  %2575 = vmatpush.msk.msra.mxu2 %vm1934_vm2, %v2574_v39 }
 0x362   : > { %v2196_v57 = vmul.f32 %v2727_v63, %v2195_v55  ;;  %vm2151_vm9 = vcmp.eq.f32.partialorder %v2150_v10, 8.507059e+37 }
 0x363   : > { %v1432_v22 = vpop.f32.mrf.mxu3  ;;  %2587 = vmatpush.msk.msrb.mxu2 %vm1934_vm2, %v2586_v11 }
 0x364   : > { %v1435_v62 = vadd.f32 %v1432_v22, %v1411_v60  ;;  %v2197_v1 = vadd.f32 %v2727_v63, %v2196_v57 }
 0x365   : > { %v2729_v48 = vpop.eup %2728  ;;  %v2052_v46 = vld [vmem:[#allocation3 + $0x18] sm:$0xff] }
 0x366   : > { %1436 = vst.msk [vmem:[#allocation3 + $0x20] sm:$0xff] %vm436_vm1, %v1435_v62  ;;  %v2201_v0 = vsel %vm2200_vm4, %v2727_v63, %v2197_v1  ;;  %v2142_v44 = vmul.f32 %v2729_v48, %v2140_v47  ;;  %vm2147_vm3 = vweird.f32 %v2729_v48  ;;  %v2580_v47 = vld [vmem:[%s3703_s8 + $0x10] sm:$0xf] }
 0x367   : > { %v2206_v40 = vsel %vm2203_vm5, %v2205_v17, %v2201_v0  ;;  %vm2148_vm8 = vmor %vm2146_vm7, %vm2147_vm3  ;;  %2581 = vmatpush.msk.msrb.mxu0 %vm1934_vm2, %v2580_v47 }
 0x368   : > { %2211 = vperm.xlu0 %2654, %v2206_v40   ;;  %2107 = vperm.xlu1 %2656, %v2102_v49   ;;  %v2143_v4 = vsub.f32 1.0, %v2142_v44  ;;  %v2681_v49 = vld [vmem:[%s3704_s9] ss:$0 sm:$0xff] }
 0x36a   : > { %v2144_v2 = vmul.f32 %v2729_v48, %v2143_v4 }
 0x36b   : > { %v1579_v12 = vpop.f32.mrf.mxu3 }
 0x36c   : > { %v1582_v13 = vadd.f32 %v1579_v12, %v1558_v6  ;;  %v2145_v14 = vadd.f32 %v2729_v48, %v2144_v2 }
 0x36d   : > { %v2104_v56 = vld [vmem:[#allocation3 + $0x20] sm:$0xff] }
 0x36e   : > { %1583 = vst.msk [vmem:[#allocation3 + $0x28] sm:$0xff] %vm436_vm1, %v1582_v13  ;;  %v2149_v15 = vsel %vm2148_vm8, %v2729_v48, %v2145_v14 }
 0x36f   : > { %v2154_v18 = vsel %vm2151_vm9, %v2153_v38, %v2149_v15 }
 0x370   : > { %2159 = vperm.xlu0 %2654, %v2154_v18  }
 0x373   : > { %v1726_v20 = vpop.f32.mrf.mxu3 }
 0x374   : > { %v1729_v21 = vadd.f32 %v1726_v20, %v1705_v19 }
 0x375   : > { %v1902_v24 = vpop.permute.xlu2 %1901  ;;  %v2156_v57 = vld [vmem:[#allocation3 + $0x28] sm:$0xff] }
 0x376   : > { %1730 = vst.msk [vmem:[#allocation3 + $0x30] sm:$0xff] %vm436_vm1, %v1729_v21  ;;  %v1904_v26 = vmul.f32 %v1902_v24, %v1898_v27 }
 0x378   : > { %2573 = vmatmul.msk.f32.vlgmr.msra.gmra.mxu1 %vm436_vm1, %v1904_v26 }
 0x37b   : > { %v1873_v28 = vpop.f32.mrf.mxu3 }
 0x37c   : > { %v1876_v30 = vadd.f32 %v1873_v28, %v1852_v34 }
 0x37d   : > { %v1926_v42 = vpop.permute.xlu0 %1925  ;;  %v2056_v63 = vpop.permute.xlu2 %2055  ;;  %v2208_v55 = vld [vmem:[#allocation3 + $0x30] sm:$0xff] }
 0x37e   : > { %1877 = vst.msk [vmem:[#allocation3 + $0x38] sm:$0xff] %vm436_vm1, %v1876_v30  ;;  %v1928_v35 = vmul.f32 %v1926_v42, %v1922_v31  ;;  %v2058_v36 = vmul.f32 %v2056_v63, %v2052_v46 }
 0x380   : > { %2571 = vmatmul.msk.f32.vlgmr.msra.gmra.mxu0 %vm436_vm1, %v1928_v35  ;;  %2579 = vmatmul.msk.f32.vlgmr.msra.gmra.mxu3 %vm436_vm1, %v2058_v36 }
 0x385   : > { %v2260_v43 = vld [vmem:[#allocation3 + $0x38] sm:$0xff] }
 0x3bb   : > { %v2264_v45 = vpop.permute.xlu2 %2263 }
 0x3bc   : > { %v2266_v50 = vmul.f32 %v2264_v45, %v2260_v43 }
 0x3be   : > { %2591 = vmatmul.msk.f32.vlgmr.msrb.gmra.mxu3 %vm436_vm1, %v2266_v50 }
 0x3d2   : > { %v2004_v53 = vpop.permute.xlu1 %2003 }
 0x3d3   : > { %v2006_v25 = vmul.f32 %v2004_v53, %v2000_v51 }
 0x3d5   : > { %2576 = vmatmul.msk.f32.vlgmr.msra.gmra.mxu2 %vm436_vm1, %v2006_v25 }
 0x3da   : > { %v2212_v54 = vpop.permute.xlu0 %2211  ;;  %v2108_v5 = vpop.permute.xlu1 %2107 }
 0x3db   : > { %v2214_v52 = vmul.f32 %v2212_v54, %v2208_v55  ;;  %v2110_v58 = vmul.f32 %v2108_v5, %v2104_v56 }
 0x3dd   : > { %2582 = vmatmul.msk.f32.vlgmr.msrb.gmra.mxu0 %vm436_vm1, %v2110_v58  ;;  %2588 = vmatmul.msk.f32.vlgmr.msrb.gmra.mxu2 %vm436_vm1, %v2214_v52 }
 0x3e2   : > { %v2160_v60 = vpop.permute.xlu0 %2159 }
 0x3e3   : > { %v2162_v9 = vmul.f32 %v2160_v60, %v2156_v57 }
 0x3e5   : > { %2585 = vmatmul.msk.f32.vlgmr.msrb.gmra.mxu1 %vm436_vm1, %v2162_v9 }
 0x3f5   : > { %v1981_v61 = vpop.f32.mrf.mxu1 }
 0x3fd   : > { %v1955_v22 = vpop.f32.mrf.mxu0 }
 0x3fe   : > { %v1982_v62 = vadd.f32 %v1981_v61, %v1955_v22 }
 0x403   : > { %v2084_v48 = vpop.f32.mrf.mxu3 }
 0x441   : > { %v2292_v4 = vpop.f32.mrf.mxu3 }
 0x458   : > { %v2032_v1 = vpop.f32.mrf.mxu2 }
 0x459   : > { %v2035_v29 = vadd.f32 %v2032_v1, %v1982_v62 }
 0x45a   : > { %v2136_v37 = vpop.f32.mrf.mxu0 }
 0x45b   : > { %v2087_v17 = vadd.f32 %v2084_v48, %v2035_v29 }
 0x45d   : > { %v2139_v0 = vadd.f32 %v2136_v37, %v2087_v17 }
 0x460   : > { %v2240_v59 = vpop.f32.mrf.mxu2 }
 0x462   : > { %v2188_v44 = vpop.f32.mrf.mxu1 }
 0x463   : > { %v2191_v3 = vadd.f32 %v2188_v44, %v2139_v0 }
 0x465   : > { %v2243_v40 = vadd.f32 %v2240_v59, %v2191_v3 }
 0x467   : > { %v2295_v7 = vadd.f32 %v2292_v4, %v2243_v40 }
 0x469   : > { %v2300_v6 = vadd.f32 %v2681_v49, %v2295_v7 }
 0x46b   : > { %2301 = vst.msk [vmem:[%s400_s26] sm:$0xff] %vm454_vm0, %v2300_v6 }
 0x46c   : > { %2757 = shalt.err (!%p2754_p5)
}
 0x46d   : > { %2596 = dma.vmem_to_hbm [thread:$0]  (%p2908_p4), %s2317_s20, 128, %s2319_s22, %s2303_s16  }
 0x46e PF: > { %p2602_p6 = scmp.ge.s32.totalorder %s2808_s18, 2  ;;  %s2330_s29 = sand.u32 1, %s2788_s13  }
 0x46f   : > { %s2331_s11 = scalar_lea.sflag [#allocation7], %s2330_s29 }
 0x470   : > { %p2599_p7 = pnand %p2602_p6, %p2915_p8 }
 0x472   : > { %p2600_p9 = pneg %p2599_p7 }
 0x474   : > { %2783 = dma.done.wait (%p2600_p9), %s2331_s11, 128  }
 0x475   : > { %2785 = vsyncadd (%p2600_p9), %s2331_s11, 4294967168  ;;  %s23_s18 = sadd.s32 1, %s2808_s18   ;;  %s3719_s12 = sld [smem:[#allocation11_spill]] }
 0x476   : > { %p20_p10 = scmp.ge.s32.totalorder %s23_s18, 4   ;;  %s3720_s16 = sld [smem:[#allocation9_spill]] }
 0x477   : > { %s3721_s17 = sld [smem:[#allocation10_spill]]  ;;  %s3722_s13 = smov %s2792_s14 }
 0x478   : > { %s3723_s14 = smov %s2796_s15  ;;  %22 = sbr.rel (!%p20_p10) target bundleno = 4 (0x4), region = 190 }
 0x47b   : > { %s3724_s15 = smov %s3719_s12 }
 0x47d   :  { %2337 = vsyncpa [#allocation7], 1 }
 0x47e   :  { %2339 = vsyncpa [#allocation7 + $0x1], 1 }

</bundles_post_ra>
